<compile_context>
chip_gen: v6e
topology: v6e:2x2x1
jax: 0.10.0
libtpu: 0.0.40
codegen_flags: <defaults>
</compile_context>

<pallas_src>
import functools

import jax
import jax.numpy as jnp
import numpy as np
from jax.experimental import pallas as pl
from jax.experimental.pallas import tpu as pltpu


def wave_block_kernel(x_ref, w_in_ref, b_in_ref, w_cat_ref, b_cat_ref,
                      w_s_ref, b_s_ref, out_ref, hpad_ref, hcat_ref,
                      *, num_rates, ksize, seq_len, tile_t, halo, pad):
    tth = x_ref.shape[0]              # tile_t + 2*halo (haloed local region)
    cp = out_ref.shape[1]             # lane-padded channel count
    center = (ksize - 1) // 2
    t_idx = pl.program_id(1)

    # Row-validity mask: local row r corresponds to global time t_idx*tile_t - halo + r.
    gpos = (jax.lax.broadcasted_iota(jnp.int32, (tth, 1), 0)
            + t_idx * tile_t - halo)
    valid = jnp.logical_and(gpos >= 0, gpos < seq_len)

    # 1x1 input conv over the haloed tile (bf16 MXU operands, f32 accumulate).
    h = jnp.dot(x_ref[...], w_in_ref[...],
                preferred_element_type=jnp.float32) + b_in_ref[...]
    h = jnp.where(valid, h, 0.0)

    # Residual accumulates straight into the resident output block (center rows).
    out_ref[...] = h[halo:halo + tile_t, :]

    # Zero the scratch fringe rows once per step (read only for throw-away
    # fringe outputs, but keeps them deterministic / NaN-free).
    if pad > 0:
        zeros = jnp.zeros((pad, cp), jnp.bfloat16)
        hpad_ref[pl.ds(0, pad), :] = zeros
        hpad_ref[pl.ds(pad + tth, pad), :] = zeros

    for i in range(num_rates):
        d = 2 ** i
        # bf16 store of the current (masked) activations into the padded scratch.
        hpad_ref[pl.ds(pad, tth), :] = h.astype(jnp.bfloat16)
        # Scatter the K dilation-shifted windows into 128-lane blocks of h_cat.
        for j in range(ksize):
            hcat_ref[:, pl.ds(j * cp, cp)] = (
                hpad_ref[pl.ds(pad + (j - center) * d, tth), :])
        # Fused K-tap filter||gate matmul: (tth, K*Cp) @ (K*Cp, 2*Cp), f32 acc.
        fg = jnp.dot(hcat_ref[...], w_cat_ref[i],
                     preferred_element_type=jnp.float32) + b_cat_ref[i]
        z = jnp.tanh(fg[:, :cp]) * jax.nn.sigmoid(fg[:, cp:])
        # 1x1 skip conv (bf16 MXU operands, f32 accumulate).
        h = jnp.dot(z.astype(jnp.bfloat16), w_s_ref[i],
                    preferred_element_type=jnp.float32) + b_s_ref[i]
        h = jnp.where(valid, h, 0.0)
        out_ref[...] += h[halo:halo + tile_t, :]


def _round_up(a, b):
    return ((a + b - 1) // b) * b


def _vmem_limit_bytes():
    # Per-chip scoped-VMEM cap: 128-MiB parts (v5e/v6e) can go far higher than
    # v7x (64 MiB physical).  Conservative fallback if the query is unavailable.
    try:
        cap = getattr(pltpu.get_tpu_info(), "vmem_capacity_bytes", None)
    except Exception:
        cap = None
    if not cap:
        cap = 64 * 1024 * 1024
    return int(min((int(cap) * 3) // 4, 100 * 1024 * 1024))


def wave_block_pallas(x_ncl, w_in_t, b_in_t, w_f_t, b_f_t, w_g_t, b_g_t,
                      w_s_t, b_s_t, *, time_tile=None, weight_buffers=1):
    """Wave_Block forward.  PyTorch layouts in / out:
       x_ncl (B, Cin, T); conv1x1_in weight (Cout, Cin, 1), bias (Cout,);
       filter/gate weights (R, Cout, Cout, K), biases (R, Cout);
       skip 1x1 weights (R, Cout, Cout, 1), biases (R, Cout).
       Returns (B, Cout, T) float32 (same as the PyTorch module)."""
    B, Cin, T = x_ncl.shape
    Cout = w_in_t.shape[0]
    R = w_f_t.shape[0]
    K = w_f_t.shape[3]
    assert K % 2 == 1, "even kernel_size diverges from PyTorch 'same' padding"

    LANE, SUB = 128, 8
    Cp = _round_up(Cout, LANE)
    pc = Cp - Cout
    center = (K - 1) // 2
    smax = (2 ** (R - 1)) * center              # largest single-rate shift
    rfield = (2 ** R - 1) * center              # total receptive-field halo
    halo = _round_up(rfield, SUB) if rfield else 0
    pad = _round_up(smax, SUB) if smax else 0

    vmem_limit = _vmem_limit_bytes()
    if time_tile is None:                        # per-generation default tile
        time_tile = 512 if vmem_limit >= 72 * 1024 * 1024 else 256
    tile_t = min(_round_up(int(time_tile), SUB), _round_up(T, SUB))
    n_tt = -(-T // tile_t)
    t_round = n_tt * tile_t
    tth = tile_t + 2 * halo

    # ---- input: overlapping haloed time tiles (B, n_tt, tth, Cin), bf16 ------
    x_btc = jnp.transpose(x_ncl, (0, 2, 1)).astype(jnp.bfloat16)
    x_p = jnp.pad(x_btc, ((0, 0), (halo, halo + t_round - T), (0, 0)))
    win = jnp.arange(n_tt)[:, None] * tile_t + jnp.arange(tth)[None, :]
    x_tiles = x_p[:, win, :]

    # ---- weights: PyTorch conv layout -> lane-padded matmul matrices ---------
    w_in = jnp.pad(jnp.transpose(w_in_t[:, :, 0], (1, 0)),
                   ((0, 0), (0, pc))).astype(jnp.bfloat16)        # (Cin, Cp)
    b_in = jnp.pad(b_in_t, ((0, pc),))[None, :]                   # (1, Cp) f32

    # Fuse the K taps and filter||gate into one (K*Cp, 2*Cp) matrix per rate.
    pad_w = lambda w: jnp.pad(w, ((0, 0), (0, 0), (0, pc), (0, pc)))
    w_f_m = jnp.transpose(w_f_t, (0, 3, 2, 1))                    # (R, K, I, O)
    w_g_m = jnp.transpose(w_g_t, (0, 3, 2, 1))
    w_cat = jnp.concatenate([pad_w(w_f_m), pad_w(w_g_m)], axis=-1)
    w_cat = w_cat.reshape(R, K * Cp, 2 * Cp).astype(jnp.bfloat16)
    pad_b = lambda b: jnp.pad(b, ((0, 0), (0, pc)))
    b_cat = jnp.concatenate([pad_b(b_f_t), pad_b(b_g_t)], axis=-1)[:, None, :]

    w_s = jnp.pad(jnp.transpose(w_s_t[:, :, :, 0], (0, 2, 1)),
                  ((0, 0), (0, pc), (0, pc))).astype(jnp.bfloat16)  # (R, Cp, Cp)
    b_s = pad_b(b_s_t)[:, None, :]                                   # (R, 1, Cp)

    kernel = functools.partial(wave_block_kernel, num_rates=R, ksize=K,
                               seq_len=T, tile_t=tile_t, halo=halo, pad=pad)

    def const_spec(shape):
        n = len(shape)
        if weight_buffers == 1:
            # Block is constant across the whole grid: single-buffer it to avoid
            # pointless double-buffer VMEM duplication.
            return pl.BlockSpec(shape, lambda b, t, _n=n: (0,) * _n,
                                pipeline_mode=pl.Buffered(1))
        return pl.BlockSpec(shape, lambda b, t, _n=n: (0,) * _n)

    out_btc = pl.pallas_call(
        kernel,
        out_shape=jax.ShapeDtypeStruct((B, t_round, Cp), jnp.float32),
        grid=(B, n_tt),
        in_specs=[
            pl.BlockSpec((None, None, tth, Cin), lambda b, t: (b, t, 0, 0)),
            const_spec((Cin, Cp)),
            const_spec((1, Cp)),
            const_spec((R, K * Cp, 2 * Cp)),
            const_spec((R, 1, 2 * Cp)),
            const_spec((R, Cp, Cp)),
            const_spec((R, 1, Cp)),
        ],
        out_specs=pl.BlockSpec((None, tile_t, Cp), lambda b, t: (b, t, 0)),
        scratch_shapes=[
            pltpu.VMEM((tth + 2 * pad, Cp), jnp.bfloat16),   # time-padded h
            pltpu.VMEM((tth, K * Cp), jnp.bfloat16),         # fused K-tap LHS
        ],
        compiler_params=pltpu.CompilerParams(
            dimension_semantics=("parallel", "parallel"),
            vmem_limit_bytes=vmem_limit,
        ),
    )(x_tiles, w_in, b_in, w_cat, b_cat, w_s, b_s)

    # Drop time / channel padding and return the PyTorch NCL layout.
    return jnp.transpose(out_btc[:, :T, :Cout], (0, 2, 1))


# ------------------ pure-JAX reference (NCL, torch Conv1d semantics) -----------------
def _conv1d_ref(x_ncl, w_oik, b_o, dilation, padding):
    y = jax.lax.conv_general_dilated(
        x_ncl, w_oik, window_strides=(1,), padding=[(padding, padding)],
        rhs_dilation=(dilation,), dimension_numbers=("NCH", "OIH", "NCH"))
    return y + b_o[None, :, None]


def wave_block_ref(x_ncl, params, num_rates, ksize):
    (w_in_t, b_in_t, w_f_t, b_f_t, w_g_t, b_g_t, w_s_t, b_s_t) = params
    x = _conv1d_ref(x_ncl, w_in_t, b_in_t, 1, 0)
    res = x
    for i in range(num_rates):
        d = 2 ** i
        p = int(d * (ksize - 1) / 2)
        f = _conv1d_ref(x, w_f_t[i], b_f_t[i], d, p)
        g = _conv1d_ref(x, w_g_t[i], b_g_t[i], d, p)
        x = jnp.tanh(f) * jax.nn.sigmoid(g)
        x = _conv1d_ref(x, w_s_t[i], b_s_t[i], 1, 0)
        res = res + x
    return res


if __name__ == "__main__":
    B, Cin, Cout, T = 2, 4, 16, 32
    num_rates, K = 3, 3

    key = jax.random.PRNGKey(0)
    ks = jax.random.split(key, 9)

    # Parameters in PyTorch Conv1d layout: weight (Cout, Cin, K), bias (Cout,)
    w_in_t = 0.1 * jax.random.normal(ks[0], (Cout, Cin, 1), jnp.float32)
    b_in_t = 0.1 * jax.random.normal(ks[1], (Cout,), jnp.float32)
    w_f_t = 0.1 * jax.random.normal(ks[2], (num_rates, Cout, Cout, K), jnp.float32)
    b_f_t = 0.1 * jax.random.normal(ks[3], (num_rates, Cout), jnp.float32)
    w_g_t = 0.1 * jax.random.normal(ks[4], (num_rates, Cout, Cout, K), jnp.float32)
    b_g_t = 0.1 * jax.random.normal(ks[5], (num_rates, Cout), jnp.float32)
    w_s_t = 0.1 * jax.random.normal(ks[6], (num_rates, Cout, Cout, 1), jnp.float32)
    b_s_t = 0.1 * jax.random.normal(ks[7], (num_rates, Cout), jnp.float32)
    x_ncl = jax.random.normal(ks[8], (B, Cin, T), jnp.float32)   # PyTorch NCL input

    params = (w_in_t, b_in_t, w_f_t, b_f_t, w_g_t, b_g_t, w_s_t, b_s_t)
    ref_ncl = np.asarray(wave_block_ref(x_ncl, params, num_rates, K))

    fn = jax.jit(wave_block_pallas, static_argnames=("time_tile", "weight_buffers"))

    # Multi-tile path (2 time tiles of 16 + receptive-field halo). Prefer
    # single-buffered constant weights; fall back to default double-buffering
    # if this JAX build rejects BlockSpec.pipeline_mode / Buffered(1).
    try:
        out_tiled = jax.block_until_ready(
            fn(x_ncl, *params, time_tile=16, weight_buffers=1))
        wb = 1
    except Exception:
        wb = 2
        out_tiled = jax.block_until_ready(
            fn(x_ncl, *params, time_tile=16, weight_buffers=2))

    # bf16 MXU operands (f32 accumulation) => slightly looser tolerance than f32.
    np.testing.assert_allclose(np.asarray(out_tiled), ref_ncl, rtol=2e-2, atol=2e-2)

    # Default (single-tile) path.
    out_single = jax.block_until_ready(fn(x_ncl, *params, weight_buffers=wb))
    np.testing.assert_allclose(np.asarray(out_single), ref_ncl, rtol=2e-2, atol=2e-2)

    print("KERNEL_OK")
</pallas_src>

<mosaic_0001>
module attributes {stable_mosaic.version = 11 : i64} {
  func.func @wave_block_kernel(%arg0: i32, %arg1: i32, %arg2: memref<1x1x32x4xbf16, #tpu.memory_space<vmem>>, %arg3: memref<4x128xbf16, #tpu.memory_space<vmem>>, %arg4: memref<1x128xf32, #tpu.memory_space<vmem>>, %arg5: memref<3x384x256xbf16, #tpu.memory_space<vmem>>, %arg6: memref<3x1x256xf32, #tpu.memory_space<vmem>>, %arg7: memref<3x128x128xbf16, #tpu.memory_space<vmem>>, %arg8: memref<3x1x128xf32, #tpu.memory_space<vmem>>, %arg9: memref<1x16x128xf32, #tpu.memory_space<vmem>>, %arg10: memref<48x128xbf16, #tpu.memory_space<vmem>>, %arg11: memref<32x384xbf16, #tpu.memory_space<vmem>>) attributes {dimension_semantics = [#tpu.dimension_semantics<parallel>, #tpu.dimension_semantics<parallel>], iteration_bounds = array<i64: 2, 2>, scalar_prefetch = 0 : i64, scratch_operands = 2 : i64, tpu.core_type = #tpu.core_type<tc>, window_params = [{transform_indices = @transform_0, window_bounds = array<i64: 1, 1, 32, 4>}, {pipeline_mode = #tpu.pipeline_mode<synchronous>, transform_indices = @transform_1, window_bounds = array<i64: 4, 128>}, {pipeline_mode = #tpu.pipeline_mode<synchronous>, transform_indices = @transform_2, window_bounds = array<i64: 1, 128>}, {pipeline_mode = #tpu.pipeline_mode<synchronous>, transform_indices = @transform_3, window_bounds = array<i64: 3, 384, 256>}, {pipeline_mode = #tpu.pipeline_mode<synchronous>, transform_indices = @transform_4, window_bounds = array<i64: 3, 1, 256>}, {pipeline_mode = #tpu.pipeline_mode<synchronous>, transform_indices = @transform_5, window_bounds = array<i64: 3, 128, 128>}, {pipeline_mode = #tpu.pipeline_mode<synchronous>, transform_indices = @transform_6, window_bounds = array<i64: 3, 1, 128>}, {transform_indices = @transform_7, window_bounds = array<i64: 1, 16, 128>}]} {
    %0 = tpu.iota {dimensions = array<i32: 0>} : vector<32x1xi32>
    %c16_i32 = arith.constant 16 : i32
    %1 = arith.muli %arg1, %c16_i32 : i32
    %2 = vector.broadcast %1 : i32 to vector<32x1xi32>
    %3 = arith.addi %0, %2 : vector<32x1xi32>
    %c8_i32 = arith.constant 8 : i32
    %4 = vector.broadcast %c8_i32 : i32 to vector<32x1xi32>
    %5 = arith.subi %3, %4 : vector<32x1xi32>
    %c0_i32 = arith.constant 0 : i32
    %6 = vector.broadcast %c0_i32 : i32 to vector<32x1xi32>
    %7 = arith.cmpi sge, %5, %6 : vector<32x1xi32>
    %c32_i32 = arith.constant 32 : i32
    %8 = vector.broadcast %c32_i32 : i32 to vector<32x1xi32>
    %9 = arith.cmpi slt, %5, %8 : vector<32x1xi32>
    %10 = arith.andi %7, %9 : vector<32x1xi1>
    %c0 = arith.constant 0 : index
    %c0_0 = arith.constant 0 : index
    %c0_1 = arith.constant 0 : index
    %c0_2 = arith.constant 0 : index
    %11 = vector.load %arg2[%c0, %c0_0, %c0_1, %c0_2] : memref<1x1x32x4xbf16, #tpu.memory_space<vmem>>, vector<1x1x32x4xbf16>
    %12 = vector.shape_cast %11 : vector<1x1x32x4xbf16> to vector<32x4xbf16>
    %c0_3 = arith.constant 0 : index
    %c0_4 = arith.constant 0 : index
    %13 = vector.load %arg3[%c0_3, %c0_4] : memref<4x128xbf16, #tpu.memory_space<vmem>>, vector<4x128xbf16>
    %cst = arith.constant dense<0.000000e+00> : vector<32x128xf32>
    %14 = tpu.matmul %12, %13, %cst {dimension_numbers = #tpu.dot_dimension_numbers<[1], [0], [0], [1], [0, 0, 1, 1], [], []>} : vector<32x4xbf16>, vector<4x128xbf16>, vector<32x128xf32> -> vector<32x128xf32>
    %c0_5 = arith.constant 0 : index
    %c0_6 = arith.constant 0 : index
    %15 = vector.load %arg4[%c0_5, %c0_6] : memref<1x128xf32, #tpu.memory_space<vmem>>, vector<1x128xf32>
    %16 = vector.broadcast %15 : vector<1x128xf32> to vector<32x128xf32>
    %17 = arith.addf %14, %16 : vector<32x128xf32>
    %cst_7 = arith.constant 0.000000e+00 : f32
    %18 = vector.shape_cast %10 : vector<32x1xi1> to vector<32x1xi1>
    %19 = vector.broadcast %18 : vector<32x1xi1> to vector<32x128xi1>
    %20 = vector.broadcast %cst_7 : f32 to vector<32x128xf32>
    %21 = arith.select %19, %17, %20 : vector<32x128xi1>, vector<32x128xf32>
    %22 = vector.extract_strided_slice %21 {offsets = [8, 0], sizes = [16, 128], strides = [1, 1]} : vector<32x128xf32> to vector<16x128xf32>
    %c0_8 = arith.constant 0 : index
    %c0_9 = arith.constant 0 : index
    %c0_10 = arith.constant 0 : index
    %23 = vector.load %arg9[%c0_8, %c0_9, %c0_10] : memref<1x16x128xf32, #tpu.memory_space<vmem>>, vector<1x16x128xf32>
    %24 = vector.shape_cast %23 : vector<1x16x128xf32> to vector<16x128xf32>
    %25 = vector.shape_cast %22 : vector<16x128xf32> to vector<1x16x128xf32>
    tpu.vector_store %arg9[%c0_8, %c0_9, %c0_10], %25 {strides = array<i32>} : memref<1x16x128xf32, #tpu.memory_space<vmem>>, vector<1x16x128xf32>,
    %cst_11 = arith.constant 0.000000e+00 : bf16
    %26 = vector.broadcast %cst_11 : bf16 to vector<8x128xbf16>
    %c0_12 = arith.constant 0 : index
    %c0_13 = arith.constant 0 : index
    %27 = vector.load %arg10[%c0_12, %c0_13] : memref<48x128xbf16, #tpu.memory_space<vmem>>, vector<8x128xbf16>
    tpu.vector_store %arg10[%c0_12, %c0_13], %26 {strides = array<i32>} : memref<48x128xbf16, #tpu.memory_space<vmem>>, vector<8x128xbf16>,
    %c40 = arith.constant 40 : index
    %c0_14 = arith.constant 0 : index
    %28 = vector.load %arg10[%c40, %c0_14] : memref<48x128xbf16, #tpu.memory_space<vmem>>, vector<8x128xbf16>
    tpu.vector_store %arg10[%c40, %c0_14], %26 {strides = array<i32>} : memref<48x128xbf16, #tpu.memory_space<vmem>>, vector<8x128xbf16>,
    %29 = arith.truncf %21 : vector<32x128xf32> to vector<32x128xbf16>
    %c8 = arith.constant 8 : index
    %c0_15 = arith.constant 0 : index
    %30 = vector.load %arg10[%c8, %c0_15] : memref<48x128xbf16, #tpu.memory_space<vmem>>, vector<32x128xbf16>
    tpu.vector_store %arg10[%c8, %c0_15], %29 {strides = array<i32>} : memref<48x128xbf16, #tpu.memory_space<vmem>>, vector<32x128xbf16>,
    %c7 = arith.constant 7 : index
    %c0_16 = arith.constant 0 : index
    %31 = vector.load %arg10[%c7, %c0_16] : memref<48x128xbf16, #tpu.memory_space<vmem>>, vector<32x128xbf16>
    %c0_17 = arith.constant 0 : index
    %c0_18 = arith.constant 0 : index
    %32 = vector.load %arg11[%c0_17, %c0_18] : memref<32x384xbf16, #tpu.memory_space<vmem>>, vector<32x128xbf16>
    tpu.vector_store %arg11[%c0_17, %c0_18], %31 {strides = array<i32>} : memref<32x384xbf16, #tpu.memory_space<vmem>>, vector<32x128xbf16>,
    %c8_19 = arith.constant 8 : index
    %c0_20 = arith.constant 0 : index
    %33 = vector.load %arg10[%c8_19, %c0_20] : memref<48x128xbf16, #tpu.memory_space<vmem>>, vector<32x128xbf16>
    %c0_21 = arith.constant 0 : index
    %c128 = arith.constant 128 : index
    %34 = vector.load %arg11[%c0_21, %c128] : memref<32x384xbf16, #tpu.memory_space<vmem>>, vector<32x128xbf16>
    tpu.vector_store %arg11[%c0_21, %c128], %33 {strides = array<i32>} : memref<32x384xbf16, #tpu.memory_space<vmem>>, vector<32x128xbf16>,
    %c9 = arith.constant 9 : index
    %c0_22 = arith.constant 0 : index
    %35 = vector.load %arg10[%c9, %c0_22] : memref<48x128xbf16, #tpu.memory_space<vmem>>, vector<32x128xbf16>
    %c0_23 = arith.constant 0 : index
    %c256 = arith.constant 256 : index
    %36 = vector.load %arg11[%c0_23, %c256] : memref<32x384xbf16, #tpu.memory_space<vmem>>, vector<32x128xbf16>
    tpu.vector_store %arg11[%c0_23, %c256], %35 {strides = array<i32>} : memref<32x384xbf16, #tpu.memory_space<vmem>>, vector<32x128xbf16>,
    %c0_24 = arith.constant 0 : index
    %c0_25 = arith.constant 0 : index
    %37 = vector.load %arg11[%c0_24, %c0_25] : memref<32x384xbf16, #tpu.memory_space<vmem>>, vector<32x384xbf16>
    %c0_26 = arith.constant 0 : index
    %c0_27 = arith.constant 0 : index
    %c0_28 = arith.constant 0 : index
    %38 = vector.load %arg5[%c0_26, %c0_27, %c0_28] : memref<3x384x256xbf16, #tpu.memory_space<vmem>>, vector<1x384x256xbf16>
    %39 = vector.shape_cast %38 : vector<1x384x256xbf16> to vector<384x256xbf16>
    %cst_29 = arith.constant dense<0.000000e+00> : vector<32x256xf32>
    %40 = tpu.matmul %37, %39, %cst_29 {dimension_numbers = #tpu.dot_dimension_numbers<[1], [0], [0], [1], [0, 0, 1, 1], [], []>} : vector<32x384xbf16>, vector<384x256xbf16>, vector<32x256xf32> -> vector<32x256xf32>
    %c0_30 = arith.constant 0 : index
    %c0_31 = arith.constant 0 : index
    %c0_32 = arith.constant 0 : index
    %41 = vector.load %arg6[%c0_30, %c0_31, %c0_32] : memref<3x1x256xf32, #tpu.memory_space<vmem>>, vector<1x1x256xf32>
    %42 = vector.shape_cast %41 : vector<1x1x256xf32> to vector<1x256xf32>
    %43 = vector.broadcast %42 : vector<1x256xf32> to vector<32x256xf32>
    %44 = arith.addf %40, %43 : vector<32x256xf32>
    %45 = vector.extract_strided_slice %44 {offsets = [0, 0], sizes = [32, 128], strides = [1, 1]} : vector<32x256xf32> to vector<32x128xf32>
    %46 = math.tanh %45 : vector<32x128xf32>
    %47 = vector.extract_strided_slice %44 {offsets = [0, 128], sizes = [32, 128], strides = [1, 1]} : vector<32x256xf32> to vector<32x128xf32>
    %48 = arith.negf %47 : vector<32x128xf32>
    %49 = math.exp %48 : vector<32x128xf32>
    %cst_33 = arith.constant 1.000000e+00 : f32
    %50 = vector.broadcast %cst_33 : f32 to vector<32x128xf32>
    %51 = arith.addf %50, %49 : vector<32x128xf32>
    %52 = arith.divf %50, %51 : vector<32x128xf32>
    %53 = arith.mulf %46, %52 : vector<32x128xf32>
    %54 = arith.truncf %53 : vector<32x128xf32> to vector<32x128xbf16>
    %c0_34 = arith.constant 0 : index
    %c0_35 = arith.constant 0 : index
    %c0_36 = arith.constant 0 : index
    %55 = vector.load %arg7[%c0_34, %c0_35, %c0_36] : memref<3x128x128xbf16, #tpu.memory_space<vmem>>, vector<1x128x128xbf16>
    %56 = vector.shape_cast %55 : vector<1x128x128xbf16> to vector<128x128xbf16>
    %cst_37 = arith.constant dense<0.000000e+00> : vector<32x128xf32>
    %57 = tpu.matmul %54, %56, %cst_37 {dimension_numbers = #tpu.dot_dimension_numbers<[1], [0], [0], [1], [0, 0, 1, 1], [], []>} : vector<32x128xbf16>, vector<128x128xbf16>, vector<32x128xf32> -> vector<32x128xf32>
    %c0_38 = arith.constant 0 : index
    %c0_39 = arith.constant 0 : index
    %c0_40 = arith.constant 0 : index
    %58 = vector.load %arg8[%c0_38, %c0_39, %c0_40] : memref<3x1x128xf32, #tpu.memory_space<vmem>>, vector<1x1x128xf32>
    %59 = vector.shape_cast %58 : vector<1x1x128xf32> to vector<1x128xf32>
    %60 = vector.broadcast %59 : vector<1x128xf32> to vector<32x128xf32>
    %61 = arith.addf %57, %60 : vector<32x128xf32>
    %cst_41 = arith.constant 0.000000e+00 : f32
    %62 = vector.shape_cast %10 : vector<32x1xi1> to vector<32x1xi1>
    %63 = vector.broadcast %62 : vector<32x1xi1> to vector<32x128xi1>
    %64 = vector.broadcast %cst_41 : f32 to vector<32x128xf32>
    %65 = arith.select %63, %61, %64 : vector<32x128xi1>, vector<32x128xf32>
    %c0_42 = arith.constant 0 : index
    %c0_43 = arith.constant 0 : index
    %c0_44 = arith.constant 0 : index
    %66 = vector.load %arg9[%c0_42, %c0_43, %c0_44] : memref<1x16x128xf32, #tpu.memory_space<vmem>>, vector<1x16x128xf32>
    %67 = vector.shape_cast %66 : vector<1x16x128xf32> to vector<16x128xf32>
    %68 = vector.extract_strided_slice %65 {offsets = [8, 0], sizes = [16, 128], strides = [1, 1]} : vector<32x128xf32> to vector<16x128xf32>
    %69 = arith.addf %67, %68 : vector<16x128xf32>
    %c0_45 = arith.constant 0 : index
    %c0_46 = arith.constant 0 : index
    %c0_47 = arith.constant 0 : index
    %70 = vector.load %arg9[%c0_45, %c0_46, %c0_47] : memref<1x16x128xf32, #tpu.memory_space<vmem>>, vector<1x16x128xf32>
    %71 = vector.shape_cast %70 : vector<1x16x128xf32> to vector<16x128xf32>
    %72 = vector.shape_cast %69 : vector<16x128xf32> to vector<1x16x128xf32>
    tpu.vector_store %arg9[%c0_45, %c0_46, %c0_47], %72 {strides = array<i32>} : memref<1x16x128xf32, #tpu.memory_space<vmem>>, vector<1x16x128xf32>,
    %73 = arith.truncf %65 : vector<32x128xf32> to vector<32x128xbf16>
    %c8_48 = arith.constant 8 : index
    %c0_49 = arith.constant 0 : index
    %74 = vector.load %arg10[%c8_48, %c0_49] : memref<48x128xbf16, #tpu.memory_space<vmem>>, vector<32x128xbf16>
    tpu.vector_store %arg10[%c8_48, %c0_49], %73 {strides = array<i32>} : memref<48x128xbf16, #tpu.memory_space<vmem>>, vector<32x128xbf16>,
    %c6 = arith.constant 6 : index
    %c0_50 = arith.constant 0 : index
    %75 = vector.load %arg10[%c6, %c0_50] : memref<48x128xbf16, #tpu.memory_space<vmem>>, vector<32x128xbf16>
    %c0_51 = arith.constant 0 : index
    %c0_52 = arith.constant 0 : index
    %76 = vector.load %arg11[%c0_51, %c0_52] : memref<32x384xbf16, #tpu.memory_space<vmem>>, vector<32x128xbf16>
    tpu.vector_store %arg11[%c0_51, %c0_52], %75 {strides = array<i32>} : memref<32x384xbf16, #tpu.memory_space<vmem>>, vector<32x128xbf16>,
    %c8_53 = arith.constant 8 : index
    %c0_54 = arith.constant 0 : index
    %77 = vector.load %arg10[%c8_53, %c0_54] : memref<48x128xbf16, #tpu.memory_space<vmem>>, vector<32x128xbf16>
    %c0_55 = arith.constant 0 : index
    %c128_56 = arith.constant 128 : index
    %78 = vector.load %arg11[%c0_55, %c128_56] : memref<32x384xbf16, #tpu.memory_space<vmem>>, vector<32x128xbf16>
    tpu.vector_store %arg11[%c0_55, %c128_56], %77 {strides = array<i32>} : memref<32x384xbf16, #tpu.memory_space<vmem>>, vector<32x128xbf16>,
    %c10 = arith.constant 10 : index
    %c0_57 = arith.constant 0 : index
    %79 = vector.load %arg10[%c10, %c0_57] : memref<48x128xbf16, #tpu.memory_space<vmem>>, vector<32x128xbf16>
    %c0_58 = arith.constant 0 : index
    %c256_59 = arith.constant 256 : index
    %80 = vector.load %arg11[%c0_58, %c256_59] : memref<32x384xbf16, #tpu.memory_space<vmem>>, vector<32x128xbf16>
    tpu.vector_store %arg11[%c0_58, %c256_59], %79 {strides = array<i32>} : memref<32x384xbf16, #tpu.memory_space<vmem>>, vector<32x128xbf16>,
    %c0_60 = arith.constant 0 : index
    %c0_61 = arith.constant 0 : index
    %81 = vector.load %arg11[%c0_60, %c0_61] : memref<32x384xbf16, #tpu.memory_space<vmem>>, vector<32x384xbf16>
    %c1 = arith.constant 1 : index
    %c0_62 = arith.constant 0 : index
    %c0_63 = arith.constant 0 : index
    %82 = vector.load %arg5[%c1, %c0_62, %c0_63] : memref<3x384x256xbf16, #tpu.memory_space<vmem>>, vector<1x384x256xbf16>
    %83 = vector.shape_cast %82 : vector<1x384x256xbf16> to vector<384x256xbf16>
    %cst_64 = arith.constant dense<0.000000e+00> : vector<32x256xf32>
    %84 = tpu.matmul %81, %83, %cst_64 {dimension_numbers = #tpu.dot_dimension_numbers<[1], [0], [0], [1], [0, 0, 1, 1], [], []>} : vector<32x384xbf16>, vector<384x256xbf16>, vector<32x256xf32> -> vector<32x256xf32>
    %c1_65 = arith.constant 1 : index
    %c0_66 = arith.constant 0 : index
    %c0_67 = arith.constant 0 : index
    %85 = vector.load %arg6[%c1_65, %c0_66, %c0_67] : memref<3x1x256xf32, #tpu.memory_space<vmem>>, vector<1x1x256xf32>
    %86 = vector.shape_cast %85 : vector<1x1x256xf32> to vector<1x256xf32>
    %87 = vector.broadcast %86 : vector<1x256xf32> to vector<32x256xf32>
    %88 = arith.addf %84, %87 : vector<32x256xf32>
    %89 = vector.extract_strided_slice %88 {offsets = [0, 0], sizes = [32, 128], strides = [1, 1]} : vector<32x256xf32> to vector<32x128xf32>
    %90 = math.tanh %89 : vector<32x128xf32>
    %91 = vector.extract_strided_slice %88 {offsets = [0, 128], sizes = [32, 128], strides = [1, 1]} : vector<32x256xf32> to vector<32x128xf32>
    %92 = arith.negf %91 : vector<32x128xf32>
    %93 = math.exp %92 : vector<32x128xf32>
    %cst_68 = arith.constant 1.000000e+00 : f32
    %94 = vector.broadcast %cst_68 : f32 to vector<32x128xf32>
    %95 = arith.addf %94, %93 : vector<32x128xf32>
    %96 = arith.divf %94, %95 : vector<32x128xf32>
    %97 = arith.mulf %90, %96 : vector<32x128xf32>
    %98 = arith.truncf %97 : vector<32x128xf32> to vector<32x128xbf16>
    %c1_69 = arith.constant 1 : index
    %c0_70 = arith.constant 0 : index
    %c0_71 = arith.constant 0 : index
    %99 = vector.load %arg7[%c1_69, %c0_70, %c0_71] : memref<3x128x128xbf16, #tpu.memory_space<vmem>>, vector<1x128x128xbf16>
    %100 = vector.shape_cast %99 : vector<1x128x128xbf16> to vector<128x128xbf16>
    %cst_72 = arith.constant dense<0.000000e+00> : vector<32x128xf32>
    %101 = tpu.matmul %98, %100, %cst_72 {dimension_numbers = #tpu.dot_dimension_numbers<[1], [0], [0], [1], [0, 0, 1, 1], [], []>} : vector<32x128xbf16>, vector<128x128xbf16>, vector<32x128xf32> -> vector<32x128xf32>
    %c1_73 = arith.constant 1 : index
    %c0_74 = arith.constant 0 : index
    %c0_75 = arith.constant 0 : index
    %102 = vector.load %arg8[%c1_73, %c0_74, %c0_75] : memref<3x1x128xf32, #tpu.memory_space<vmem>>, vector<1x1x128xf32>
    %103 = vector.shape_cast %102 : vector<1x1x128xf32> to vector<1x128xf32>
    %104 = vector.broadcast %103 : vector<1x128xf32> to vector<32x128xf32>
    %105 = arith.addf %101, %104 : vector<32x128xf32>
    %cst_76 = arith.constant 0.000000e+00 : f32
    %106 = vector.shape_cast %10 : vector<32x1xi1> to vector<32x1xi1>
    %107 = vector.broadcast %106 : vector<32x1xi1> to vector<32x128xi1>
    %108 = vector.broadcast %cst_76 : f32 to vector<32x128xf32>
    %109 = arith.select %107, %105, %108 : vector<32x128xi1>, vector<32x128xf32>
    %c0_77 = arith.constant 0 : index
    %c0_78 = arith.constant 0 : index
    %c0_79 = arith.constant 0 : index
    %110 = vector.load %arg9[%c0_77, %c0_78, %c0_79] : memref<1x16x128xf32, #tpu.memory_space<vmem>>, vector<1x16x128xf32>
    %111 = vector.shape_cast %110 : vector<1x16x128xf32> to vector<16x128xf32>
    %112 = vector.extract_strided_slice %109 {offsets = [8, 0], sizes = [16, 128], strides = [1, 1]} : vector<32x128xf32> to vector<16x128xf32>
    %113 = arith.addf %111, %112 : vector<16x128xf32>
    %c0_80 = arith.constant 0 : index
    %c0_81 = arith.constant 0 : index
    %c0_82 = arith.constant 0 : index
    %114 = vector.load %arg9[%c0_80, %c0_81, %c0_82] : memref<1x16x128xf32, #tpu.memory_space<vmem>>, vector<1x16x128xf32>
    %115 = vector.shape_cast %114 : vector<1x16x128xf32> to vector<16x128xf32>
    %116 = vector.shape_cast %113 : vector<16x128xf32> to vector<1x16x128xf32>
    tpu.vector_store %arg9[%c0_80, %c0_81, %c0_82], %116 {strides = array<i32>} : memref<1x16x128xf32, #tpu.memory_space<vmem>>, vector<1x16x128xf32>,
    %117 = arith.truncf %109 : vector<32x128xf32> to vector<32x128xbf16>
    %c8_83 = arith.constant 8 : index
    %c0_84 = arith.constant 0 : index
    %118 = vector.load %arg10[%c8_83, %c0_84] : memref<48x128xbf16, #tpu.memory_space<vmem>>, vector<32x128xbf16>
    tpu.vector_store %arg10[%c8_83, %c0_84], %117 {strides = array<i32>} : memref<48x128xbf16, #tpu.memory_space<vmem>>, vector<32x128xbf16>,
    %c4 = arith.constant 4 : index
    %c0_85 = arith.constant 0 : index
    %119 = vector.load %arg10[%c4, %c0_85] : memref<48x128xbf16, #tpu.memory_space<vmem>>, vector<32x128xbf16>
    %c0_86 = arith.constant 0 : index
    %c0_87 = arith.constant 0 : index
    %120 = vector.load %arg11[%c0_86, %c0_87] : memref<32x384xbf16, #tpu.memory_space<vmem>>, vector<32x128xbf16>
    tpu.vector_store %arg11[%c0_86, %c0_87], %119 {strides = array<i32>} : memref<32x384xbf16, #tpu.memory_space<vmem>>, vector<32x128xbf16>,
    %c8_88 = arith.constant 8 : index
    %c0_89 = arith.constant 0 : index
    %121 = vector.load %arg10[%c8_88, %c0_89] : memref<48x128xbf16, #tpu.memory_space<vmem>>, vector<32x128xbf16>
    %c0_90 = arith.constant 0 : index
    %c128_91 = arith.constant 128 : index
    %122 = vector.load %arg11[%c0_90, %c128_91] : memref<32x384xbf16, #tpu.memory_space<vmem>>, vector<32x128xbf16>
    tpu.vector_store %arg11[%c0_90, %c128_91], %121 {strides = array<i32>} : memref<32x384xbf16, #tpu.memory_space<vmem>>, vector<32x128xbf16>,
    %c12 = arith.constant 12 : index
    %c0_92 = arith.constant 0 : index
    %123 = vector.load %arg10[%c12, %c0_92] : memref<48x128xbf16, #tpu.memory_space<vmem>>, vector<32x128xbf16>
    %c0_93 = arith.constant 0 : index
    %c256_94 = arith.constant 256 : index
    %124 = vector.load %arg11[%c0_93, %c256_94] : memref<32x384xbf16, #tpu.memory_space<vmem>>, vector<32x128xbf16>
    tpu.vector_store %arg11[%c0_93, %c256_94], %123 {strides = array<i32>} : memref<32x384xbf16, #tpu.memory_space<vmem>>, vector<32x128xbf16>,
    %c0_95 = arith.constant 0 : index
    %c0_96 = arith.constant 0 : index
    %125 = vector.load %arg11[%c0_95, %c0_96] : memref<32x384xbf16, #tpu.memory_space<vmem>>, vector<32x384xbf16>
    %c2 = arith.constant 2 : index
    %c0_97 = arith.constant 0 : index
    %c0_98 = arith.constant 0 : index
    %126 = vector.load %arg5[%c2, %c0_97, %c0_98] : memref<3x384x256xbf16, #tpu.memory_space<vmem>>, vector<1x384x256xbf16>
    %127 = vector.shape_cast %126 : vector<1x384x256xbf16> to vector<384x256xbf16>
    %cst_99 = arith.constant dense<0.000000e+00> : vector<32x256xf32>
    %128 = tpu.matmul %125, %127, %cst_99 {dimension_numbers = #tpu.dot_dimension_numbers<[1], [0], [0], [1], [0, 0, 1, 1], [], []>} : vector<32x384xbf16>, vector<384x256xbf16>, vector<32x256xf32> -> vector<32x256xf32>
    %c2_100 = arith.constant 2 : index
    %c0_101 = arith.constant 0 : index
    %c0_102 = arith.constant 0 : index
    %129 = vector.load %arg6[%c2_100, %c0_101, %c0_102] : memref<3x1x256xf32, #tpu.memory_space<vmem>>, vector<1x1x256xf32>
    %130 = vector.shape_cast %129 : vector<1x1x256xf32> to vector<1x256xf32>
    %131 = vector.broadcast %130 : vector<1x256xf32> to vector<32x256xf32>
    %132 = arith.addf %128, %131 : vector<32x256xf32>
    %133 = vector.extract_strided_slice %132 {offsets = [0, 0], sizes = [32, 128], strides = [1, 1]} : vector<32x256xf32> to vector<32x128xf32>
    %134 = math.tanh %133 : vector<32x128xf32>
    %135 = vector.extract_strided_slice %132 {offsets = [0, 128], sizes = [32, 128], strides = [1, 1]} : vector<32x256xf32> to vector<32x128xf32>
    %136 = arith.negf %135 : vector<32x128xf32>
    %137 = math.exp %136 : vector<32x128xf32>
    %cst_103 = arith.constant 1.000000e+00 : f32
    %138 = vector.broadcast %cst_103 : f32 to vector<32x128xf32>
    %139 = arith.addf %138, %137 : vector<32x128xf32>
    %140 = arith.divf %138, %139 : vector<32x128xf32>
    %141 = arith.mulf %134, %140 : vector<32x128xf32>
    %142 = arith.truncf %141 : vector<32x128xf32> to vector<32x128xbf16>
    %c2_104 = arith.constant 2 : index
    %c0_105 = arith.constant 0 : index
    %c0_106 = arith.constant 0 : index
    %143 = vector.load %arg7[%c2_104, %c0_105, %c0_106] : memref<3x128x128xbf16, #tpu.memory_space<vmem>>, vector<1x128x128xbf16>
    %144 = vector.shape_cast %143 : vector<1x128x128xbf16> to vector<128x128xbf16>
    %cst_107 = arith.constant dense<0.000000e+00> : vector<32x128xf32>
    %145 = tpu.matmul %142, %144, %cst_107 {dimension_numbers = #tpu.dot_dimension_numbers<[1], [0], [0], [1], [0, 0, 1, 1], [], []>} : vector<32x128xbf16>, vector<128x128xbf16>, vector<32x128xf32> -> vector<32x128xf32>
    %c2_108 = arith.constant 2 : index
    %c0_109 = arith.constant 0 : index
    %c0_110 = arith.constant 0 : index
    %146 = vector.load %arg8[%c2_108, %c0_109, %c0_110] : memref<3x1x128xf32, #tpu.memory_space<vmem>>, vector<1x1x128xf32>
    %147 = vector.shape_cast %146 : vector<1x1x128xf32> to vector<1x128xf32>
    %148 = vector.broadcast %147 : vector<1x128xf32> to vector<32x128xf32>
    %149 = arith.addf %145, %148 : vector<32x128xf32>
    %cst_111 = arith.constant 0.000000e+00 : f32
    %150 = vector.shape_cast %10 : vector<32x1xi1> to vector<32x1xi1>
    %151 = vector.broadcast %150 : vector<32x1xi1> to vector<32x128xi1>
    %152 = vector.broadcast %cst_111 : f32 to vector<32x128xf32>
    %153 = arith.select %151, %149, %152 : vector<32x128xi1>, vector<32x128xf32>
    %c0_112 = arith.constant 0 : index
    %c0_113 = arith.constant 0 : index
    %c0_114 = arith.constant 0 : index
    %154 = vector.load %arg9[%c0_112, %c0_113, %c0_114] : memref<1x16x128xf32, #tpu.memory_space<vmem>>, vector<1x16x128xf32>
    %155 = vector.shape_cast %154 : vector<1x16x128xf32> to vector<16x128xf32>
    %156 = vector.extract_strided_slice %153 {offsets = [8, 0], sizes = [16, 128], strides = [1, 1]} : vector<32x128xf32> to vector<16x128xf32>
    %157 = arith.addf %155, %156 : vector<16x128xf32>
    %c0_115 = arith.constant 0 : index
    %c0_116 = arith.constant 0 : index
    %c0_117 = arith.constant 0 : index
    %158 = vector.load %arg9[%c0_115, %c0_116, %c0_117] : memref<1x16x128xf32, #tpu.memory_space<vmem>>, vector<1x16x128xf32>
    %159 = vector.shape_cast %158 : vector<1x16x128xf32> to vector<16x128xf32>
    %160 = vector.shape_cast %157 : vector<16x128xf32> to vector<1x16x128xf32>
    tpu.vector_store %arg9[%c0_115, %c0_116, %c0_117], %160 {strides = array<i32>} : memref<1x16x128xf32, #tpu.memory_space<vmem>>, vector<1x16x128xf32>,
    return
  }
  func.func @transform_0(%arg0: i32, %arg1: i32) -> (i32, i32, i32, i32) {
    %c0_i32 = arith.constant 0 : i32
    %c0_i32_0 = arith.constant 0 : i32
    %c0_i32_1 = arith.constant 0 : i32
    return %arg0, %arg1, %c0_i32, %c0_i32_0 : i32, i32, i32, i32
  }
  func.func @transform_1(%arg0: i32, %arg1: i32) -> (i32, i32) {
    %c0_i32 = arith.constant 0 : i32
    %c0_i32_0 = arith.constant 0 : i32
    %c0_i32_1 = arith.constant 0 : i32
    return %c0_i32, %c0_i32_0 : i32, i32
  }
  func.func @transform_2(%arg0: i32, %arg1: i32) -> (i32, i32) {
    %c0_i32 = arith.constant 0 : i32
    %c0_i32_0 = arith.constant 0 : i32
    %c0_i32_1 = arith.constant 0 : i32
    return %c0_i32, %c0_i32_0 : i32, i32
  }
  func.func @transform_3(%arg0: i32, %arg1: i32) -> (i32, i32, i32) {
    %c0_i32 = arith.constant 0 : i32
    %c0_i32_0 = arith.constant 0 : i32
    %c0_i32_1 = arith.constant 0 : i32
    %c0_i32_2 = arith.constant 0 : i32
    return %c0_i32, %c0_i32_0, %c0_i32_1 : i32, i32, i32
  }
  func.func @transform_4(%arg0: i32, %arg1: i32) -> (i32, i32, i32) {
    %c0_i32 = arith.constant 0 : i32
    %c0_i32_0 = arith.constant 0 : i32
    %c0_i32_1 = arith.constant 0 : i32
    %c0_i32_2 = arith.constant 0 : i32
    return %c0_i32, %c0_i32_0, %c0_i32_1 : i32, i32, i32
  }
  func.func @transform_5(%arg0: i32, %arg1: i32) -> (i32, i32, i32) {
    %c0_i32 = arith.constant 0 : i32
    %c0_i32_0 = arith.constant 0 : i32
    %c0_i32_1 = arith.constant 0 : i32
    %c0_i32_2 = arith.constant 0 : i32
    return %c0_i32, %c0_i32_0, %c0_i32_1 : i32, i32, i32
  }
  func.func @transform_6(%arg0: i32, %arg1: i32) -> (i32, i32, i32) {
    %c0_i32 = arith.constant 0 : i32
    %c0_i32_0 = arith.constant 0 : i32
    %c0_i32_1 = arith.constant 0 : i32
    %c0_i32_2 = arith.constant 0 : i32
    return %c0_i32, %c0_i32_0, %c0_i32_1 : i32, i32, i32
  }
  func.func @transform_7(%arg0: i32, %arg1: i32) -> (i32, i32, i32) {
    %c0_i32 = arith.constant 0 : i32
    %c0_i32_0 = arith.constant 0 : i32
    return %arg0, %arg1, %c0_i32 : i32, i32, i32
  }
}

module attributes {stable_mosaic.version = 11 : i64} {
  func.func @wave_block_kernel(%arg0: i32, %arg1: i32, %arg2: memref<1x1x32x4xbf16, #tpu.memory_space<vmem>>, %arg3: memref<4x128xbf16, #tpu.memory_space<vmem>>, %arg4: memref<1x128xf32, #tpu.memory_space<vmem>>, %arg5: memref<3x384x256xbf16, #tpu.memory_space<vmem>>, %arg6: memref<3x1x256xf32, #tpu.memory_space<vmem>>, %arg7: memref<3x128x128xbf16, #tpu.memory_space<vmem>>, %arg8: memref<3x1x128xf32, #tpu.memory_space<vmem>>, %arg9: memref<1x16x128xf32, #tpu.memory_space<vmem>>, %arg10: memref<48x128xbf16, #tpu.memory_space<vmem>>, %arg11: memref<32x384xbf16, #tpu.memory_space<vmem>>) attributes {dimension_semantics = [#tpu.dimension_semantics<parallel>, #tpu.dimension_semantics<parallel>], iteration_bounds = array<i64: 2, 2>, scalar_prefetch = 0 : i64, scratch_operands = 2 : i64, tpu.core_type = #tpu.core_type<tc>, window_params = [{transform_indices = @transform_0, window_bounds = array<i64: 1, 1, 32, 4>}, {pipeline_mode = #tpu.pipeline_mode<synchronous>, transform_indices = @transform_1, window_bounds = array<i64: 4, 128>}, {pipeline_mode = #tpu.pipeline_mode<synchronous>, transform_indices = @transform_2, window_bounds = array<i64: 1, 128>}, {pipeline_mode = #tpu.pipeline_mode<synchronous>, transform_indices = @transform_3, window_bounds = array<i64: 3, 384, 256>}, {pipeline_mode = #tpu.pipeline_mode<synchronous>, transform_indices = @transform_4, window_bounds = array<i64: 3, 1, 256>}, {pipeline_mode = #tpu.pipeline_mode<synchronous>, transform_indices = @transform_5, window_bounds = array<i64: 3, 128, 128>}, {pipeline_mode = #tpu.pipeline_mode<synchronous>, transform_indices = @transform_6, window_bounds = array<i64: 3, 1, 128>}, {transform_indices = @transform_7, window_bounds = array<i64: 1, 16, 128>}]} {
    %0 = tpu.iota {dimensions = array<i32: 0>} : vector<32x1xi32>
    %c16_i32 = arith.constant 16 : i32
    %1 = arith.muli %arg1, %c16_i32 : i32
    %2 = vector.broadcast %1 : i32 to vector<32x1xi32>
    %3 = arith.addi %0, %2 : vector<32x1xi32>
    %c8_i32 = arith.constant 8 : i32
    %4 = vector.broadcast %c8_i32 : i32 to vector<32x1xi32>
    %5 = arith.subi %3, %4 : vector<32x1xi32>
    %c0_i32 = arith.constant 0 : i32
    %6 = vector.broadcast %c0_i32 : i32 to vector<32x1xi32>
    %7 = arith.cmpi sge, %5, %6 : vector<32x1xi32>
    %c32_i32 = arith.constant 32 : i32
    %8 = vector.broadcast %c32_i32 : i32 to vector<32x1xi32>
    %9 = arith.cmpi slt, %5, %8 : vector<32x1xi32>
    %10 = arith.andi %7, %9 : vector<32x1xi1>
    %c0 = arith.constant 0 : index
    %c0_0 = arith.constant 0 : index
    %c0_1 = arith.constant 0 : index
    %c0_2 = arith.constant 0 : index
    %11 = vector.load %arg2[%c0, %c0_0, %c0_1, %c0_2] : memref<1x1x32x4xbf16, #tpu.memory_space<vmem>>, vector<1x1x32x4xbf16>
    %12 = vector.shape_cast %11 : vector<1x1x32x4xbf16> to vector<32x4xbf16>
    %c0_3 = arith.constant 0 : index
    %c0_4 = arith.constant 0 : index
    %13 = vector.load %arg3[%c0_3, %c0_4] : memref<4x128xbf16, #tpu.memory_space<vmem>>, vector<4x128xbf16>
    %cst = arith.constant dense<0.000000e+00> : vector<32x128xf32>
    %14 = tpu.matmul %12, %13, %cst {dimension_numbers = #tpu.dot_dimension_numbers<[1], [0], [0], [1], [0, 0, 1, 1], [], []>} : vector<32x4xbf16>, vector<4x128xbf16>, vector<32x128xf32> -> vector<32x128xf32>
    %c0_5 = arith.constant 0 : index
    %c0_6 = arith.constant 0 : index
    %15 = vector.load %arg4[%c0_5, %c0_6] : memref<1x128xf32, #tpu.memory_space<vmem>>, vector<1x128xf32>
    %16 = vector.broadcast %15 : vector<1x128xf32> to vector<32x128xf32>
    %17 = arith.addf %14, %16 : vector<32x128xf32>
    %cst_7 = arith.constant 0.000000e+00 : f32
    %18 = vector.shape_cast %10 : vector<32x1xi1> to vector<32x1xi1>
    %19 = vector.broadcast %18 : vector<32x1xi1> to vector<32x128xi1>
    %20 = vector.broadcast %cst_7 : f32 to vector<32x128xf32>
    %21 = arith.select %19, %17, %20 : vector<32x128xi1>, vector<32x128xf32>
    %22 = vector.extract_strided_slice %21 {offsets = [8, 0], sizes = [16, 128], strides = [1, 1]} : vector<32x128xf32> to vector<16x128xf32>
    %c0_8 = arith.constant 0 : index
    %c0_9 = arith.constant 0 : index
    %c0_10 = arith.constant 0 : index
    %23 = vector.load %arg9[%c0_8, %c0_9, %c0_10] : memref<1x16x128xf32, #tpu.memory_space<vmem>>, vector<1x16x128xf32>
    %24 = vector.shape_cast %23 : vector<1x16x128xf32> to vector<16x128xf32>
    %25 = vector.shape_cast %22 : vector<16x128xf32> to vector<1x16x128xf32>
    tpu.vector_store %arg9[%c0_8, %c0_9, %c0_10], %25 {strides = array<i32>} : memref<1x16x128xf32, #tpu.memory_space<vmem>>, vector<1x16x128xf32>,
    %cst_11 = arith.constant 0.000000e+00 : bf16
    %26 = vector.broadcast %cst_11 : bf16 to vector<8x128xbf16>
    %c0_12 = arith.constant 0 : index
    %c0_13 = arith.constant 0 : index
    %27 = vector.load %arg10[%c0_12, %c0_13] : memref<48x128xbf16, #tpu.memory_space<vmem>>, vector<8x128xbf16>
    tpu.vector_store %arg10[%c0_12, %c0_13], %26 {strides = array<i32>} : memref<48x128xbf16, #tpu.memory_space<vmem>>, vector<8x128xbf16>,
    %c40 = arith.constant 40 : index
    %c0_14 = arith.constant 0 : index
    %28 = vector.load %arg10[%c40, %c0_14] : memref<48x128xbf16, #tpu.memory_space<vmem>>, vector<8x128xbf16>
    tpu.vector_store %arg10[%c40, %c0_14], %26 {strides = array<i32>} : memref<48x128xbf16, #tpu.memory_space<vmem>>, vector<8x128xbf16>,
    %29 = arith.truncf %21 : vector<32x128xf32> to vector<32x128xbf16>
    %c8 = arith.constant 8 : index
    %c0_15 = arith.constant 0 : index
    %30 = vector.load %arg10[%c8, %c0_15] : memref<48x128xbf16, #tpu.memory_space<vmem>>, vector<32x128xbf16>
    tpu.vector_store %arg10[%c8, %c0_15], %29 {strides = array<i32>} : memref<48x128xbf16, #tpu.memory_space<vmem>>, vector<32x128xbf16>,
    %c7 = arith.constant 7 : index
    %c0_16 = arith.constant 0 : index
    %31 = vector.load %arg10[%c7, %c0_16] : memref<48x128xbf16, #tpu.memory_space<vmem>>, vector<32x128xbf16>
    %c0_17 = arith.constant 0 : index
    %c0_18 = arith.constant 0 : index
    %32 = vector.load %arg11[%c0_17, %c0_18] : memref<32x384xbf16, #tpu.memory_space<vmem>>, vector<32x128xbf16>
    tpu.vector_store %arg11[%c0_17, %c0_18], %31 {strides = array<i32>} : memref<32x384xbf16, #tpu.memory_space<vmem>>, vector<32x128xbf16>,
    %c8_19 = arith.constant 8 : index
    %c0_20 = arith.constant 0 : index
    %33 = vector.load %arg10[%c8_19, %c0_20] : memref<48x128xbf16, #tpu.memory_space<vmem>>, vector<32x128xbf16>
    %c0_21 = arith.constant 0 : index
    %c128 = arith.constant 128 : index
    %34 = vector.load %arg11[%c0_21, %c128] : memref<32x384xbf16, #tpu.memory_space<vmem>>, vector<32x128xbf16>
    tpu.vector_store %arg11[%c0_21, %c128], %33 {strides = array<i32>} : memref<32x384xbf16, #tpu.memory_space<vmem>>, vector<32x128xbf16>,
    %c9 = arith.constant 9 : index
    %c0_22 = arith.constant 0 : index
    %35 = vector.load %arg10[%c9, %c0_22] : memref<48x128xbf16, #tpu.memory_space<vmem>>, vector<32x128xbf16>
    %c0_23 = arith.constant 0 : index
    %c256 = arith.constant 256 : index
    %36 = vector.load %arg11[%c0_23, %c256] : memref<32x384xbf16, #tpu.memory_space<vmem>>, vector<32x128xbf16>
    tpu.vector_store %arg11[%c0_23, %c256], %35 {strides = array<i32>} : memref<32x384xbf16, #tpu.memory_space<vmem>>, vector<32x128xbf16>,
    %c0_24 = arith.constant 0 : index
    %c0_25 = arith.constant 0 : index
    %37 = vector.load %arg11[%c0_24, %c0_25] : memref<32x384xbf16, #tpu.memory_space<vmem>>, vector<32x384xbf16>
    %c0_26 = arith.constant 0 : index
    %c0_27 = arith.constant 0 : index
    %c0_28 = arith.constant 0 : index
    %38 = vector.load %arg5[%c0_26, %c0_27, %c0_28] : memref<3x384x256xbf16, #tpu.memory_space<vmem>>, vector<1x384x256xbf16>
    %39 = vector.shape_cast %38 : vector<1x384x256xbf16> to vector<384x256xbf16>
    %cst_29 = arith.constant dense<0.000000e+00> : vector<32x256xf32>
    %40 = tpu.matmul %37, %39, %cst_29 {dimension_numbers = #tpu.dot_dimension_numbers<[1], [0], [0], [1], [0, 0, 1, 1], [], []>} : vector<32x384xbf16>, vector<384x256xbf16>, vector<32x256xf32> -> vector<32x256xf32>
    %c0_30 = arith.constant 0 : index
    %c0_31 = arith.constant 0 : index
    %c0_32 = arith.constant 0 : index
    %41 = vector.load %arg6[%c0_30, %c0_31, %c0_32] : memref<3x1x256xf32, #tpu.memory_space<vmem>>, vector<1x1x256xf32>
    %42 = vector.shape_cast %41 : vector<1x1x256xf32> to vector<1x256xf32>
    %43 = vector.broadcast %42 : vector<1x256xf32> to vector<32x256xf32>
    %44 = arith.addf %40, %43 : vector<32x256xf32>
    %45 = vector.extract_strided_slice %44 {offsets = [0, 0], sizes = [32, 128], strides = [1, 1]} : vector<32x256xf32> to vector<32x128xf32>
    %46 = math.tanh %45 : vector<32x128xf32>
    %47 = vector.extract_strided_slice %44 {offsets = [0, 128], sizes = [32, 128], strides = [1, 1]} : vector<32x256xf32> to vector<32x128xf32>
    %48 = arith.negf %47 : vector<32x128xf32>
    %49 = math.exp %48 : vector<32x128xf32>
    %cst_33 = arith.constant 1.000000e+00 : f32
    %50 = vector.broadcast %cst_33 : f32 to vector<32x128xf32>
    %51 = arith.addf %50, %49 : vector<32x128xf32>
    %52 = arith.divf %50, %51 : vector<32x128xf32>
    %53 = arith.mulf %46, %52 : vector<32x128xf32>
    %54 = arith.truncf %53 : vector<32x128xf32> to vector<32x128xbf16>
    %c0_34 = arith.constant 0 : index
    %c0_35 = arith.constant 0 : index
    %c0_36 = arith.constant 0 : index
    %55 = vector.load %arg7[%c0_34, %c0_35, %c0_36] : memref<3x128x128xbf16, #tpu.memory_space<vmem>>, vector<1x128x128xbf16>
    %56 = vector.shape_cast %55 : vector<1x128x128xbf16> to vector<128x128xbf16>
    %cst_37 = arith.constant dense<0.000000e+00> : vector<32x128xf32>
    %57 = tpu.matmul %54, %56, %cst_37 {dimension_numbers = #tpu.dot_dimension_numbers<[1], [0], [0], [1], [0, 0, 1, 1], [], []>} : vector<32x128xbf16>, vector<128x128xbf16>, vector<32x128xf32> -> vector<32x128xf32>
    %c0_38 = arith.constant 0 : index
    %c0_39 = arith.constant 0 : index
    %c0_40 = arith.constant 0 : index
    %58 = vector.load %arg8[%c0_38, %c0_39, %c0_40] : memref<3x1x128xf32, #tpu.memory_space<vmem>>, vector<1x1x128xf32>
    %59 = vector.shape_cast %58 : vector<1x1x128xf32> to vector<1x128xf32>
    %60 = vector.broadcast %59 : vector<1x128xf32> to vector<32x128xf32>
    %61 = arith.addf %57, %60 : vector<32x128xf32>
    %cst_41 = arith.constant 0.000000e+00 : f32
    %62 = vector.shape_cast %10 : vector<32x1xi1> to vector<32x1xi1>
    %63 = vector.broadcast %62 : vector<32x1xi1> to vector<32x128xi1>
    %64 = vector.broadcast %cst_41 : f32 to vector<32x128xf32>
    %65 = arith.select %63, %61, %64 : vector<32x128xi1>, vector<32x128xf32>
    %c0_42 = arith.constant 0 : index
    %c0_43 = arith.constant 0 : index
    %c0_44 = arith.constant 0 : index
    %66 = vector.load %arg9[%c0_42, %c0_43, %c0_44] : memref<1x16x128xf32, #tpu.memory_space<vmem>>, vector<1x16x128xf32>
    %67 = vector.shape_cast %66 : vector<1x16x128xf32> to vector<16x128xf32>
    %68 = vector.extract_strided_slice %65 {offsets = [8, 0], sizes = [16, 128], strides = [1, 1]} : vector<32x128xf32> to vector<16x128xf32>
    %69 = arith.addf %67, %68 : vector<16x128xf32>
    %c0_45 = arith.constant 0 : index
    %c0_46 = arith.constant 0 : index
    %c0_47 = arith.constant 0 : index
    %70 = vector.load %arg9[%c0_45, %c0_46, %c0_47] : memref<1x16x128xf32, #tpu.memory_space<vmem>>, vector<1x16x128xf32>
    %71 = vector.shape_cast %70 : vector<1x16x128xf32> to vector<16x128xf32>
    %72 = vector.shape_cast %69 : vector<16x128xf32> to vector<1x16x128xf32>
    tpu.vector_store %arg9[%c0_45, %c0_46, %c0_47], %72 {strides = array<i32>} : memref<1x16x128xf32, #tpu.memory_space<vmem>>, vector<1x16x128xf32>,
    %73 = arith.truncf %65 : vector<32x128xf32> to vector<32x128xbf16>
    %c8_48 = arith.constant 8 : index
    %c0_49 = arith.constant 0 : index
    %74 = vector.load %arg10[%c8_48, %c0_49] : memref<48x128xbf16, #tpu.memory_space<vmem>>, vector<32x128xbf16>
    tpu.vector_store %arg10[%c8_48, %c0_49], %73 {strides = array<i32>} : memref<48x128xbf16, #tpu.memory_space<vmem>>, vector<32x128xbf16>,
    %c6 = arith.constant 6 : index
    %c0_50 = arith.constant 0 : index
    %75 = vector.load %arg10[%c6, %c0_50] : memref<48x128xbf16, #tpu.memory_space<vmem>>, vector<32x128xbf16>
    %c0_51 = arith.constant 0 : index
    %c0_52 = arith.constant 0 : index
    %76 = vector.load %arg11[%c0_51, %c0_52] : memref<32x384xbf16, #tpu.memory_space<vmem>>, vector<32x128xbf16>
    tpu.vector_store %arg11[%c0_51, %c0_52], %75 {strides = array<i32>} : memref<32x384xbf16, #tpu.memory_space<vmem>>, vector<32x128xbf16>,
    %c8_53 = arith.constant 8 : index
    %c0_54 = arith.constant 0 : index
    %77 = vector.load %arg10[%c8_53, %c0_54] : memref<48x128xbf16, #tpu.memory_space<vmem>>, vector<32x128xbf16>
    %c0_55 = arith.constant 0 : index
    %c128_56 = arith.constant 128 : index
    %78 = vector.load %arg11[%c0_55, %c128_56] : memref<32x384xbf16, #tpu.memory_space<vmem>>, vector<32x128xbf16>
    tpu.vector_store %arg11[%c0_55, %c128_56], %77 {strides = array<i32>} : memref<32x384xbf16, #tpu.memory_space<vmem>>, vector<32x128xbf16>,
    %c10 = arith.constant 10 : index
    %c0_57 = arith.constant 0 : index
    %79 = vector.load %arg10[%c10, %c0_57] : memref<48x128xbf16, #tpu.memory_space<vmem>>, vector<32x128xbf16>
    %c0_58 = arith.constant 0 : index
    %c256_59 = arith.constant 256 : index
    %80 = vector.load %arg11[%c0_58, %c256_59] : memref<32x384xbf16, #tpu.memory_space<vmem>>, vector<32x128xbf16>
    tpu.vector_store %arg11[%c0_58, %c256_59], %79 {strides = array<i32>} : memref<32x384xbf16, #tpu.memory_space<vmem>>, vector<32x128xbf16>,
    %c0_60 = arith.constant 0 : index
    %c0_61 = arith.constant 0 : index
    %81 = vector.load %arg11[%c0_60, %c0_61] : memref<32x384xbf16, #tpu.memory_space<vmem>>, vector<32x384xbf16>
    %c1 = arith.constant 1 : index
    %c0_62 = arith.constant 0 : index
    %c0_63 = arith.constant 0 : index
    %82 = vector.load %arg5[%c1, %c0_62, %c0_63] : memref<3x384x256xbf16, #tpu.memory_space<vmem>>, vector<1x384x256xbf16>
    %83 = vector.shape_cast %82 : vector<1x384x256xbf16> to vector<384x256xbf16>
    %cst_64 = arith.constant dense<0.000000e+00> : vector<32x256xf32>
    %84 = tpu.matmul %81, %83, %cst_64 {dimension_numbers = #tpu.dot_dimension_numbers<[1], [0], [0], [1], [0, 0, 1, 1], [], []>} : vector<32x384xbf16>, vector<384x256xbf16>, vector<32x256xf32> -> vector<32x256xf32>
    %c1_65 = arith.constant 1 : index
    %c0_66 = arith.constant 0 : index
    %c0_67 = arith.constant 0 : index
    %85 = vector.load %arg6[%c1_65, %c0_66, %c0_67] : memref<3x1x256xf32, #tpu.memory_space<vmem>>, vector<1x1x256xf32>
    %86 = vector.shape_cast %85 : vector<1x1x256xf32> to vector<1x256xf32>
    %87 = vector.broadcast %86 : vector<1x256xf32> to vector<32x256xf32>
    %88 = arith.addf %84, %87 : vector<32x256xf32>
    %89 = vector.extract_strided_slice %88 {offsets = [0, 0], sizes = [32, 128], strides = [1, 1]} : vector<32x256xf32> to vector<32x128xf32>
    %90 = math.tanh %89 : vector<32x128xf32>
    %91 = vector.extract_strided_slice %88 {offsets = [0, 128], sizes = [32, 128], strides = [1, 1]} : vector<32x256xf32> to vector<32x128xf32>
    %92 = arith.negf %91 : vector<32x128xf32>
    %93 = math.exp %92 : vector<32x128xf32>
    %cst_68 = arith.constant 1.000000e+00 : f32
    %94 = vector.broadcast %cst_68 : f32 to vector<32x128xf32>
    %95 = arith.addf %94, %93 : vector<32x128xf32>
    %96 = arith.divf %94, %95 : vector<32x128xf32>
    %97 = arith.mulf %90, %96 : vector<32x128xf32>
    %98 = arith.truncf %97 : vector<32x128xf32> to vector<32x128xbf16>
    %c1_69 = arith.constant 1 : index
    %c0_70 = arith.constant 0 : index
    %c0_71 = arith.constant 0 : index
    %99 = vector.load %arg7[%c1_69, %c0_70, %c0_71] : memref<3x128x128xbf16, #tpu.memory_space<vmem>>, vector<1x128x128xbf16>
    %100 = vector.shape_cast %99 : vector<1x128x128xbf16> to vector<128x128xbf16>
    %cst_72 = arith.constant dense<0.000000e+00> : vector<32x128xf32>
    %101 = tpu.matmul %98, %100, %cst_72 {dimension_numbers = #tpu.dot_dimension_numbers<[1], [0], [0], [1], [0, 0, 1, 1], [], []>} : vector<32x128xbf16>, vector<128x128xbf16>, vector<32x128xf32> -> vector<32x128xf32>
    %c1_73 = arith.constant 1 : index
    %c0_74 = arith.constant 0 : index
    %c0_75 = arith.constant 0 : index
    %102 = vector.load %arg8[%c1_73, %c0_74, %c0_75] : memref<3x1x128xf32, #tpu.memory_space<vmem>>, vector<1x1x128xf32>
    %103 = vector.shape_cast %102 : vector<1x1x128xf32> to vector<1x128xf32>
    %104 = vector.broadcast %103 : vector<1x128xf32> to vector<32x128xf32>
    %105 = arith.addf %101, %104 : vector<32x128xf32>
    %cst_76 = arith.constant 0.000000e+00 : f32
    %106 = vector.shape_cast %10 : vector<32x1xi1> to vector<32x1xi1>
    %107 = vector.broadcast %106 : vector<32x1xi1> to vector<32x128xi1>
    %108 = vector.broadcast %cst_76 : f32 to vector<32x128xf32>
    %109 = arith.select %107, %105, %108 : vector<32x128xi1>, vector<32x128xf32>
    %c0_77 = arith.constant 0 : index
    %c0_78 = arith.constant 0 : index
    %c0_79 = arith.constant 0 : index
    %110 = vector.load %arg9[%c0_77, %c0_78, %c0_79] : memref<1x16x128xf32, #tpu.memory_space<vmem>>, vector<1x16x128xf32>
    %111 = vector.shape_cast %110 : vector<1x16x128xf32> to vector<16x128xf32>
    %112 = vector.extract_strided_slice %109 {offsets = [8, 0], sizes = [16, 128], strides = [1, 1]} : vector<32x128xf32> to vector<16x128xf32>
    %113 = arith.addf %111, %112 : vector<16x128xf32>
    %c0_80 = arith.constant 0 : index
    %c0_81 = arith.constant 0 : index
    %c0_82 = arith.constant 0 : index
    %114 = vector.load %arg9[%c0_80, %c0_81, %c0_82] : memref<1x16x128xf32, #tpu.memory_space<vmem>>, vector<1x16x128xf32>
    %115 = vector.shape_cast %114 : vector<1x16x128xf32> to vector<16x128xf32>
    %116 = vector.shape_cast %113 : vector<16x128xf32> to vector<1x16x128xf32>
    tpu.vector_store %arg9[%c0_80, %c0_81, %c0_82], %116 {strides = array<i32>} : memref<1x16x128xf32, #tpu.memory_space<vmem>>, vector<1x16x128xf32>,
    %117 = arith.truncf %109 : vector<32x128xf32> to vector<32x128xbf16>
    %c8_83 = arith.constant 8 : index
    %c0_84 = arith.constant 0 : index
    %118 = vector.load %arg10[%c8_83, %c0_84] : memref<48x128xbf16, #tpu.memory_space<vmem>>, vector<32x128xbf16>
    tpu.vector_store %arg10[%c8_83, %c0_84], %117 {strides = array<i32>} : memref<48x128xbf16, #tpu.memory_space<vmem>>, vector<32x128xbf16>,
    %c4 = arith.constant 4 : index
    %c0_85 = arith.constant 0 : index
    %119 = vector.load %arg10[%c4, %c0_85] : memref<48x128xbf16, #tpu.memory_space<vmem>>, vector<32x128xbf16>
    %c0_86 = arith.constant 0 : index
    %c0_87 = arith.constant 0 : index
    %120 = vector.load %arg11[%c0_86, %c0_87] : memref<32x384xbf16, #tpu.memory_space<vmem>>, vector<32x128xbf16>
    tpu.vector_store %arg11[%c0_86, %c0_87], %119 {strides = array<i32>} : memref<32x384xbf16, #tpu.memory_space<vmem>>, vector<32x128xbf16>,
    %c8_88 = arith.constant 8 : index
    %c0_89 = arith.constant 0 : index
    %121 = vector.load %arg10[%c8_88, %c0_89] : memref<48x128xbf16, #tpu.memory_space<vmem>>, vector<32x128xbf16>
    %c0_90 = arith.constant 0 : index
    %c128_91 = arith.constant 128 : index
    %122 = vector.load %arg11[%c0_90, %c128_91] : memref<32x384xbf16, #tpu.memory_space<vmem>>, vector<32x128xbf16>
    tpu.vector_store %arg11[%c0_90, %c128_91], %121 {strides = array<i32>} : memref<32x384xbf16, #tpu.memory_space<vmem>>, vector<32x128xbf16>,
    %c12 = arith.constant 12 : index
    %c0_92 = arith.constant 0 : index
    %123 = vector.load %arg10[%c12, %c0_92] : memref<48x128xbf16, #tpu.memory_space<vmem>>, vector<32x128xbf16>
    %c0_93 = arith.constant 0 : index
    %c256_94 = arith.constant 256 : index
    %124 = vector.load %arg11[%c0_93, %c256_94] : memref<32x384xbf16, #tpu.memory_space<vmem>>, vector<32x128xbf16>
    tpu.vector_store %arg11[%c0_93, %c256_94], %123 {strides = array<i32>} : memref<32x384xbf16, #tpu.memory_space<vmem>>, vector<32x128xbf16>,
    %c0_95 = arith.constant 0 : index
    %c0_96 = arith.constant 0 : index
    %125 = vector.load %arg11[%c0_95, %c0_96] : memref<32x384xbf16, #tpu.memory_space<vmem>>, vector<32x384xbf16>
    %c2 = arith.constant 2 : index
    %c0_97 = arith.constant 0 : index
    %c0_98 = arith.constant 0 : index
    %126 = vector.load %arg5[%c2, %c0_97, %c0_98] : memref<3x384x256xbf16, #tpu.memory_space<vmem>>, vector<1x384x256xbf16>
    %127 = vector.shape_cast %126 : vector<1x384x256xbf16> to vector<384x256xbf16>
    %cst_99 = arith.constant dense<0.000000e+00> : vector<32x256xf32>
    %128 = tpu.matmul %125, %127, %cst_99 {dimension_numbers = #tpu.dot_dimension_numbers<[1], [0], [0], [1], [0, 0, 1, 1], [], []>} : vector<32x384xbf16>, vector<384x256xbf16>, vector<32x256xf32> -> vector<32x256xf32>
    %c2_100 = arith.constant 2 : index
    %c0_101 = arith.constant 0 : index
    %c0_102 = arith.constant 0 : index
    %129 = vector.load %arg6[%c2_100, %c0_101, %c0_102] : memref<3x1x256xf32, #tpu.memory_space<vmem>>, vector<1x1x256xf32>
    %130 = vector.shape_cast %129 : vector<1x1x256xf32> to vector<1x256xf32>
    %131 = vector.broadcast %130 : vector<1x256xf32> to vector<32x256xf32>
    %132 = arith.addf %128, %131 : vector<32x256xf32>
    %133 = vector.extract_strided_slice %132 {offsets = [0, 0], sizes = [32, 128], strides = [1, 1]} : vector<32x256xf32> to vector<32x128xf32>
    %134 = math.tanh %133 : vector<32x128xf32>
    %135 = vector.extract_strided_slice %132 {offsets = [0, 128], sizes = [32, 128], strides = [1, 1]} : vector<32x256xf32> to vector<32x128xf32>
    %136 = arith.negf %135 : vector<32x128xf32>
    %137 = math.exp %136 : vector<32x128xf32>
    %cst_103 = arith.constant 1.000000e+00 : f32
    %138 = vector.broadcast %cst_103 : f32 to vector<32x128xf32>
    %139 = arith.addf %138, %137 : vector<32x128xf32>
    %140 = arith.divf %138, %139 : vector<32x128xf32>
    %141 = arith.mulf %134, %140 : vector<32x128xf32>
    %142 = arith.truncf %141 : vector<32x128xf32> to vector<32x128xbf16>
    %c2_104 = arith.constant 2 : index
    %c0_105 = arith.constant 0 : index
    %c0_106 = arith.constant 0 : index
    %143 = vector.load %arg7[%c2_104, %c0_105, %c0_106] : memref<3x128x128xbf16, #tpu.memory_space<vmem>>, vector<1x128x128xbf16>
    %144 = vector.shape_cast %143 : vector<1x128x128xbf16> to vector<128x128xbf16>
    %cst_107 = arith.constant dense<0.000000e+00> : vector<32x128xf32>
    %145 = tpu.matmul %142, %144, %cst_107 {dimension_numbers = #tpu.dot_dimension_numbers<[1], [0], [0], [1], [0, 0, 1, 1], [], []>} : vector<32x128xbf16>, vector<128x128xbf16>, vector<32x128xf32> -> vector<32x128xf32>
    %c2_108 = arith.constant 2 : index
    %c0_109 = arith.constant 0 : index
    %c0_110 = arith.constant 0 : index
    %146 = vector.load %arg8[%c2_108, %c0_109, %c0_110] : memref<3x1x128xf32, #tpu.memory_space<vmem>>, vector<1x1x128xf32>
    %147 = vector.shape_cast %146 : vector<1x1x128xf32> to vector<1x128xf32>
    %148 = vector.broadcast %147 : vector<1x128xf32> to vector<32x128xf32>
    %149 = arith.addf %145, %148 : vector<32x128xf32>
    %cst_111 = arith.constant 0.000000e+00 : f32
    %150 = vector.shape_cast %10 : vector<32x1xi1> to vector<32x1xi1>
    %151 = vector.broadcast %150 : vector<32x1xi1> to vector<32x128xi1>
    %152 = vector.broadcast %cst_111 : f32 to vector<32x128xf32>
    %153 = arith.select %151, %149, %152 : vector<32x128xi1>, vector<32x128xf32>
    %c0_112 = arith.constant 0 : index
    %c0_113 = arith.constant 0 : index
    %c0_114 = arith.constant 0 : index
    %154 = vector.load %arg9[%c0_112, %c0_113, %c0_114] : memref<1x16x128xf32, #tpu.memory_space<vmem>>, vector<1x16x128xf32>
    %155 = vector.shape_cast %154 : vector<1x16x128xf32> to vector<16x128xf32>
    %156 = vector.extract_strided_slice %153 {offsets = [8, 0], sizes = [16, 128], strides = [1, 1]} : vector<32x128xf32> to vector<16x128xf32>
    %157 = arith.addf %155, %156 : vector<16x128xf32>
    %c0_115 = arith.constant 0 : index
    %c0_116 = arith.constant 0 : index
    %c0_117 = arith.constant 0 : index
    %158 = vector.load %arg9[%c0_115, %c0_116, %c0_117] : memref<1x16x128xf32, #tpu.memory_space<vmem>>, vector<1x16x128xf32>
    %159 = vector.shape_cast %158 : vector<1x16x128xf32> to vector<16x128xf32>
    %160 = vector.shape_cast %157 : vector<16x128xf32> to vector<1x16x128xf32>
    tpu.vector_store %arg9[%c0_115, %c0_116, %c0_117], %160 {strides = array<i32>} : memref<1x16x128xf32, #tpu.memory_space<vmem>>, vector<1x16x128xf32>,
    return
  }
  func.func @transform_0(%arg0: i32, %arg1: i32) -> (i32, i32, i32, i32) {
    %c0_i32 = arith.constant 0 : i32
    %c0_i32_0 = arith.constant 0 : i32
    %c0_i32_1 = arith.constant 0 : i32
    return %arg0, %arg1, %c0_i32, %c0_i32_0 : i32, i32, i32, i32
  }
  func.func @transform_1(%arg0: i32, %arg1: i32) -> (i32, i32) {
    %c0_i32 = arith.constant 0 : i32
    %c0_i32_0 = arith.constant 0 : i32
    %c0_i32_1 = arith.constant 0 : i32
    return %c0_i32, %c0_i32_0 : i32, i32
  }
  func.func @transform_2(%arg0: i32, %arg1: i32) -> (i32, i32) {
    %c0_i32 = arith.constant 0 : i32
    %c0_i32_0 = arith.constant 0 : i32
    %c0_i32_1 = arith.constant 0 : i32
    return %c0_i32, %c0_i32_0 : i32, i32
  }
  func.func @transform_3(%arg0: i32, %arg1: i32) -> (i32, i32, i32) {
    %c0_i32 = arith.constant 0 : i32
    %c0_i32_0 = arith.constant 0 : i32
    %c0_i32_1 = arith.constant 0 : i32
    %c0_i32_2 = arith.constant 0 : i32
    return %c0_i32, %c0_i32_0, %c0_i32_1 : i32, i32, i32
  }
  func.func @transform_4(%arg0: i32, %arg1: i32) -> (i32, i32, i32) {
    %c0_i32 = arith.constant 0 : i32
    %c0_i32_0 = arith.constant 0 : i32
    %c0_i32_1 = arith.constant 0 : i32
    %c0_i32_2 = arith.constant 0 : i32
    return %c0_i32, %c0_i32_0, %c0_i32_1 : i32, i32, i32
  }
  func.func @transform_5(%arg0: i32, %arg1: i32) -> (i32, i32, i32) {
    %c0_i32 = arith.constant 0 : i32
    %c0_i32_0 = arith.constant 0 : i32
    %c0_i32_1 = arith.constant 0 : i32
    %c0_i32_2 = arith.constant 0 : i32
    return %c0_i32, %c0_i32_0, %c0_i32_1 : i32, i32, i32
  }
  func.func @transform_6(%arg0: i32, %arg1: i32) -> (i32, i32, i32) {
    %c0_i32 = arith.constant 0 : i32
    %c0_i32_0 = arith.constant 0 : i32
    %c0_i32_1 = arith.constant 0 : i32
    %c0_i32_2 = arith.constant 0 : i32
    return %c0_i32, %c0_i32_0, %c0_i32_1 : i32, i32, i32
  }
  func.func @transform_7(%arg0: i32, %arg1: i32) -> (i32, i32, i32) {
    %c0_i32 = arith.constant 0 : i32
    %c0_i32_0 = arith.constant 0 : i32
    return %arg0, %arg1, %c0_i32 : i32, i32, i32
  }
}

</mosaic_0001>

<bundles_post_ra>
// kernel: wave_block_pallas.1
= control target key start
LH: loop header
LB: loop body
LE: loop exit
PB: predicated region body
PF: predicated region fallthrough
CT: control target
= control target key end

     0   :  { %s3665_s24 = smov 0   ;;  %s3667_s25 = smov 0   ;;  %s4423_s0 = inlined_call_operand.vmem [shape: bf16[2,2,32,4], index: 0, kind: input, shape index: {}]   ;;  %s4424_s1 = inlined_call_operand.vmem [shape: bf16[4,128], index: 1, kind: input, shape index: {}]   ;;  %s4425_s2 = inlined_call_operand.vmem [shape: f32[1,128], index: 2, kind: input, shape index: {}]   ;;  %s4426_s3 = inlined_call_operand.vmem [shape: bf16[3,384,256], index: 3, kind: input, shape index: {}]   ;;  %s4427_s4 = inlined_call_operand.vmem [shape: f32[3,1,256], index: 4, kind: input, shape index: {}]   ;;  %s4428_s5 = inlined_call_operand.vmem [shape: bf16[3,128,128], index: 5, kind: input, shape index: {}]   ;;  %s4429_s6 = inlined_call_operand.vmem [shape: f32[3,1,128], index: 6, kind: input, shape index: {}]   ;;  %s4430_s7 = inlined_call_operand.vmem [shape: f32[2,32,128], index: 7, kind: output, shape index: {}]  }
   0x1   :  { %s3669_s26 = smov 0   ;;  %s3671_s27 = smov 0  }
   0x2   :  { %s3673_s28 = smov 0  }
   0x3 LB: > { %s26_s29 = sadd.s32 1, %s3614_s26  ;;  %s29_s30 = sadd.s32 1, %s3618_s27  ;;  %s3622_s28 = sphi %s3673_s28, %s17_s28   ;;  %s3618_s27 = sphi %s3671_s27, %s4452_s27   ;;  %s3614_s26 = sphi %s3669_s26, %s4451_s26   ;;  %s3610_s25 = sphi %s3667_s25, %s4450_s25   ;;  %s3606_s24 = sphi %s3665_s24, %s4449_s24  }
   0x4   : > { %p27_p0 = scmp.ge.s32.totalorder %s26_s29, 2  ;;  %p2706_p1 = scmp.ge.s32.totalorder %s3622_s28, 1 }
   0x5   : > { %p257_p2 = scmp.lt.s32.totalorder %s3622_s28, 5 }
   0x6   : > { %s4454_s29 = smov (%p27_p0, %s26_s29), 0  ;;  %s4456_s30 = smov (!%p27_p0, %s29_s30), %s3618_s27 }
   0x7   : > { %p258_p3 = pnand %p2706_p1, %p257_p2  ;;  %p31_p4 = scmp.ge.s32.totalorder %s4456_s30, 2 }
   0x8   : > { %p297_p5 = scmp.lt.s32.totalorder (!%p258_p3), %s3610_s25, 1  ;;  %p299_p6 = scmp.lt.s32.totalorder (!%p258_p3), %s3606_s24, 1 }
   0x9   : > { %s4458_s30 = smov (%p31_p4, %s4456_s30), 0  ;;  %261 = sbr.rel (%p258_p3) target bundleno = 1654 (0x676), region = 48 }
   0xa   : > { %s2710_s15 = sshll.u32 (!%p258_p3), %s3606_s24, 1 }
   0xb   : > { %p309_p7 = scmp.lt.s32.totalorder (!%p258_p3), %s2710_s15, 3 }
   0xe   : > { %v348_v0 = vld [vmem:[%s4424_s1] sm:$0x3]  ;;  %vm373_vm0 = vcmask 1041408   ;;  %s4460_s25 = smov (!%p297_p5, %s3610_s25), 1  ;;  %v3248_v2 = vld [vmem:[%s4426_s3 + $0x74] ss:$8 sps:$4 sm:$0xff]   ;;  %v317_v53 = vlaneseq }
   0xf   : > { %3204 = vmatprep.subr.msk.bf16.mxu0 %vm373_vm0, %v348_v0  ;;  %v375_v1 = vsel %vm373_vm0, %v348_v0, 0  ;;  %v3250_v3 = vld [vmem:[%s4426_s3 + $0x70] ss:$8 sps:$4 sm:$0xff]   ;;  %s300_s14 = scalar_select %p299_p6, %s3606_s24, 1  ;;  %v3251_v4 = vld [vmem:[%s4426_s3 + $0x64] ss:$8 sps:$4 sm:$0xff]   ;;  %926 = vmatprep.subr.bf16.mxu1 %v3248_v2 }
  0x10   : > { %3139 = vmatpush3.bf16.msra.mxu0 %v375_v1  ;;  %s2708_s17 = sshll.u32 %s4460_s25, 3  ;;  %927 = vmatpush1.bf16.msra.mxu1 %v3250_v3  ;;  %v3253_v5 = vld [vmem:[%s4426_s3 + $0x60] ss:$8 sps:$4 sm:$0xff]   ;;  %v3254_v6 = vld [vmem:[%s4426_s3 + $0x54] ss:$8 sps:$4 sm:$0xff]   ;;  %vm366_vm1 = vcmask 31744  }
  0x11   : > { %s2707_s18 = sshll.u32 %s300_s14, 2  ;;  %928 = vmatprep.subr.bf16.mxu1 %v3251_v4  ;;  %v3256_v7 = vld [vmem:[%s4426_s3 + $0x50] ss:$8 sps:$4 sm:$0xff]   ;;  %v3257_v8 = vld [vmem:[%s4426_s3 + $0x44] ss:$8 sps:$4 sm:$0xff]   ;;  %v3624_v28 = vmov 0  }
  0x12   : > { %s303_s21 = sadd.s32 %s2708_s17, %s2707_s18  ;;  %v3259_v11 = vld [vmem:[%s4426_s3 + $0x40] ss:$8 sps:$4 sm:$0xff]   ;;  %v3260_v12 = vld [vmem:[%s4426_s3 + $0x34] ss:$8 sps:$4 sm:$0xff]   ;;  %v3262_v13 = vld [vmem:[%s4426_s3 + $0x30] ss:$8 sps:$4 sm:$0xff]  }
  0x13   : > { %s2709_s8 = sshll.u32 %s303_s21, 2  ;;  %v3263_v14 = vld [vmem:[%s4426_s3 + $0x24] ss:$8 sps:$4 sm:$0xff]   ;;  %v3265_v15 = vld [vmem:[%s4426_s3 + $0x20] ss:$8 sps:$4 sm:$0xff]   ;;  %v3857_v54 = vshrl.u32 %v317_v53, 7 }
  0x14   : > { %s305_s13 = scalar_lea.vmem %s4423_s0, %s2709_s8  ;;  %929 = vmatpush1.bf16.msra.mxu1 %v3253_v5  ;;  %v3266_v16 = vld [vmem:[%s4426_s3 + $0x14] ss:$8 sps:$4 sm:$0xff]   ;;  %v3268_v17 = vld [vmem:[%s4426_s3 + $0x10] ss:$8 sps:$4 sm:$0xff]   ;;  %v3269_v18 = vld [vmem:[%s4426_s3 + $0x4] ss:$8 sps:$4 sm:$0xff]  }
  0x15   : > { %v3246_v9 = vld [vmem:[%s305_s13] sm:$0xff]   ;;  %v3247_v10 = vld [vmem:[%s305_s13 + $0x8] sm:$0xff]   ;;  %930 = vmatprep.subr.bf16.mxu1 %v3254_v6  ;;  %v3272_v20 = vld [vmem:[%s4426_s3 + $0xf4] ss:$8 sps:$4 sm:$0xff]   ;;  %440 = vst [vmem:[#allocation2] sm:$0xf] %v3624_v28 }
  0x16   : > { %3140 = vmatprep.mubr.msk.bf16.mxu0 %vm366_vm1, %v3246_v9  ;;  %v3271_v19 = vld [vmem:[%s4426_s3] ss:$8 sps:$4 sm:$0xff]   ;;  %v3274_v21 = vld [vmem:[%s4426_s3 + $0xf0] ss:$8 sps:$4 sm:$0xff]   ;;  %v3277_v22 = vld [vmem:[%s4426_s3 + $0x174] ss:$8 sps:$4 sm:$0xff]  }
  0x17   : > { %3141 = vmatmul.mubr.msk.bf16.vlgmr.msra.gmra.mxu0 %vm366_vm1, %v3247_v10  ;;  %v3275_v23 = vld [vmem:[%s4426_s3 + $0x170] ss:$8 sps:$4 sm:$0xff]   ;;  %979 = vmatprep.subr.bf16.mxu0 %v3277_v22  ;;  %v3278_v24 = vld [vmem:[%s4426_s3 + $0xe4] ss:$8 sps:$4 sm:$0xff]   ;;  %v3280_v25 = vld [vmem:[%s4426_s3 + $0xe0] ss:$8 sps:$4 sm:$0xff]  }
  0x18   : > { %931 = vmatpush1.bf16.msra.mxu1 %v3256_v7  ;;  %980 = vmatpush1.bf16.msra.mxu0 %v3275_v23  ;;  %v3283_v26 = vld [vmem:[%s4426_s3 + $0x164] ss:$8 sps:$4 sm:$0xff]   ;;  %v3281_v27 = vld [vmem:[%s4426_s3 + $0x160] ss:$8 sps:$4 sm:$0xff]   ;;  %441 = vst [vmem:[#allocation2 + $0x14] sm:$0xf] %v3624_v28 }
  0x19   : > { %932 = vmatprep.subr.bf16.mxu1 %v3257_v8  ;;  %981 = vmatprep.subr.bf16.mxu0 %v3283_v26  ;;  %v3284_v29 = vld [vmem:[%s4426_s3 + $0xd4] ss:$8 sps:$4 sm:$0xff]   ;;  %v3286_v30 = vld [vmem:[%s4426_s3 + $0xd0] ss:$8 sps:$4 sm:$0xff]   ;;  %v3290_v33 = vld [vmem:[%s4426_s3 + $0xc4] ss:$8 sps:$4 sm:$0xff]  }
  0x1a   : > { %1011 = vmatprep.mubr.bf16.mxu0 %v3624_v28  ;;  %v3289_v31 = vld [vmem:[%s4426_s3 + $0x154] ss:$8 sps:$4 sm:$0xff]   ;;  %v3287_v32 = vld [vmem:[%s4426_s3 + $0x150] ss:$8 sps:$4 sm:$0xff]   ;;  %v3292_v34 = vld [vmem:[%s4426_s3 + $0xc0] ss:$8 sps:$4 sm:$0xff]  }
  0x1b   : > { %v3295_v35 = vld [vmem:[%s4426_s3 + $0x144] ss:$8 sps:$4 sm:$0xff]   ;;  %v3293_v36 = vld [vmem:[%s4426_s3 + $0x140] ss:$8 sps:$4 sm:$0xff]   ;;  %v3296_v37 = vld [vmem:[%s4426_s3 + $0xb4] ss:$8 sps:$4 sm:$0xff]  }
  0x1c   : > { %933 = vmatpush1.bf16.msra.mxu1 %v3259_v11  ;;  %982 = vmatpush1.bf16.msra.mxu0 %v3281_v27  ;;  %v3298_v38 = vld [vmem:[%s4426_s3 + $0xb0] ss:$8 sps:$4 sm:$0xff]   ;;  %v3301_v39 = vld [vmem:[%s4426_s3 + $0x134] ss:$8 sps:$4 sm:$0xff]   ;;  %v3302_v41 = vld [vmem:[%s4426_s3 + $0xa4] ss:$8 sps:$4 sm:$0xff]  }
  0x1d   : > { %934 = vmatprep.subr.bf16.mxu1 %v3260_v12  ;;  %983 = vmatprep.subr.bf16.mxu0 %v3289_v31  ;;  %v3299_v40 = vld [vmem:[%s4426_s3 + $0x130] ss:$8 sps:$4 sm:$0xff]   ;;  %v3304_v42 = vld [vmem:[%s4426_s3 + $0xa0] ss:$8 sps:$4 sm:$0xff]   ;;  %v3307_v43 = vld [vmem:[%s4426_s3 + $0x124] ss:$8 sps:$4 sm:$0xff]  }
  0x1e   : > { %v3305_v44 = vld [vmem:[%s4426_s3 + $0x120] ss:$8 sps:$4 sm:$0xff]   ;;  %v3308_v45 = vld [vmem:[%s4426_s3 + $0x94] ss:$8 sps:$4 sm:$0xff]   ;;  %v3310_v46 = vld [vmem:[%s4426_s3 + $0x90] ss:$8 sps:$4 sm:$0xff]  }
  0x1f   : > { %v3313_v47 = vld [vmem:[%s4426_s3 + $0x114] ss:$8 sps:$4 sm:$0xff]   ;;  %v3311_v48 = vld [vmem:[%s4426_s3 + $0x110] ss:$8 sps:$4 sm:$0xff]   ;;  %v3314_v49 = vld [vmem:[%s4426_s3 + $0x84] ss:$8 sps:$4 sm:$0xff]  }
  0x20   : > { %935 = vmatpush1.bf16.msra.mxu1 %v3262_v13  ;;  %984 = vmatpush1.bf16.msra.mxu0 %v3287_v32  ;;  %v3319_v50 = vld [vmem:[%s4426_s3 + $0x104] ss:$8 sps:$4 sm:$0xff]   ;;  %v3316_v51 = vld [vmem:[%s4426_s3 + $0x80] ss:$8 sps:$4 sm:$0xff]   ;;  %s2713_s18 = sshll.u32 %s3606_s24, 4  ;;  %v321_v55 = vadd.s32 24, %v3857_v54 }
  0x21   : > { %936 = vmatprep.subr.bf16.mxu1 %v3263_v14  ;;  %985 = vmatprep.subr.bf16.mxu0 %v3295_v35  ;;  %v3317_v52 = vld [vmem:[%s4426_s3 + $0x100] ss:$8 sps:$4 sm:$0xff]   ;;  %v320_v56 = vadd.s32 16, %v3857_v54  ;;  %v323_v57 = vstv %s2713_s18  ;;  %v319_v59 = vadd.s32 8, %v3857_v54  ;;  %vm467_vm14 = vsmask.f32 256 }
  0x22   : > { %v324_v58 = vadd.s32 %v323_v57, %v3857_v54  ;;  %v327_v60 = vadd.s32 %v323_v57, %v321_v55  ;;  %v2718_v4 = vld [vmem:[%s4425_s2] ss:$0 sm:$0xff]  ;;  %vm468_vm15 = vsmask.f32 4368  ;;  %vm531_vm1 = vsmask.f32 3328 }
  0x23   : > { %v326_v61 = vadd.s32 %v323_v57, %v320_v56  ;;  %v325_v63 = vadd.s32 %v323_v57, %v319_v59  ;;  %s4462_s15 = smov (!%p309_p7, %s2710_s15), 3  ;;  %s2711_s16 = sshll.u32 %s4460_s25, 2 }
  0x24   : > { %937 = vmatpush1.bf16.msra.mxu1 %v3265_v15  ;;  %986 = vmatpush1.bf16.msra.mxu0 %v3293_v36  ;;  %v2714_v62 = vadd.s32 4294967288, %v324_v58  ;;  %v2717_v0 = vadd.s32 4294967288, %v327_v60  ;;  %v3347_v60 = vld [vmem:[%s4426_s3 + $0x1c4] ss:$8 sps:$4 sm:$0xff]   ;;  %s312_s17 = sadd.s32 %s2711_s16, %s4462_s15 }
  0x25   : > { %938 = vmatprep.subr.bf16.mxu1 %v3266_v16  ;;  %987 = vmatprep.subr.bf16.mxu0 %v3301_v39  ;;  %v2716_v1 = vadd.s32 4294967288, %v326_v61  ;;  %v2715_v2 = vadd.s32 4294967288, %v325_v63  ;;  %s2712_s20 = sshll.u32 %s312_s17, 3 }
  0x26   : > { %vm332_vm2 = vcmp.ge.s32.totalorder %v2714_v62, 0  ;;  %vm336_vm3 = vcmp.lt.s32.totalorder %v2714_v62, 32  ;;  %vm335_vm4 = vcmp.ge.s32.totalorder %v2717_v0, 0  ;;  %vm339_vm5 = vcmp.lt.s32.totalorder %v2717_v0, 32  ;;  %s314_s23 = scalar_lea.vmem %s4430_s7, %s2712_s20 }
  0x27   : > { %vm334_vm6 = vcmp.ge.s32.totalorder %v2716_v1, 0  ;;  %vm338_vm7 = vcmp.lt.s32.totalorder %v2716_v1, 32  ;;  %vm3867_vm8 = vmand %vm332_vm2, %vm336_vm3  ;;  %vm333_vm9 = vcmp.ge.s32.totalorder %v2715_v2, 0  ;;  %vm337_vm10 = vcmp.lt.s32.totalorder %v2715_v2, 32 }
  0x28   : > { %939 = vmatpush1.bf16.msra.mxu1 %v3268_v17  ;;  %988 = vmatpush1.bf16.msra.mxu0 %v3299_v40  ;;  %vm3871_vm11 = vmand %vm335_vm4, %vm339_vm5  ;;  %vm532_vm2 = vsmask.f32 7440  ;;  %vm1226_vm5 = vcmask 1040384  }
  0x29   : > { %940 = vmatprep.subr.bf16.mxu1 %v3269_v18  ;;  %989 = vmatprep.subr.bf16.mxu0 %v3307_v43  ;;  %vm3875_vm12 = vmand %vm334_vm6, %vm338_vm7  ;;  %vm1227_vm6 = vcmask 1044484  }
  0x2a   : > { %vm3881_vm13 = vmand %vm333_vm9, %vm337_vm10  ;;  %vm1268_vm9 = vcmask 1042432   ;;  %vm1269_vm10 = vcmask 1046532  }
  0x2b   : > { %vm3899_vm3 = vmor %vm467_vm14, %vm468_vm15 }
  0x2c   : > { %941 = vmatpush1.bf16.msra.mxu1 %v3271_v19  ;;  %990 = vmatpush1.bf16.msra.mxu0 %v3305_v44  ;;  %v462_v19 = vld [vmem:[#allocation2] sm:$0x8]  ;;  %vm3907_vm4 = vmor %vm531_vm1, %vm532_vm2 }
  0x2d   : > { %942 = vmatprep.subr.bf16.mxu1 %v3272_v20  ;;  %991 = vmatprep.subr.bf16.mxu0 %v3313_v47  ;;  %vm4123_vm7 = vmor %vm1226_vm5, %vm1227_vm6 }
  0x2e   : > { %vm4131_vm14 = vmor %vm1268_vm9, %vm1269_vm10 }
  0x30   : > { %943 = vmatpush2.bf16.msra.mxu1 %v3274_v21  ;;  %992 = vmatpush1.bf16.msra.mxu0 %v3311_v48 }
  0x31   : > { %944 = vmatprep.subr.bf16.mxu1 %v3278_v24  ;;  %993 = vmatprep.subr.bf16.mxu0 %v3319_v50  ;;  %v471_v24 = vshrl.u32 %v462_v19, 16 }
  0x33   : > { %v2727_v26 = vrot.slane %v471_v24, 11 }
  0x34   : > { %945 = vmatpush2.bf16.msra.mxu1 %v3280_v25  ;;  %994 = vmatpush1.bf16.msra.mxu0 %v3317_v52  ;;  %v530_v25 = vld [vmem:[#allocation2 + $0x14] sm:$0x1] }
  0x35   : > { %946 = vmatprep.subr.bf16.mxu1 %v3284_v29  ;;  %v574_v27 = vshll.u32 %v530_v25, 16 }
  0x37   : > { %v576_v47 = vrot.slane %v574_v27, 5 }
  0x38   : > { %947 = vmatpush2.bf16.msra.mxu1 %v3286_v30 }
  0x39   : > { %948 = vmatprep.subr.bf16.mxu1 %v3290_v33 }
  0x3c   : > { %949 = vmatpush2.bf16.msra.mxu1 %v3292_v34 }
  0x3d   : > { %950 = vmatprep.subr.bf16.mxu1 %v3296_v37 }
  0x40   : > { %951 = vmatpush2.bf16.msra.mxu1 %v3298_v38 }
  0x41   : > { %952 = vmatprep.subr.bf16.mxu1 %v3302_v41 }
  0x44   : > { %953 = vmatpush2.bf16.msra.mxu1 %v3304_v42 }
  0x45   : > { %954 = vmatprep.subr.bf16.mxu1 %v3308_v45 }
  0x48   : > { %955 = vmatpush2.bf16.msra.mxu1 %v3310_v46 }
  0x49   : > { %956 = vmatprep.subr.bf16.mxu1 %v3314_v49 }
  0x4c   : > { %957 = vmatpush2.bf16.msra.mxu1 %v3316_v51 }
  0xd7   : > { %v3142_v3 = vpop.f32.mrf.mxu0 }
  0xd8   : > { %v420_v11 = vadd.f32 %v3142_v3, %v2718_v4 }
  0xd9   : > { %v411_v6 = vpop.f32.mrf.mxu0 }
  0xda   : > { %v412_v7 = vadd.f32 %v2718_v4, %v411_v6  ;;  %v3889_v21 = vsel %vm3875_vm12, %v420_v11, 0.0 }
  0xdb   : > { %v3143_v9 = vpop.f32.mrf.mxu0 }
  0xdc   : > { %v434_v12 = vsel %vm3867_vm8, %v412_v7, 0.0  ;;  %v423_v13 = vadd.f32 %v3143_v9, %v2718_v4 }
  0xdd   : > { %v3075_v14 = vpack.c.bf16 %v434_v12, %v434_v12  ;;  %v414_v16 = vpop.f32.mrf.mxu0 }
  0xde   : > { %v437_v17 = vsel %vm3871_vm11, %v423_v13, 0.0  ;;  %v415_v18 = vadd.f32 %v2718_v4, %v414_v16 }
  0xdf   : > { %458 = vst [vmem:[#allocation2 + $0x4] sm:$0xf] %v3075_v14  ;;  %v3078_v20 = vpack.c.bf16 %v437_v17, %v437_v17 }
  0xe0   : > { %v3893_v22 = vsel %vm3881_vm13, %v415_v18, 0.0 }
  0xe1   : > { %461 = vst [vmem:[#allocation2 + $0x10] sm:$0xf] %v3078_v20  ;;  %v3090_v23 = vpack.c.bf16 %v3889_v21, %v3893_v22 }
  0xe3   : > { %3102 = vst [vmem:[#allocation2 + $0x8] sm:$0xff] %v3090_v23  }
  0xe6   : > { %v463_v29 = vld [vmem:[#allocation2 + $0x4] sm:$0xf] }
  0xe7   : > { %v518_v30 = vld [vmem:[#allocation2 + $0x4] sm:$0xf]  ;;  %v476_v32 = vshrl.u32 %v463_v29, 16  ;;  %v479_v33 = vshll.u32 %v463_v29, 16 }
  0xe8   : > { %v526_v31 = vld [vmem:[#allocation2 + $0x4] sm:$0xf]  ;;  %522 = vst [vmem:[#allocation3 + $0x4] sm:$0xf] %v518_v30  ;;  %v466_v36 = vld [vmem:[#allocation2 + $0x10] sm:$0xf] }
  0xe9   : > { %v535_v34 = vshrl.u32 %v526_v31, 16  ;;  %v538_v35 = vshll.u32 %v526_v31, 16  ;;  %v521_v37 = vld [vmem:[#allocation2 + $0x10] sm:$0xf]  ;;  %v478_v39 = vrot.slane %v476_v32, 7  ;;  %v503_v42 = vshrl.u32 %v466_v36, 16 }
  0xea   : > { %v529_v38 = vld [vmem:[#allocation2 + $0x10] sm:$0xf]  ;;  %525 = vst [vmem:[#allocation3 + $0x28] sm:$0xf] %v521_v37  ;;  %v506_v43 = vshll.u32 %v466_v36, 16 }
  0xeb   : > { %v537_v40 = vrot.slane %v535_v34, 4  ;;  %v540_v41 = vrot.slane %v538_v35, 5  ;;  %v564_v44 = vshll.u32 %v529_v38, 16  ;;  %v568_v45 = vshrl.u32 %v529_v38, 16  ;;  %v464_v46 = vld [vmem:[#allocation2 + $0x8] sm:$0xf] }
  0xec   : > { %v481_v48 = vor.u32 %v479_v33, %v478_v39  ;;  %v483_v49 = vrot.slane %v478_v39, 4  ;;  %v505_v51 = vrot.slane %v503_v42, 7  ;;  %v465_v52 = vld [vmem:[#allocation2 + $0xc] sm:$0xf]  ;;  %v519_v53 = vld [vmem:[#allocation2 + $0x8] sm:$0xf] }
  0xed   : > { %v541_v50 = vor.u32 %v540_v41, %v537_v40  ;;  %v566_v55 = vrot.slane %v564_v44, 5  ;;  %v570_v56 = vrot.slane %v568_v45, 4  ;;  %v485_v57 = vshrl.u32 %v464_v46, 16  ;;  %v520_v59 = vld [vmem:[#allocation2 + $0xc] sm:$0xf]  ;;  %v3328_v45 = vld [vmem:[%s4428_s5 + $0x38] sm:$0xff]  }
  0xee   : > { %v488_v58 = vshll.u32 %v464_v46, 16  ;;  %523 = vst [vmem:[#allocation3 + $0x10] sm:$0xf] %v519_v53  ;;  %v508_v62 = vor.u32 %v506_v43, %v505_v51  ;;  %v494_v63 = vshrl.u32 %v465_v52, 16  ;;  %v497_v0 = vshll.u32 %v465_v52, 16  ;;  %3144 = vmatprep.subr.bf16.mxu0 %v3328_v45  ;;  %v3329_v46 = vld [vmem:[%s4428_s5 + $0x30] sm:$0xff]  }
  0xef   : > { %v542_v61 = vrot.slane %v541_v50, 4  ;;  %524 = vst [vmem:[#allocation3 + $0x1c] sm:$0xf] %v520_v59  ;;  %v527_v1 = vld [vmem:[#allocation2 + $0x8] sm:$0xf]  ;;  %v571_v2 = vor.u32 %v570_v56, %v566_v55  ;;  %v487_v3 = vrot.slane %v485_v57, 7  ;;  %v482_v13 = vsel %vm3899_vm3, %v2727_v26, %v481_v48 }
  0xf0   : > { %v528_v4 = vld [vmem:[#allocation2 + $0xc] sm:$0xf]  ;;  %v544_v6 = vshll.u32 %v527_v1, 16  ;;  %v548_v7 = vshrl.u32 %v527_v1, 16  ;;  %v496_v9 = vrot.slane %v494_v63, 7  ;;  %v3331_v48 = vld [vmem:[%s4428_s5 + $0x20] sm:$0xff]  }
  0xf1   : > { %v554_v11 = vshll.u32 %v528_v4, 16  ;;  %v558_v12 = vshrl.u32 %v528_v4, 16  ;;  %v572_v16 = vrot.slane %v571_v2, 4  ;;  %v490_v17 = vor.u32 %v488_v58, %v487_v3  ;;  %514 = vst [vmem:[#allocation3] sm:$0xf] %v482_v13  ;;  %v3333_v50 = vld [vmem:[%s4428_s5 + $0x10] sm:$0xff]  }
  0xf2   : > { %v492_v18 = vrot.slane %v487_v3, 4  ;;  %v546_v19 = vrot.slane %v544_v6, 5  ;;  %v499_v20 = vor.u32 %v497_v0, %v496_v9  ;;  %v501_v23 = vrot.slane %v496_v9, 4  ;;  %v3334_v51 = vld [vmem:[%s4428_s5 + $0x8] sm:$0xff]   ;;  %v3335_v52 = vld [vmem:[%s4428_s5] sm:$0xff]  }
  0xf3   : > { %v550_v24 = vrot.slane %v548_v7, 4  ;;  %v556_v25 = vrot.slane %v554_v11, 5  ;;  %v560_v27 = vrot.slane %v558_v12, 4  ;;  %v491_v29 = vsel %vm3899_vm3, %v483_v49, %v490_v17  ;;  %v3332_v49 = vld [vmem:[%s4428_s5 + $0x18] sm:$0xff]   ;;  %v3341_v56 = vld [vmem:[%s4426_s3 + $0x1e4] ss:$8 sps:$4 sm:$0xff]  }
  0xf4   : > { %v547_v26 = vsel %vm3907_vm4, %v542_v61, %v546_v19  ;;  %v577_v30 = vsel %vm3907_vm4, %v572_v16, %v576_v47  ;;  %515 = vst [vmem:[#allocation3 + $0xc] sm:$0xf] %v491_v29  ;;  %v500_v32 = vsel %vm3899_vm3, %v492_v18, %v499_v20  ;;  %v509_v33 = vsel %vm3899_vm3, %v501_v23, %v508_v62  ;;  %v3330_v47 = vld [vmem:[%s4428_s5 + $0x28] sm:$0xff]   ;;  %v3336_v53 = vld [vmem:[%s4426_s3 + $0x1f0] ss:$8 sps:$4 sm:$0xff]  }
  0xf5   : > { %v551_v31 = vor.u32 %v550_v24, %v546_v19  ;;  %582 = vst [vmem:[#allocation3 + $0x8] sm:$0xf] %v547_v26  ;;  %585 = vst [vmem:[#allocation3 + $0x2c] sm:$0xf] %v577_v30  ;;  %v561_v34 = vor.u32 %v560_v27, %v556_v25  ;;  %v3320_v39 = vld [vmem:[#allocation3 + $0x4] ss:$12 sps:$4 sm:$0xff]  }
  0xf6   : > { %516 = vst [vmem:[#allocation3 + $0x18] sm:$0xf] %v500_v32  ;;  %517 = vst [vmem:[#allocation3 + $0x24] sm:$0xf] %v509_v33  ;;  %958 = vmatprep.mubr.bf16.mxu1 %v3320_v39  ;;  %v3323_v41 = vld [vmem:[#allocation3 + $0x1c] ss:$12 sps:$4 sm:$0xff]  }
  0xf7   : > { %v552_v35 = vrot.slane %v551_v31, 4  ;;  %v562_v36 = vrot.slane %v561_v34, 4  ;;  %v3339_v57 = vld [vmem:[%s4426_s3 + $0x1e0] ss:$8 sps:$4 sm:$0xff]   ;;  %v3344_v58 = vld [vmem:[%s4426_s3 + $0x1d4] ss:$8 sps:$4 sm:$0xff]  }
  0xf8   : > { %v3342_v59 = vld [vmem:[%s4426_s3 + $0x1d0] ss:$8 sps:$4 sm:$0xff]   ;;  %v3345_v61 = vld [vmem:[%s4426_s3 + $0x1c0] ss:$8 sps:$4 sm:$0xff]   ;;  %v3350_v62 = vld [vmem:[%s4426_s3 + $0x1b4] ss:$8 sps:$4 sm:$0xff]  }
  0xf9   : > { %v557_v37 = vsel %vm3907_vm4, %v552_v35, %v556_v25  ;;  %v567_v38 = vsel %vm3907_vm4, %v562_v36, %v566_v55  ;;  %v3338_v55 = vld [vmem:[%s4426_s3 + $0x1f4] ss:$8 sps:$4 sm:$0xff]   ;;  %v3348_v63 = vld [vmem:[%s4426_s3 + $0x1b0] ss:$8 sps:$4 sm:$0xff]   ;;  %v3353_v0 = vld [vmem:[%s4426_s3 + $0x1a4] ss:$8 sps:$4 sm:$0xff]  }
  0xfa   : > { %583 = vst [vmem:[#allocation3 + $0x14] sm:$0xf] %v557_v37  ;;  %584 = vst [vmem:[#allocation3 + $0x20] sm:$0xf] %v567_v38  ;;  %1634 = vmatprep.subr.bf16.mxu1 %v3338_v55  ;;  %v3351_v1 = vld [vmem:[%s4426_s3 + $0x1a0] ss:$8 sps:$4 sm:$0xff]  }
  0xfb   : > { %v3322_v40 = vld [vmem:[#allocation3] ss:$12 sps:$4 sm:$0xff]   ;;  %v3356_v2 = vld [vmem:[%s4426_s3 + $0x194] ss:$8 sps:$4 sm:$0xff]   ;;  %v3357_v6 = vld [vmem:[%s4426_s3 + $0x180] ss:$8 sps:$4 sm:$0xff]  }
  0xfc   : > { %959 = vmatmul.mubr.bf16.vlgmr.msra.gmra.mxu1 %v3322_v40  ;;  %v3354_v3 = vld [vmem:[%s4426_s3 + $0x190] ss:$8 sps:$4 sm:$0xff]   ;;  %v3359_v4 = vld [vmem:[%s4426_s3 + $0x184] ss:$8 sps:$4 sm:$0xff]   ;;  %v3999_v7 = vsub.s32 1, %v3857_v54  ;;  %v4006_v32 = vsub.s32 0, %v3857_v54 }
  0xfd   : > { %968 = vmatprep.mubr.bf16.mxu1 %v3323_v41  ;;  %v3326_v43 = vld [vmem:[#allocation3 + $0x18] ss:$12 sps:$4 sm:$0xff]   ;;  %1635 = vmatpush1.bf16.msra.mxu1 %v3336_v53  ;;  %v642_v9 = vld [vmem:[%s4427_s4] sm:$0x3] }
  0xfe   : > { %1636 = vmatprep.subr.bf16.mxu1 %v3341_v56  ;;  %v651_v11 = vrot.slane %v642_v9, %v3999_v7  ;;  %v647_v40 = vrot.slane %v642_v9, %v4006_v32 }
 0x101   : > { %v3325_v42 = vld [vmem:[#allocation3 + $0x8] ss:$12 sps:$4 sm:$0xff]   ;;  %v3327_v44 = vld [vmem:[#allocation3 + $0x20] ss:$12 sps:$4 sm:$0xff]   ;;  %1637 = vmatpush1.bf16.msra.mxu1 %v3339_v57 }
 0x102   : > { %1012 = vmatmul.mubr.bf16.vlgmr.msra.gmra.mxu0 %v3325_v42  ;;  %1638 = vmatprep.subr.bf16.mxu1 %v3344_v58 }
 0x103   : > { %1021 = vmatprep.mubr.bf16.mxu0 %v3624_v28  ;;  %3145 = vmatpush3.bf16.msra.mxu0 %v3328_v45 }
 0x104   : > { %969 = vmatmul.mubr.bf16.gmra.mxu1 %v3326_v43  ;;  %3146 = vmatprep.subr.bf16.mxu0 %v3329_v46 }
 0x105   : > { %1639 = vmatpush1.bf16.msra.mxu1 %v3342_v59 }
 0x106   : > { %1640 = vmatprep.subr.bf16.mxu1 %v3347_v60 }
 0x107   : > { %3147 = vmatpush3.bf16.msra.mxu0 %v3329_v46 }
 0x108   : > { %3148 = vmatprep.subr.bf16.mxu0 %v3330_v47 }
 0x109   : > { %1641 = vmatpush1.bf16.msra.mxu1 %v3345_v61 }
 0x10a   : > { %1022 = vmatmul.mubr.bf16.gmra.mxu0 %v3327_v44  ;;  %1642 = vmatprep.subr.bf16.mxu1 %v3350_v62 }
 0x10b   : > { %3149 = vmatpush3.bf16.msra.mxu0 %v3330_v47 }
 0x10c   : > { %3150 = vmatprep.subr.bf16.mxu0 %v3331_v48 }
 0x10d   : > { %1643 = vmatpush1.bf16.msra.mxu1 %v3348_v63 }
 0x10e   : > { %1644 = vmatprep.subr.bf16.mxu1 %v3353_v0 }
 0x10f   : > { %3151 = vmatpush3.bf16.msra.mxu0 %v3331_v48 }
 0x110   : > { %3152 = vmatprep.subr.bf16.mxu0 %v3332_v49 }
 0x111   : > { %1645 = vmatpush1.bf16.msra.mxu1 %v3351_v1 }
 0x112   : > { %1646 = vmatprep.subr.bf16.mxu1 %v3356_v2 }
 0x113   : > { %3153 = vmatpush3.bf16.msra.mxu0 %v3332_v49 }
 0x114   : > { %3154 = vmatprep.subr.bf16.mxu0 %v3333_v50 }
 0x115   : > { %1647 = vmatpush1.bf16.msra.mxu1 %v3354_v3 }
 0x116   : > { %1648 = vmatprep.subr.bf16.mxu1 %v3359_v4 }
 0x117   : > { %3155 = vmatpush3.bf16.msra.mxu0 %v3333_v50 }
 0x118   : > { %3156 = vmatprep.subr.bf16.mxu0 %v3334_v51 }
 0x119   : > { %1649 = vmatpush1.bf16.msra.mxu1 %v3357_v6 }
 0x11b   : > { %3157 = vmatpush3.bf16.msra.mxu0 %v3334_v51 }
 0x11c   : > { %3158 = vmatprep.subr.bf16.mxu0 %v3335_v52 }
 0x11f   : > { %3159 = vmatpush3.bf16.msra.mxu0 %v3335_v52 }
 0x1bc   : > { %v960_v12 = vpop.f32.mrf.mxu1 }
 0x1bd   : > { %v961_v45 = vadd.f32 %v960_v12, %v647_v40 }
 0x1be   : > { %v962_v13 = vpop.f32.mrf.mxu1 }
 0x1bf   : > { %v963_v14 = vadd.f32 %v962_v13, %v651_v11 }
 0x1c0   : > { %v964_v17 = vpop.f32.mrf.mxu1 }
 0x1c1   : > { %v965_v47 = vadd.f32 %v964_v17, %v647_v40  ;;  %v3362_v17 = vld [vmem:[%s4426_s3 + $0x274] ss:$8 sps:$4 sm:$0xff]  }
 0x1c2   : > { %v1013_v16 = vpop.f32.mrf.mxu0  ;;  %v966_v19 = vpop.f32.mrf.mxu1  ;;  %1650 = vmatprep.subr.bf16.mxu1 %v3362_v17 }
 0x1c3   : > { %v967_v23 = vadd.f32 %v966_v19, %v651_v11  ;;  %v1014_v48 = vadd.f32 %v1013_v16, %v961_v45  ;;  %v3365_v19 = vld [vmem:[%s4426_s3 + $0x2f4] ss:$8 sps:$4 sm:$0xff]  }
 0x1c4   : > { %v1015_v18 = vpop.f32.mrf.mxu0  ;;  %v970_v25 = vpop.f32.mrf.mxu1  ;;  %1687 = vmatprep.subr.bf16.mxu0 %v3365_v19  ;;  %v3398_v45 = vld [vmem:[%s4426_s3 + $0x214] ss:$8 sps:$4 sm:$0xff]  }
 0x1c5   : > { %v1016_v20 = vadd.f32 %v1015_v18, %v963_v14  ;;  %v971_v52 = vadd.f32 %v970_v25, %v647_v40  ;;  %v3360_v18 = vld [vmem:[%s4426_s3 + $0x270] ss:$8 sps:$4 sm:$0xff]   ;;  %v3371_v25 = vld [vmem:[%s4426_s3 + $0x2e4] ss:$8 sps:$4 sm:$0xff]  }
 0x1c6   : > { %v1017_v24 = vpop.f32.mrf.mxu0  ;;  %v972_v26 = vpop.f32.mrf.mxu1  ;;  %1651 = vmatpush2.bf16.msra.mxu1 %v3360_v18 }
 0x1c7   : > { %v2782_v27 = vmul.f32 -1.442695, %v1016_v20  ;;  %v973_v31 = vadd.f32 %v972_v26, %v651_v11  ;;  %v1018_v50 = vadd.f32 %v1017_v24, %v965_v47  ;;  %v3363_v20 = vld [vmem:[%s4426_s3 + $0x2f0] ss:$8 sps:$4 sm:$0xff]   ;;  %v3366_v24 = vld [vmem:[%s4426_s3 + $0x260] ss:$8 sps:$4 sm:$0xff]  }
 0x1c8   : > { %v1019_v29 = vpop.f32.mrf.mxu0  ;;  %v974_v34 = vpop.f32.mrf.mxu1  ;;  %v3372_v26 = vld [vmem:[%s4426_s3 + $0x250] ss:$8 sps:$4 sm:$0xff]  }
 0x1c9   : > { %3512 = vpow2.f32 %v2782_v27  ;;  %v1020_v30 = vadd.f32 %v1019_v29, %v967_v23  ;;  %v975_v55 = vadd.f32 %v974_v34, %v647_v40  ;;  %v3368_v23 = vld [vmem:[%s4426_s3 + $0x264] ss:$8 sps:$4 sm:$0xff]   ;;  %v3369_v27 = vld [vmem:[%s4426_s3 + $0x2e0] ss:$8 sps:$4 sm:$0xff]   ;;  %v3374_v29 = vld [vmem:[%s4426_s3 + $0x254] ss:$8 sps:$4 sm:$0xff]  }
 0x1ca   : > { %v1023_v33 = vpop.f32.mrf.mxu0  ;;  %v976_v37 = vpop.f32.mrf.mxu1  ;;  %1652 = vmatprep.subr.bf16.mxu1 %v3368_v23  ;;  %v3378_v34 = vld [vmem:[%s4426_s3 + $0x240] ss:$8 sps:$4 sm:$0xff]   ;;  %v3389_v40 = vld [vmem:[%s4426_s3 + $0x2b4] ss:$8 sps:$4 sm:$0xff]   ;;  %v3396_v47 = vld [vmem:[%s4426_s3 + $0x210] ss:$8 sps:$4 sm:$0xff]  }
 0x1cb   : > { %v2783_v35 = vmul.f32 -1.442695, %v1020_v30  ;;  %v977_v39 = vadd.f32 %v976_v37, %v651_v11  ;;  %v1024_v57 = vadd.f32 %v1023_v33, %v971_v52  ;;  %1653 = vmatpush2.bf16.msra.mxu1 %v3366_v24  ;;  %v3377_v30 = vld [vmem:[%s4426_s3 + $0x2d4] ss:$8 sps:$4 sm:$0xff]   ;;  %v3380_v33 = vld [vmem:[%s4426_s3 + $0x244] ss:$8 sps:$4 sm:$0xff]  }
 0x1cc   : > { %v1025_v36 = vpop.f32.mrf.mxu0  ;;  %1654 = vmatprep.subr.bf16.mxu1 %v3374_v29  ;;  %v3384_v37 = vld [vmem:[%s4426_s3 + $0x230] ss:$8 sps:$4 sm:$0xff]  }
 0x1cd   : > { %3514 = vpow2.f32 %v2783_v35  ;;  %v1026_v38 = vadd.f32 %v1025_v36, %v973_v31  ;;  %v3375_v31 = vld [vmem:[%s4426_s3 + $0x2d0] ss:$8 sps:$4 sm:$0xff]   ;;  %v3383_v35 = vld [vmem:[%s4426_s3 + $0x2c4] ss:$8 sps:$4 sm:$0xff]   ;;  %v3381_v36 = vld [vmem:[%s4426_s3 + $0x2c0] ss:$8 sps:$4 sm:$0xff]  }
 0x1ce   : > { %v1027_v41 = vpop.f32.mrf.mxu0 }
 0x1cf   : > { %v2784_v42 = vmul.f32 -1.442695, %v1026_v38  ;;  %v1028_v59 = vadd.f32 %v1027_v41, %v975_v55  ;;  %1655 = vmatpush2.bf16.msra.mxu1 %v3372_v26  ;;  %v3386_v38 = vld [vmem:[%s4426_s3 + $0x234] ss:$8 sps:$4 sm:$0xff]   ;;  %v3392_v41 = vld [vmem:[%s4426_s3 + $0x224] ss:$8 sps:$4 sm:$0xff]  }
 0x1d0   : > { %v1029_v43 = vpop.f32.mrf.mxu0  ;;  %1656 = vmatprep.subr.bf16.mxu1 %v3380_v33 }
 0x1d1   : > { %3516 = vpow2.f32 %v2784_v42  ;;  %v1030_v44 = vadd.f32 %v1029_v43, %v977_v39  ;;  %v3387_v39 = vld [vmem:[%s4426_s3 + $0x2b0] ss:$8 sps:$4 sm:$0xff]   ;;  %v3395_v42 = vld [vmem:[%s4426_s3 + $0x2a4] ss:$8 sps:$4 sm:$0xff]   ;;  %v3390_v43 = vld [vmem:[%s4426_s3 + $0x220] ss:$8 sps:$4 sm:$0xff]  }
 0x1d3   : > { %v2785_v46 = vmul.f32 -1.442695, %v1030_v44  ;;  %1657 = vmatpush2.bf16.msra.mxu1 %v3378_v34  ;;  %v3393_v44 = vld [vmem:[%s4426_s3 + $0x2a0] ss:$8 sps:$4 sm:$0xff]  }
 0x1d4   : > { %1658 = vmatprep.subr.bf16.mxu1 %v3386_v38 }
 0x1d5   : > { %3518 = vpow2.f32 %v2785_v46  ;;  %v3401_v46 = vld [vmem:[%s4426_s3 + $0x294] ss:$8 sps:$4 sm:$0xff]  }
 0x1d6   : > { %v3513_v54 = vpop.eup %3512  ;;  %3520 = vtanh.f32 %v1014_v48  ;;  %v3404_v48 = vld [vmem:[%s4426_s3 + $0x204] ss:$8 sps:$4 sm:$0xff]  }
 0x1d7   : > { %v1048_v49 = vadd.f32 1.0, %v3513_v54  ;;  %1659 = vmatpush2.bf16.msra.mxu1 %v3384_v37  ;;  %v3399_v54 = vld [vmem:[%s4426_s3 + $0x290] ss:$8 sps:$4 sm:$0xff]  }
 0x1d8   : > { %1660 = vmatprep.subr.bf16.mxu1 %v3392_v41 }
 0x1d9   : > { %3522 = vrcp.f32 %v1048_v49  ;;  %v3407_v49 = vld [vmem:[%s4426_s3 + $0x284] ss:$8 sps:$4 sm:$0xff]  }
 0x1da   : > { %v3515_v51 = vpop.eup %3514  ;;  %3524 = vtanh.f32 %v1018_v50  ;;  %v3402_v50 = vld [vmem:[%s4426_s3 + $0x200] ss:$8 sps:$4 sm:$0xff]  }
 0x1db   : > { %v1049_v53 = vadd.f32 1.0, %v3515_v51  ;;  %1661 = vmatpush2.bf16.msra.mxu1 %v3390_v43  ;;  %v3405_v51 = vld [vmem:[%s4426_s3 + $0x280] ss:$8 sps:$4 sm:$0xff]  }
 0x1dc   : > { %1662 = vmatprep.subr.bf16.mxu1 %v3398_v45 }
 0x1dd   : > { %3526 = vrcp.f32 %v1049_v53  ;;  %v2786_v53 = vld [vmem:[%s4429_s6] ss:$0 sm:$0xff] }
 0x1de   : > { %v3517_v56 = vpop.eup %3516  ;;  %3528 = vtanh.f32 %v1024_v57 }
 0x1df   : > { %v1050_v58 = vadd.f32 1.0, %v3517_v56  ;;  %1663 = vmatpush2.bf16.msra.mxu1 %v3396_v47 }
 0x1e0   : > { %1664 = vmatprep.subr.bf16.mxu1 %v3404_v48 }
 0x1e1   : > { %3530 = vrcp.f32 %v1050_v58 }
 0x1e2   : > { %v3519_v60 = vpop.eup %3518  ;;  %3532 = vtanh.f32 %v1028_v59 }
 0x1e3   : > { %v1051_v61 = vadd.f32 1.0, %v3519_v60  ;;  %v3521_v62 = vpop.eup %3520  ;;  %1665 = vmatpush2.bf16.msra.mxu1 %v3402_v50 }
 0x1e5   : > { %3534 = vrcp.f32 %v1051_v61 }
 0x1e6   : > { %v3523_v63 = vpop.eup %3522 }
 0x1e7   : > { %v3525_v0 = vpop.eup %3524  ;;  %v1060_v2 = vmul.f32 %v3523_v63, %v3521_v62 }
 0x1ea   : > { %v3527_v1 = vpop.eup %3526 }
 0x1eb   : > { %v1061_v3 = vmul.f32 %v3527_v1, %v3525_v0  ;;  %v3529_v6 = vpop.eup %3528 }
 0x1ed   : > { %v1064_v4 = vpack.c.bf16 %v1061_v3, %v1060_v2 }
 0x1ee   : > { %v3531_v9 = vpop.eup %3530 }
 0x1ef   : > { %3160 = vmatprep.mubr.bf16.mxu0 %v1064_v4  ;;  %v3533_v11 = vpop.eup %3532  ;;  %v1062_v13 = vmul.f32 %v3531_v9, %v3529_v6  ;;  %v1216_v6 = vld [vmem:[#allocation2] sm:$0x8] }
 0x1f0   : > { %v2799_v9 = vrot.slane %v1216_v6, 11  ;;  %v3423_v6 = vld [vmem:[%s4428_s5 + $0x40] sm:$0xff]  }
 0x1f2   : > { %v3535_v12 = vpop.eup %3534 }
 0x1f3   : > { %v1063_v14 = vmul.f32 %v3535_v12, %v3533_v11  ;;  %v1262_v11 = vld [vmem:[#allocation2 + $0x14] sm:$0x1] }
 0x1f4   : > { %v1282_v19 = vrot.slane %v1262_v11, 5  ;;  %v3426_v11 = vld [vmem:[%s4426_s3 + $0x374] ss:$8 sps:$4 sm:$0xff]  }
 0x1f5   : > { %v1065_v16 = vpack.c.bf16 %v1063_v14, %v1062_v13  ;;  %2341 = vmatprep.subr.bf16.mxu1 %v3426_v11  ;;  %v3427_v13 = vld [vmem:[%s4426_s3 + $0x360] ss:$8 sps:$4 sm:$0xff]  }
 0x1f7   : > { %3161 = vmatmul.mubr.bf16.vlgmr.msra.gmra.mxu0 %v1065_v16 }
 0x1f8   : > { %1719 = vmatprep.mubr.bf16.mxu0 %v3624_v28  ;;  %1688 = vmatpush1.bf16.msra.mxu0 %v3363_v20 }
 0x1f9   : > { %1689 = vmatprep.subr.bf16.mxu0 %v3371_v25 }
 0x1fc   : > { %1690 = vmatpush1.bf16.msra.mxu0 %v3369_v27 }
 0x1fd   : > { %1691 = vmatprep.subr.bf16.mxu0 %v3377_v30 }
 0x200   : > { %1692 = vmatpush1.bf16.msra.mxu0 %v3375_v31 }
 0x201   : > { %1693 = vmatprep.subr.bf16.mxu0 %v3383_v35 }
 0x204   : > { %1694 = vmatpush1.bf16.msra.mxu0 %v3381_v36 }
 0x205   : > { %1695 = vmatprep.subr.bf16.mxu0 %v3389_v40 }
 0x208   : > { %1696 = vmatpush1.bf16.msra.mxu0 %v3387_v39 }
 0x209   : > { %1697 = vmatprep.subr.bf16.mxu0 %v3395_v42 }
 0x20c   : > { %1698 = vmatpush1.bf16.msra.mxu0 %v3393_v44 }
 0x20d   : > { %1699 = vmatprep.subr.bf16.mxu0 %v3401_v46 }
 0x210   : > { %1700 = vmatpush1.bf16.msra.mxu0 %v3399_v54 }
 0x211   : > { %1701 = vmatprep.subr.bf16.mxu0 %v3407_v49 }
 0x214   : > { %1702 = vmatpush1.bf16.msra.mxu0 %v3405_v51 }
 0x2b7   : > { %v3162_v52 = vpop.f32.mrf.mxu0 }
 0x2b8   : > { %v1180_v58 = vadd.f32 %v3162_v52, %v2786_v53 }
 0x2b9   : > { %v1171_v55 = vpop.f32.mrf.mxu0 }
 0x2ba   : > { %v1172_v56 = vadd.f32 %v2786_v53, %v1171_v55  ;;  %v4115_v2 = vsel %vm3875_vm12, %v1180_v58, 0.0 }
 0x2bb   : > { %v3163_v57 = vpop.f32.mrf.mxu0 }
 0x2bc   : > { %v1186_v59 = vsel %vm3867_vm8, %v1172_v56, 0.0  ;;  %v1183_v60 = vadd.f32 %v3163_v57, %v2786_v53 }
 0x2bd   : > { %v3079_v61 = vpack.c.bf16 %v1186_v59, %v1186_v59  ;;  %v1174_v62 = vpop.f32.mrf.mxu0 }
 0x2be   : > { %v1189_v63 = vsel %vm3871_vm11, %v1183_v60, 0.0  ;;  %v1175_v0 = vadd.f32 %v2786_v53, %v1174_v62  ;;  %v3416_v60 = vld [vmem:[%s4428_s5 + $0x78] sm:$0xff]   ;;  %v3418_v62 = vld [vmem:[%s4428_s5 + $0x68] sm:$0xff]  }
 0x2bf   : > { %1212 = vst [vmem:[#allocation2 + $0x4] sm:$0xf] %v3079_v61  ;;  %v3082_v1 = vpack.c.bf16 %v1189_v63, %v1189_v63  ;;  %3164 = vmatprep.subr.bf16.mxu0 %v3416_v60  ;;  %v3417_v61 = vld [vmem:[%s4428_s5 + $0x70] sm:$0xff]   ;;  %v3419_v63 = vld [vmem:[%s4428_s5 + $0x60] sm:$0xff]  }
 0x2c0   : > { %v4119_v3 = vsel %vm3881_vm13, %v1175_v0, 0.0  ;;  %v3420_v0 = vld [vmem:[%s4428_s5 + $0x58] sm:$0xff]  }
 0x2c1   : > { %1215 = vst [vmem:[#allocation2 + $0x10] sm:$0xf] %v3082_v1  ;;  %v3095_v4 = vpack.c.bf16 %v4115_v2, %v4119_v3  ;;  %v3421_v1 = vld [vmem:[%s4428_s5 + $0x50] sm:$0xff]  }
 0x2c3   : > { %3103 = vst [vmem:[#allocation2 + $0x8] sm:$0xff] %v3095_v4   ;;  %v3422_v4 = vld [vmem:[%s4428_s5 + $0x48] sm:$0xff]  }
 0x2c6   : > { %v1217_v12 = vld [vmem:[#allocation2 + $0x4] sm:$0xf] }
 0x2c7   : > { %v1250_v14 = vld [vmem:[#allocation2 + $0x4] sm:$0xf]  ;;  %v1231_v16 = vrot.slane %v1217_v12, 7 }
 0x2c8   : > { %1254 = vst [vmem:[#allocation3 + $0x4] sm:$0xf] %v1250_v14  ;;  %v1253_v17 = vld [vmem:[#allocation2 + $0x10] sm:$0xf]  ;;  %v1258_v20 = vld [vmem:[#allocation2 + $0x4] sm:$0xe] }
 0x2c9   : > { %v1261_v18 = vld [vmem:[#allocation2 + $0x10] sm:$0xf]  ;;  %v1232_v24 = vsel %vm4123_vm7, %v2799_v9, %v1231_v16  ;;  %v1233_v25 = vrot.slane %v1231_v16, 4  ;;  %1257 = vst [vmem:[#allocation3 + $0x28] sm:$0xf] %v1253_v17  ;;  %v2800_v39 = vrot.slane %v1258_v20, 9 }
 0x2ca   : > { %v1220_v23 = vld [vmem:[#allocation2 + $0x10] sm:$0x7]  ;;  %v1279_v27 = vrot.slane %v1261_v18, 5  ;;  %v1218_v29 = vld [vmem:[#allocation2 + $0x8] sm:$0xf] }
 0x2cb   : > { %1246 = vst [vmem:[#allocation3] sm:$0xf] %v1232_v24  ;;  %v1251_v26 = vld [vmem:[#allocation2 + $0x8] sm:$0xf]  ;;  %v1219_v30 = vld [vmem:[#allocation2 + $0xc] sm:$0xf] }
 0x2cc   : > { %v1234_v31 = vrot.slane %v1218_v29, 7  ;;  %1255 = vst [vmem:[#allocation3 + $0x10] sm:$0xf] %v1251_v26  ;;  %v1237_v33 = vrot.slane %v1219_v30, 7  ;;  %v1252_v34 = vld [vmem:[#allocation2 + $0xc] sm:$0xf] }
 0x2cd   : > { %v1259_v35 = vld [vmem:[#allocation2 + $0x8] sm:$0xf]  ;;  %v1240_v37 = vrot.slane %v1220_v23, 7  ;;  %1256 = vst [vmem:[#allocation3 + $0x1c] sm:$0xf] %v1252_v34  ;;  %v1281_v41 = vrot.slane %v1279_v27, 4 }
 0x2ce   : > { %v1260_v38 = vld [vmem:[#allocation2 + $0xc] sm:$0xf]  ;;  %v1273_v40 = vrot.slane %v1259_v35, 5  ;;  %v1235_v42 = vsel %vm4123_vm7, %v1233_v25, %v1234_v31  ;;  %v1236_v43 = vrot.slane %v1234_v31, 4  ;;  %v1239_v44 = vrot.slane %v1237_v33, 4 }
 0x2cf   : > { %v1276_v45 = vrot.slane %v1260_v38, 5  ;;  %1247 = vst [vmem:[#allocation3 + $0xc] sm:$0xf] %v1235_v42  ;;  %v1283_v54 = vsel %vm4131_vm14, %v1281_v41, %v1282_v19  ;;  %v3424_v9 = vld [vmem:[%s4426_s3 + $0x370] ss:$8 sps:$4 sm:$0xff]  }
 0x2d0   : > { %v1274_v46 = vsel %vm4131_vm14, %v2800_v39, %v1273_v40  ;;  %v1275_v47 = vrot.slane %v1273_v40, 4  ;;  %v1238_v48 = vsel %vm4123_vm7, %v1236_v43, %v1237_v33  ;;  %v1241_v49 = vsel %vm4123_vm7, %v1239_v44, %v1240_v37  ;;  %1291 = vst [vmem:[#allocation3 + $0x2c] sm:$0xf] %v1283_v54  ;;  %v3429_v12 = vld [vmem:[%s4426_s3 + $0x364] ss:$8 sps:$4 sm:$0xff]  }
 0x2d1   : > { %1288 = vst [vmem:[#allocation3 + $0x8] sm:$0xf] %v1274_v46  ;;  %v1278_v50 = vrot.slane %v1276_v45, 4  ;;  %1248 = vst [vmem:[#allocation3 + $0x18] sm:$0xf] %v1238_v48 }
 0x2d2   : > { %1249 = vst [vmem:[#allocation3 + $0x24] sm:$0xf] %v1241_v49  ;;  %v1277_v51 = vsel %vm4131_vm14, %v1275_v47, %v1276_v45  ;;  %v3432_v14 = vld [vmem:[%s4426_s3 + $0x354] ss:$8 sps:$4 sm:$0xff]   ;;  %v3430_v16 = vld [vmem:[%s4426_s3 + $0x350] ss:$8 sps:$4 sm:$0xff]  }
 0x2d3   : > { %1289 = vst [vmem:[#allocation3 + $0x14] sm:$0xf] %v1277_v51  ;;  %v1280_v52 = vsel %vm4131_vm14, %v1278_v50, %v1279_v27  ;;  %v3408_v53 = vld [vmem:[#allocation3 + $0x4] ss:$12 sps:$4 sm:$0xff]   ;;  %v3435_v17 = vld [vmem:[%s4426_s3 + $0x344] ss:$8 sps:$4 sm:$0xff]  }
 0x2d4   : > { %1290 = vst [vmem:[#allocation3 + $0x20] sm:$0xf] %v1280_v52  ;;  %1666 = vmatprep.mubr.bf16.mxu1 %v3408_v53  ;;  %v3411_v56 = vld [vmem:[#allocation3 + $0x1c] ss:$12 sps:$4 sm:$0xff]   ;;  %v3436_v20 = vld [vmem:[%s4426_s3 + $0x330] ss:$8 sps:$4 sm:$0xff]  }
 0x2d5   : > { %v3433_v18 = vld [vmem:[%s4426_s3 + $0x340] ss:$8 sps:$4 sm:$0xff]   ;;  %v3438_v19 = vld [vmem:[%s4426_s3 + $0x334] ss:$8 sps:$4 sm:$0xff]   ;;  %v3441_v23 = vld [vmem:[%s4426_s3 + $0x324] ss:$8 sps:$4 sm:$0xff]  }
 0x2d6   : > { %v3410_v55 = vld [vmem:[#allocation3] ss:$12 sps:$4 sm:$0xff]   ;;  %v3439_v24 = vld [vmem:[%s4426_s3 + $0x320] ss:$8 sps:$4 sm:$0xff]   ;;  %v3444_v25 = vld [vmem:[%s4426_s3 + $0x314] ss:$8 sps:$4 sm:$0xff]  }
 0x2d7   : > { %1667 = vmatmul.mubr.bf16.vlgmr.msra.gmra.mxu1 %v3410_v55  ;;  %v3442_v27 = vld [vmem:[%s4426_s3 + $0x310] ss:$8 sps:$4 sm:$0xff]   ;;  %v3447_v29 = vld [vmem:[%s4426_s3 + $0x304] ss:$8 sps:$4 sm:$0xff]   ;;  %v3445_v26 = vld [vmem:[%s4426_s3 + $0x300] ss:$8 sps:$4 sm:$0xff]  }
 0x2d8   : > { %1676 = vmatprep.mubr.bf16.mxu1 %v3411_v56  ;;  %2342 = vmatpush1.bf16.msra.mxu1 %v3424_v9  ;;  %v2849_v30 = vld [vmem:[%s4427_s4 + $0x2] sm:$0x3] }
 0x2d9   : > { %v3414_v58 = vld [vmem:[#allocation3 + $0x18] ss:$12 sps:$4 sm:$0xff]   ;;  %2343 = vmatprep.subr.bf16.mxu1 %v3429_v12  ;;  %v1359_v31 = vrot.slane %v2849_v30, %v3999_v7  ;;  %v1355_v53 = vrot.slane %v2849_v30, %v4006_v32 }
 0x2da   : > { %v3413_v57 = vld [vmem:[#allocation3 + $0x8] ss:$12 sps:$4 sm:$0xff]  }
 0x2db   : > { %1720 = vmatmul.mubr.bf16.vlgmr.msra.gmra.mxu0 %v3413_v57  ;;  %v3415_v59 = vld [vmem:[#allocation3 + $0x20] ss:$12 sps:$4 sm:$0xff]  }
 0x2dc   : > { %1729 = vmatprep.mubr.bf16.mxu0 %v3624_v28  ;;  %3165 = vmatpush3.bf16.msra.mxu0 %v3416_v60 }
 0x2dd   : > { %3166 = vmatprep.subr.bf16.mxu0 %v3417_v61  ;;  %2344 = vmatpush1.bf16.msra.mxu1 %v3427_v13 }
 0x2de   : > { %2345 = vmatprep.subr.bf16.mxu1 %v3432_v14 }
 0x2df   : > { %1677 = vmatmul.mubr.bf16.gmra.mxu1 %v3414_v58 }
 0x2e0   : > { %3167 = vmatpush3.bf16.msra.mxu0 %v3417_v61 }
 0x2e1   : > { %3168 = vmatprep.subr.bf16.mxu0 %v3418_v62  ;;  %2346 = vmatpush1.bf16.msra.mxu1 %v3430_v16 }
 0x2e2   : > { %2347 = vmatprep.subr.bf16.mxu1 %v3435_v17 }
 0x2e3   : > { %1730 = vmatmul.mubr.bf16.gmra.mxu0 %v3415_v59 }
 0x2e4   : > { %3169 = vmatpush3.bf16.msra.mxu0 %v3418_v62 }
 0x2e5   : > { %3170 = vmatprep.subr.bf16.mxu0 %v3419_v63  ;;  %2348 = vmatpush1.bf16.msra.mxu1 %v3433_v18 }
 0x2e6   : > { %2349 = vmatprep.subr.bf16.mxu1 %v3438_v19 }
 0x2e8   : > { %3171 = vmatpush3.bf16.msra.mxu0 %v3419_v63 }
 0x2e9   : > { %3172 = vmatprep.subr.bf16.mxu0 %v3420_v0  ;;  %2350 = vmatpush1.bf16.msra.mxu1 %v3436_v20 }
 0x2ea   : > { %2351 = vmatprep.subr.bf16.mxu1 %v3441_v23 }
 0x2ec   : > { %3173 = vmatpush3.bf16.msra.mxu0 %v3420_v0 }
 0x2ed   : > { %3174 = vmatprep.subr.bf16.mxu0 %v3421_v1  ;;  %2352 = vmatpush1.bf16.msra.mxu1 %v3439_v24 }
 0x2ee   : > { %2353 = vmatprep.subr.bf16.mxu1 %v3444_v25 }
 0x2f0   : > { %3175 = vmatpush3.bf16.msra.mxu0 %v3421_v1 }
 0x2f1   : > { %3176 = vmatprep.subr.bf16.mxu0 %v3422_v4  ;;  %2354 = vmatpush1.bf16.msra.mxu1 %v3442_v27 }
 0x2f2   : > { %2355 = vmatprep.subr.bf16.mxu1 %v3447_v29 }
 0x2f4   : > { %3177 = vmatpush3.bf16.msra.mxu0 %v3422_v4 }
 0x2f5   : > { %3178 = vmatprep.subr.bf16.mxu0 %v3423_v6  ;;  %2356 = vmatpush1.bf16.msra.mxu1 %v3445_v26 }
 0x2f8   : > { %3179 = vmatpush3.bf16.msra.mxu0 %v3423_v6 }
 0x397   : > { %v1668_v33 = vpop.f32.mrf.mxu1 }
 0x398   : > { %v1669_v61 = vadd.f32 %v1668_v33, %v1355_v53 }
 0x399   : > { %v1670_v35 = vpop.f32.mrf.mxu1 }
 0x39a   : > { %v1671_v36 = vadd.f32 %v1670_v35, %v1359_v31 }
 0x39b   : > { %v1721_v34 = vpop.f32.mrf.mxu0  ;;  %v1672_v38 = vpop.f32.mrf.mxu1 }
 0x39c   : > { %v1673_v63 = vadd.f32 %v1672_v38, %v1355_v53  ;;  %v1722_v1 = vadd.f32 %v1721_v34, %v1669_v61  ;;  %v3478_v61 = vld [vmem:[%s4426_s3 + $0x3a0] ss:$8 sps:$4 sm:$0xff]  }
 0x39d   : > { %v1723_v37 = vpop.f32.mrf.mxu0  ;;  %v1674_v41 = vpop.f32.mrf.mxu1 }
 0x39e   : > { %v1724_v39 = vadd.f32 %v1723_v37, %v1671_v36  ;;  %v1675_v43 = vadd.f32 %v1674_v41, %v1359_v31  ;;  %v3453_v41 = vld [vmem:[%s4426_s3 + $0x474] ss:$8 sps:$4 sm:$0xff]  }
 0x39f   : > { %v1725_v40 = vpop.f32.mrf.mxu0  ;;  %v1678_v45 = vpop.f32.mrf.mxu1  ;;  %2394 = vmatprep.subr.bf16.mxu0 %v3453_v41 }
 0x3a0   : > { %v2904_v42 = vmul.f32 -1.442695, %v1724_v39  ;;  %v1726_v6 = vadd.f32 %v1725_v40, %v1673_v63  ;;  %v1679_v11 = vadd.f32 %v1678_v45, %v1355_v53  ;;  %v3450_v39 = vld [vmem:[%s4426_s3 + $0x3f4] ss:$8 sps:$4 sm:$0xff]   ;;  %v3448_v40 = vld [vmem:[%s4426_s3 + $0x3f0] ss:$8 sps:$4 sm:$0xff]  }
 0x3a1   : > { %v1727_v44 = vpop.f32.mrf.mxu0  ;;  %v1680_v54 = vpop.f32.mrf.mxu1  ;;  %2357 = vmatprep.subr.bf16.mxu1 %v3450_v39  ;;  %v3459_v45 = vld [vmem:[%s4426_s3 + $0x464] ss:$8 sps:$4 sm:$0xff]   ;;  %v3486_v63 = vld [vmem:[%s4426_s3 + $0x394] ss:$8 sps:$4 sm:$0xff]  }
 0x3a2   : > { %3536 = vpow2.f32 %v2904_v42  ;;  %v1728_v46 = vadd.f32 %v1727_v44, %v1675_v43  ;;  %v1681_v49 = vadd.f32 %v1680_v54, %v1359_v31  ;;  %v3451_v42 = vld [vmem:[%s4426_s3 + $0x470] ss:$8 sps:$4 sm:$0xff]   ;;  %2358 = vmatpush2.bf16.msra.mxu1 %v3448_v40  ;;  %v3456_v43 = vld [vmem:[%s4426_s3 + $0x3e4] ss:$8 sps:$4 sm:$0xff]   ;;  %v3454_v44 = vld [vmem:[%s4426_s3 + $0x3e0] ss:$8 sps:$4 sm:$0xff]  }
 0x3a3   : > { %v1731_v47 = vpop.f32.mrf.mxu0  ;;  %v1682_v51 = vpop.f32.mrf.mxu1  ;;  %2359 = vmatprep.subr.bf16.mxu1 %v3456_v43  ;;  %v3460_v54 = vld [vmem:[%s4426_s3 + $0x3d0] ss:$8 sps:$4 sm:$0xff]  }
 0x3a4   : > { %v2905_v48 = vmul.f32 -1.442695, %v1728_v46  ;;  %v1683_v13 = vadd.f32 %v1682_v51, %v1355_v53  ;;  %v1732_v16 = vadd.f32 %v1731_v47, %v1679_v11  ;;  %v3457_v46 = vld [vmem:[%s4426_s3 + $0x460] ss:$8 sps:$4 sm:$0xff]   ;;  %v3462_v47 = vld [vmem:[%s4426_s3 + $0x3d4] ss:$8 sps:$4 sm:$0xff]  }
 0x3a5   : > { %v1733_v50 = vpop.f32.mrf.mxu0  ;;  %v1684_v56 = vpop.f32.mrf.mxu1  ;;  %v3468_v51 = vld [vmem:[%s4426_s3 + $0x3c4] ss:$8 sps:$4 sm:$0xff]   ;;  %v3490_v11 = vld [vmem:[%s4426_s3 + $0x380] ss:$8 sps:$4 sm:$0xff]  }
 0x3a6   : > { %3538 = vpow2.f32 %v2905_v48  ;;  %v1734_v52 = vadd.f32 %v1733_v50, %v1681_v49  ;;  %v1685_v58 = vadd.f32 %v1684_v56, %v1359_v31  ;;  %2360 = vmatpush2.bf16.msra.mxu1 %v3454_v44  ;;  %v3465_v48 = vld [vmem:[%s4426_s3 + $0x454] ss:$8 sps:$4 sm:$0xff]   ;;  %v3463_v49 = vld [vmem:[%s4426_s3 + $0x450] ss:$8 sps:$4 sm:$0xff]   ;;  %v3466_v50 = vld [vmem:[%s4426_s3 + $0x3c0] ss:$8 sps:$4 sm:$0xff]  }
 0x3a7   : > { %v1735_v55 = vpop.f32.mrf.mxu0  ;;  %2361 = vmatprep.subr.bf16.mxu1 %v3462_v47  ;;  %v3471_v53 = vld [vmem:[%s4426_s3 + $0x444] ss:$8 sps:$4 sm:$0xff]   ;;  %v3477_v56 = vld [vmem:[%s4426_s3 + $0x434] ss:$8 sps:$4 sm:$0xff]  }
 0x3a8   : > { %v2906_v57 = vmul.f32 -1.442695, %v1734_v52  ;;  %v1736_v18 = vadd.f32 %v1735_v55, %v1683_v13  ;;  %v3469_v52 = vld [vmem:[%s4426_s3 + $0x440] ss:$8 sps:$4 sm:$0xff]   ;;  %v3474_v55 = vld [vmem:[%s4426_s3 + $0x3b4] ss:$8 sps:$4 sm:$0xff]  }
 0x3a9   : > { %v1737_v59 = vpop.f32.mrf.mxu0  ;;  %v2925_v13 = vld [vmem:[%s4429_s6 + $0x1] ss:$0 sm:$0xff] }
 0x3aa   : > { %3540 = vpow2.f32 %v2906_v57  ;;  %v1738_v60 = vadd.f32 %v1737_v59, %v1685_v58  ;;  %2362 = vmatpush2.bf16.msra.mxu1 %v3460_v54  ;;  %v3472_v57 = vld [vmem:[%s4426_s3 + $0x3b0] ss:$8 sps:$4 sm:$0xff]   ;;  %v3480_v59 = vld [vmem:[%s4426_s3 + $0x3a4] ss:$8 sps:$4 sm:$0xff]  }
 0x3ab   : > { %2363 = vmatprep.subr.bf16.mxu1 %v3468_v51  ;;  %v3475_v58 = vld [vmem:[%s4426_s3 + $0x430] ss:$8 sps:$4 sm:$0xff]  }
 0x3ac   : > { %v2907_v62 = vmul.f32 -1.442695, %v1738_v60  ;;  %v3483_v60 = vld [vmem:[%s4426_s3 + $0x424] ss:$8 sps:$4 sm:$0xff]  }
 0x3ae   : > { %3542 = vpow2.f32 %v2907_v62  ;;  %2364 = vmatpush2.bf16.msra.mxu1 %v3466_v50  ;;  %v3481_v62 = vld [vmem:[%s4426_s3 + $0x420] ss:$8 sps:$4 sm:$0xff]  }
 0x3af   : > { %v3537_v0 = vpop.eup %3536  ;;  %3544 = vtanh.f32 %v1722_v1  ;;  %2365 = vmatprep.subr.bf16.mxu1 %v3474_v55  ;;  %v3484_v1 = vld [vmem:[%s4426_s3 + $0x390] ss:$8 sps:$4 sm:$0xff]  }
 0x3b0   : > { %v1756_v4 = vadd.f32 1.0, %v3537_v0  ;;  %v3489_v0 = vld [vmem:[%s4426_s3 + $0x414] ss:$8 sps:$4 sm:$0xff]  }
 0x3b2   : > { %3546 = vrcp.f32 %v1756_v4  ;;  %2366 = vmatpush2.bf16.msra.mxu1 %v3472_v57  ;;  %v3487_v4 = vld [vmem:[%s4426_s3 + $0x410] ss:$8 sps:$4 sm:$0xff]  }
 0x3b3   : > { %v3539_v9 = vpop.eup %3538  ;;  %3548 = vtanh.f32 %v1726_v6  ;;  %2367 = vmatprep.subr.bf16.mxu1 %v3480_v59  ;;  %v3492_v6 = vld [vmem:[%s4426_s3 + $0x384] ss:$8 sps:$4 sm:$0xff]  }
 0x3b4   : > { %v1757_v12 = vadd.f32 1.0, %v3539_v9  ;;  %v3495_v9 = vld [vmem:[%s4426_s3 + $0x404] ss:$8 sps:$4 sm:$0xff]  }
 0x3b6   : > { %3550 = vrcp.f32 %v1757_v12  ;;  %2368 = vmatpush2.bf16.msra.mxu1 %v3478_v61  ;;  %v3493_v12 = vld [vmem:[%s4426_s3 + $0x400] ss:$8 sps:$4 sm:$0xff]  }
 0x3b7   : > { %v3541_v14 = vpop.eup %3540  ;;  %3552 = vtanh.f32 %v1732_v16  ;;  %2369 = vmatprep.subr.bf16.mxu1 %v3486_v63 }
 0x3b8   : > { %v1758_v17 = vadd.f32 1.0, %v3541_v14 }
 0x3ba   : > { %3554 = vrcp.f32 %v1758_v17  ;;  %2370 = vmatpush2.bf16.msra.mxu1 %v3484_v1  ;;  %v1193_v17 = vadd.f32 %v4115_v2, %v3889_v21  ;;  %v1192_v21 = vadd.f32 %v4119_v3, %v3893_v22 }
 0x3bb   : > { %v3543_v19 = vpop.eup %3542  ;;  %3556 = vtanh.f32 %v1736_v18  ;;  %2371 = vmatprep.subr.bf16.mxu1 %v3492_v6 }
 0x3bc   : > { %v1759_v20 = vadd.f32 1.0, %v3543_v19  ;;  %v3545_v23 = vpop.eup %3544 }
 0x3be   : > { %3558 = vrcp.f32 %v1759_v20  ;;  %2372 = vmatpush2.bf16.msra.mxu1 %v3490_v11 }
 0x3bf   : > { %v3547_v24 = vpop.eup %3546 }
 0x3c0   : > { %v3549_v25 = vpop.eup %3548  ;;  %v1768_v29 = vmul.f32 %v3547_v24, %v3545_v23 }
 0x3c3   : > { %v3551_v27 = vpop.eup %3550 }
 0x3c4   : > { %v1769_v26 = vmul.f32 %v3551_v27, %v3549_v25  ;;  %v3553_v31 = vpop.eup %3552 }
 0x3c6   : > { %v1772_v30 = vpack.c.bf16 %v1769_v26, %v1768_v29 }
 0x3c7   : > { %v3555_v33 = vpop.eup %3554 }
 0x3c8   : > { %3180 = vmatprep.mubr.bf16.mxu0 %v1772_v30  ;;  %v3557_v34 = vpop.eup %3556  ;;  %v1770_v36 = vmul.f32 %v3555_v33, %v3553_v31 }
 0x3cb   : > { %v3559_v35 = vpop.eup %3558 }
 0x3cc   : > { %v1771_v37 = vmul.f32 %v3559_v35, %v3557_v34  ;;  %v1926_v35 = vld [vmem:[#allocation2] sm:$0xc] }
 0x3ce   : > { %v1773_v38 = vpack.c.bf16 %v1771_v37, %v1770_v36  ;;  %v2938_v36 = vrot.slane %v1926_v35, 10  ;;  %v1972_v37 = vld [vmem:[#allocation2 + $0x14] sm:$0x3] }
 0x3cf   : > { %v1989_v41 = vrot.slane %v1972_v37, 6 }
 0x3d0   : > { %3181 = vmatmul.mubr.bf16.vlgmr.msra.gmra.mxu0 %v1773_v38 }
 0x3d1   : > { %2426 = vmatprep.mubr.bf16.mxu0 %v3624_v28  ;;  %2395 = vmatpush1.bf16.msra.mxu0 %v3451_v42 }
 0x3d2   : > { %2396 = vmatprep.subr.bf16.mxu0 %v3459_v45 }
 0x3d5   : > { %2397 = vmatpush1.bf16.msra.mxu0 %v3457_v46 }
 0x3d6   : > { %2398 = vmatprep.subr.bf16.mxu0 %v3465_v48 }
 0x3d9   : > { %2399 = vmatpush1.bf16.msra.mxu0 %v3463_v49 }
 0x3da   : > { %2400 = vmatprep.subr.bf16.mxu0 %v3471_v53 }
 0x3dd   : > { %2401 = vmatpush1.bf16.msra.mxu0 %v3469_v52 }
 0x3de   : > { %2402 = vmatprep.subr.bf16.mxu0 %v3477_v56 }
 0x3e1   : > { %2403 = vmatpush1.bf16.msra.mxu0 %v3475_v58 }
 0x3e2   : > { %2404 = vmatprep.subr.bf16.mxu0 %v3483_v60 }
 0x3e5   : > { %2405 = vmatpush1.bf16.msra.mxu0 %v3481_v62 }
 0x3e6   : > { %2406 = vmatprep.subr.bf16.mxu0 %v3489_v0 }
 0x3e9   : > { %2407 = vmatpush1.bf16.msra.mxu0 %v3487_v4 }
 0x3ea   : > { %2408 = vmatprep.subr.bf16.mxu0 %v3495_v9 }
 0x3ed   : > { %2409 = vmatpush1.bf16.msra.mxu0 %v3493_v12 }
 0x490   : > { %v3182_v14 = vpop.f32.mrf.mxu0 }
 0x491   : > { %v1890_v16 = vadd.f32 %v3182_v14, %v2925_v13 }
 0x492   : > { %v1881_v18 = vpop.f32.mrf.mxu0 }
 0x493   : > { %v1898_v19 = vsel %vm3875_vm12, %v1890_v16, 0.0  ;;  %v1882_v20 = vadd.f32 %v2925_v13, %v1881_v18 }
 0x494   : > { %v4331_v23 = vadd.f32 %v1898_v19, %v1193_v17  ;;  %v3183_v24 = vpop.f32.mrf.mxu0 }
 0x495   : > { %v1896_v25 = vsel %vm3867_vm8, %v1882_v20, 0.0  ;;  %v1893_v27 = vadd.f32 %v3183_v24, %v2925_v13  ;;  %vm1937_vm8 = vcmask 1045508   ;;  %v3504_v20 = vld [vmem:[%s4428_s5 + $0xb8] sm:$0xff]   ;;  %v3505_v24 = vld [vmem:[%s4428_s5 + $0xb0] sm:$0xff]  }
 0x496   : > { %v3083_v29 = vpack.c.bf16 %v1896_v25, %v1896_v25  ;;  %v1884_v26 = vpop.f32.mrf.mxu0  ;;  %3184 = vmatprep.subr.bf16.mxu0 %v3504_v20  ;;  %v3507_v25 = vld [vmem:[%s4428_s5 + $0xa0] sm:$0xff]  }
 0x497   : > { %v1899_v30 = vsel %vm3871_vm11, %v1893_v27, 0.0  ;;  %v1885_v31 = vadd.f32 %v2925_v13, %v1884_v26  ;;  %vm4344_vm11 = vmor %vm373_vm0, %vm1937_vm8  ;;  %v3508_v27 = vld [vmem:[%s4428_s5 + $0x98] sm:$0xff]   ;;  %v3510_v26 = vld [vmem:[%s4428_s5 + $0x88] sm:$0xff]  }
 0x498   : > { %1922 = vst [vmem:[#allocation2 + $0x4] sm:$0xf] %v3083_v29  ;;  %v3086_v2 = vpack.c.bf16 %v1899_v30, %v1899_v30  ;;  %v3509_v29 = vld [vmem:[%s4428_s5 + $0x90] sm:$0xff]   ;;  %v3511_v30 = vld [vmem:[%s4428_s5 + $0x80] sm:$0xff]  }
 0x499   : > { %v1897_v33 = vsel %vm3881_vm13, %v1885_v31, 0.0  ;;  %v2988_v31 = vld [vmem:[%s4427_s4 + $0x4] sm:$0x3] }
 0x49a   : > { %1925 = vst [vmem:[#allocation2 + $0x10] sm:$0xf] %v3086_v2  ;;  %v4341_v34 = vadd.f32 %v1897_v33, %v1192_v21  ;;  %v3100_v5 = vpack.c.bf16 %v1898_v19, %v1897_v33  ;;  %v2066_v21 = vrot.slane %v2988_v31, %v3999_v7 }
 0x49c   : > { %3104 = vst [vmem:[#allocation2 + $0x8] sm:$0xff] %v3100_v5  }
 0x49f   : > { %v1927_v22 = vld [vmem:[#allocation2 + $0x4] sm:$0xf] }
 0x4a0   : > { %v1960_v3 = vld [vmem:[#allocation2 + $0x4] sm:$0xf]  ;;  %v1941_v38 = vrot.slane %v1927_v22, 6 }
 0x4a1   : > { %1964 = vst [vmem:[#allocation3 + $0x4] sm:$0xf] %v1960_v3  ;;  %v1963_v39 = vld [vmem:[#allocation2 + $0x10] sm:$0xf]  ;;  %v1968_v45 = vld [vmem:[#allocation2 + $0x4] sm:$0xc] }
 0x4a2   : > { %v1971_v40 = vld [vmem:[#allocation2 + $0x10] sm:$0xf]  ;;  %v1942_v42 = vsel %vm4344_vm11, %v2938_v36, %v1941_v38  ;;  %v1943_v43 = vrot.slane %v1941_v38, 4  ;;  %1967 = vst [vmem:[#allocation3 + $0x28] sm:$0xf] %v1963_v39  ;;  %v2939_v56 = vrot.slane %v1968_v45, 10 }
 0x4a3   : > { %v1930_v44 = vld [vmem:[#allocation2 + $0x10] sm:$0x3]  ;;  %v1986_v46 = vrot.slane %v1971_v40, 6  ;;  %v1928_v47 = vld [vmem:[#allocation2 + $0x8] sm:$0xf] }
 0x4a4   : > { %1956 = vst [vmem:[#allocation3] sm:$0xf] %v1942_v42  ;;  %v1961_v54 = vld [vmem:[#allocation2 + $0x8] sm:$0xf]  ;;  %v1929_v48 = vld [vmem:[#allocation2 + $0xc] sm:$0xf] }
 0x4a5   : > { %v1944_v49 = vrot.slane %v1928_v47, 6  ;;  %1965 = vst [vmem:[#allocation3 + $0x10] sm:$0xf] %v1961_v54  ;;  %v1947_v50 = vrot.slane %v1929_v48, 6  ;;  %v1962_v51 = vld [vmem:[#allocation2 + $0xc] sm:$0xf]  ;;  %v2062_v48 = vrot.slane %v2988_v31, %v4006_v32 }
 0x4a6   : > { %v1969_v52 = vld [vmem:[#allocation2 + $0x8] sm:$0xf]  ;;  %v1950_v53 = vrot.slane %v1930_v44, 6  ;;  %1966 = vst [vmem:[#allocation3 + $0x1c] sm:$0xf] %v1962_v51  ;;  %v1988_v58 = vrot.slane %v1986_v46, 4 }
 0x4a7   : > { %v1970_v55 = vld [vmem:[#allocation2 + $0xc] sm:$0xf]  ;;  %v1980_v57 = vrot.slane %v1969_v52, 6  ;;  %v1945_v59 = vsel %vm4344_vm11, %v1943_v43, %v1944_v49  ;;  %v1946_v60 = vrot.slane %v1944_v49, 4  ;;  %v1949_v61 = vrot.slane %v1947_v50, 4 }
 0x4a8   : > { %v1983_v62 = vrot.slane %v1970_v55, 6  ;;  %1957 = vst [vmem:[#allocation3 + $0xc] sm:$0xf] %v1945_v59  ;;  %v1990_v1 = vsel %vm4344_vm11, %v1988_v58, %v1989_v41 }
 0x4a9   : > { %v1981_v63 = vsel %vm4344_vm11, %v2939_v56, %v1980_v57  ;;  %v1982_v0 = vrot.slane %v1980_v57, 4  ;;  %v1948_v4 = vsel %vm4344_vm11, %v1946_v60, %v1947_v50  ;;  %v1951_v6 = vsel %vm4344_vm11, %v1949_v61, %v1950_v53  ;;  %1998 = vst [vmem:[#allocation3 + $0x2c] sm:$0xf] %v1990_v1 }
 0x4aa   : > { %1995 = vst [vmem:[#allocation3 + $0x8] sm:$0xf] %v1981_v63  ;;  %v1985_v9 = vrot.slane %v1983_v62, 4  ;;  %1958 = vst [vmem:[#allocation3 + $0x18] sm:$0xf] %v1948_v4 }
 0x4ab   : > { %1959 = vst [vmem:[#allocation3 + $0x24] sm:$0xf] %v1951_v6  ;;  %v1984_v11 = vsel %vm4344_vm11, %v1982_v0, %v1983_v62 }
 0x4ac   : > { %1996 = vst [vmem:[#allocation3 + $0x14] sm:$0xf] %v1984_v11  ;;  %v1987_v12 = vsel %vm4344_vm11, %v1985_v9, %v1986_v46  ;;  %v3498_v14 = vld [vmem:[#allocation3 + $0x4] ss:$12 sps:$4 sm:$0xff]  }
 0x4ad   : > { %1997 = vst [vmem:[#allocation3 + $0x20] sm:$0xf] %v1987_v12  ;;  %2373 = vmatprep.mubr.bf16.mxu1 %v3498_v14  ;;  %v3499_v16 = vld [vmem:[#allocation3 + $0x1c] ss:$12 sps:$4 sm:$0xff]  }
 0x4af   : > { %v3496_v13 = vld [vmem:[#allocation3] ss:$12 sps:$4 sm:$0xff]  }
 0x4b0   : > { %2374 = vmatmul.mubr.bf16.vlgmr.msra.gmra.mxu1 %v3496_v13 }
 0x4b1   : > { %2383 = vmatprep.mubr.bf16.mxu1 %v3499_v16 }
 0x4b2   : > { %v3502_v18 = vld [vmem:[#allocation3 + $0x18] ss:$12 sps:$4 sm:$0xff]  }
 0x4b3   : > { %v3501_v17 = vld [vmem:[#allocation3 + $0x8] ss:$12 sps:$4 sm:$0xff]  }
 0x4b4   : > { %2427 = vmatmul.mubr.bf16.vlgmr.msra.gmra.mxu0 %v3501_v17  ;;  %v3503_v19 = vld [vmem:[#allocation3 + $0x20] ss:$12 sps:$4 sm:$0xff]  }
 0x4b5   : > { %2436 = vmatprep.mubr.bf16.mxu0 %v3624_v28  ;;  %3185 = vmatpush3.bf16.msra.mxu0 %v3504_v20  ;;  %v3506_v28 = vld [vmem:[%s4428_s5 + $0xa8] sm:$0xff]  }
 0x4b6   : > { %3186 = vmatprep.subr.bf16.mxu0 %v3505_v24 }
 0x4b8   : > { %2384 = vmatmul.mubr.bf16.gmra.mxu1 %v3502_v18 }
 0x4b9   : > { %3187 = vmatpush3.bf16.msra.mxu0 %v3505_v24 }
 0x4ba   : > { %3188 = vmatprep.subr.bf16.mxu0 %v3506_v28 }
 0x4bc   : > { %2437 = vmatmul.mubr.bf16.gmra.mxu0 %v3503_v19 }
 0x4bd   : > { %3189 = vmatpush3.bf16.msra.mxu0 %v3506_v28 }
 0x4be   : > { %3190 = vmatprep.subr.bf16.mxu0 %v3507_v25 }
 0x4c1   : > { %3191 = vmatpush3.bf16.msra.mxu0 %v3507_v25 }
 0x4c2   : > { %3192 = vmatprep.subr.bf16.mxu0 %v3508_v27 }
 0x4c5   : > { %3193 = vmatpush3.bf16.msra.mxu0 %v3508_v27 }
 0x4c6   : > { %3194 = vmatprep.subr.bf16.mxu0 %v3509_v29 }
 0x4c9   : > { %3195 = vmatpush3.bf16.msra.mxu0 %v3509_v29 }
 0x4ca   : > { %3196 = vmatprep.subr.bf16.mxu0 %v3510_v26 }
 0x4cd   : > { %3197 = vmatpush3.bf16.msra.mxu0 %v3510_v26 }
 0x4ce   : > { %3198 = vmatprep.subr.bf16.mxu0 %v3511_v30 }
 0x4d1   : > { %3199 = vmatpush3.bf16.msra.mxu0 %v3511_v30 }
 0x570   : > { %v2375_v2 = vpop.f32.mrf.mxu1 }
 0x571   : > { %v2376_v56 = vadd.f32 %v2375_v2, %v2062_v48 }
 0x572   : > { %v2377_v5 = vpop.f32.mrf.mxu1 }
 0x573   : > { %v2378_v35 = vadd.f32 %v2377_v5, %v2066_v21 }
 0x574   : > { %v2428_v33 = vpop.f32.mrf.mxu0  ;;  %v2379_v37 = vpop.f32.mrf.mxu1 }
 0x575   : > { %v2380_v58 = vadd.f32 %v2379_v37, %v2062_v48  ;;  %v2429_v60 = vadd.f32 %v2428_v33, %v2376_v56 }
 0x576   : > { %v2430_v36 = vpop.f32.mrf.mxu0  ;;  %v2381_v3 = vpop.f32.mrf.mxu1 }
 0x577   : > { %v2431_v8 = vadd.f32 %v2430_v36, %v2378_v35  ;;  %v2382_v39 = vadd.f32 %v2381_v3, %v2066_v21 }
 0x578   : > { %v2432_v22 = vpop.f32.mrf.mxu0  ;;  %v2385_v41 = vpop.f32.mrf.mxu1 }
 0x579   : > { %v3043_v38 = vmul.f32 -1.442695, %v2431_v8  ;;  %v2433_v62 = vadd.f32 %v2432_v22, %v2380_v58  ;;  %v2386_v0 = vadd.f32 %v2385_v41, %v2062_v48 }
 0x57a   : > { %v2434_v40 = vpop.f32.mrf.mxu0  ;;  %v2387_v44 = vpop.f32.mrf.mxu1 }
 0x57b   : > { %3560 = vpow2.f32 %v3043_v38  ;;  %v2435_v42 = vadd.f32 %v2434_v40, %v2382_v39  ;;  %v2388_v46 = vadd.f32 %v2387_v44, %v2066_v21 }
 0x57c   : > { %v2438_v43 = vpop.f32.mrf.mxu0  ;;  %v2389_v47 = vpop.f32.mrf.mxu1 }
 0x57d   : > { %v3044_v45 = vmul.f32 -1.442695, %v2435_v42  ;;  %v2390_v1 = vadd.f32 %v2389_v47, %v2062_v48  ;;  %v2439_v6 = vadd.f32 %v2438_v43, %v2386_v0 }
 0x57e   : > { %v2440_v7 = vpop.f32.mrf.mxu0  ;;  %v2391_v50 = vpop.f32.mrf.mxu1 }
 0x57f   : > { %3562 = vpow2.f32 %v3044_v45  ;;  %v2441_v54 = vadd.f32 %v2440_v7, %v2388_v46  ;;  %v2392_v52 = vadd.f32 %v2391_v50, %v2066_v21  ;;  %v3064_v21 = vld [vmem:[%s4429_s6 + $0x2] ss:$0 sm:$0xff] }
 0x580   : > { %v2442_v49 = vpop.f32.mrf.mxu0 }
 0x581   : > { %v3045_v51 = vmul.f32 -1.442695, %v2441_v54  ;;  %v2443_v11 = vadd.f32 %v2442_v49, %v2390_v1 }
 0x582   : > { %v2444_v53 = vpop.f32.mrf.mxu0 }
 0x583   : > { %3564 = vpow2.f32 %v3045_v51  ;;  %v2445_v55 = vadd.f32 %v2444_v53, %v2392_v52 }
 0x585   : > { %v3046_v57 = vmul.f32 -1.442695, %v2445_v55 }
 0x587   : > { %3566 = vpow2.f32 %v3046_v57 }
 0x588   : > { %v3561_v59 = vpop.eup %3560  ;;  %3568 = vtanh.f32 %v2429_v60 }
 0x589   : > { %v2463_v61 = vadd.f32 1.0, %v3561_v59 }
 0x58b   : > { %3570 = vrcp.f32 %v2463_v61 }
 0x58c   : > { %v3563_v63 = vpop.eup %3562  ;;  %3572 = vtanh.f32 %v2433_v62 }
 0x58d   : > { %v2464_v32 = vadd.f32 1.0, %v3563_v63 }
 0x58f   : > { %3574 = vrcp.f32 %v2464_v32 }
 0x590   : > { %v3565_v4 = vpop.eup %3564  ;;  %3576 = vtanh.f32 %v2439_v6 }
 0x591   : > { %v2465_v9 = vadd.f32 1.0, %v3565_v4 }
 0x593   : > { %3578 = vrcp.f32 %v2465_v9 }
 0x594   : > { %v3567_v12 = vpop.eup %3566  ;;  %3580 = vtanh.f32 %v2443_v11 }
 0x595   : > { %v2466_v13 = vadd.f32 1.0, %v3567_v12  ;;  %v3569_v14 = vpop.eup %3568 }
 0x597   : > { %3582 = vrcp.f32 %v2466_v13 }
 0x598   : > { %v3571_v16 = vpop.eup %3570 }
 0x599   : > { %v3573_v17 = vpop.eup %3572  ;;  %v2475_v19 = vmul.f32 %v3571_v16, %v3569_v14 }
 0x59c   : > { %v3575_v18 = vpop.eup %3574 }
 0x59d   : > { %v2476_v20 = vmul.f32 %v3575_v18, %v3573_v17  ;;  %v3577_v28 = vpop.eup %3576 }
 0x59f   : > { %v2479_v24 = vpack.c.bf16 %v2476_v20, %v2475_v19 }
 0x5a0   : > { %v3579_v25 = vpop.eup %3578 }
 0x5a1   : > { %3200 = vmatprep.mubr.bf16.mxu0 %v2479_v24  ;;  %v3581_v27 = vpop.eup %3580  ;;  %v2477_v26 = vmul.f32 %v3579_v25, %v3577_v28 }
 0x5a4   : > { %v3583_v29 = vpop.eup %3582 }
 0x5a5   : > { %v2478_v30 = vmul.f32 %v3583_v29, %v3581_v27 }
 0x5a7   : > { %v2480_v31 = vpack.c.bf16 %v2478_v30, %v2477_v26 }
 0x5a9   : > { %3201 = vmatmul.mubr.bf16.vlgmr.msra.gmra.mxu0 %v2480_v31 }
 0x669   : > { %v3202_v2 = vpop.f32.mrf.mxu0 }
 0x66a   : > { %v2596_v33 = vadd.f32 %v3202_v2, %v3064_v21 }
 0x66b   : > { %v2588_v5 = vpop.f32.mrf.mxu0 }
 0x66c   : > { %v2602_v35 = vsel %vm3875_vm12, %v2596_v33, 0.0 }
 0x66d   : > { %v2606_v36 = vadd.f32 %v2602_v35, %v4331_v23  ;;  %v3203_v37 = vpop.f32.mrf.mxu0 }
 0x66f   : > { %2608 = vst [vmem:[%s314_s23 + $0x8] sm:$0xff] %v2606_v36  ;;  %v2590_v8 = vpop.f32.mrf.mxu0 }
 0x670   : > { %v2591_v22 = vadd.f32 %v3064_v21, %v2590_v8 }
 0x672   : > { %v2601_v3 = vsel %vm3881_vm13, %v2591_v22, 0.0 }
 0x673   : > { %v2605_v38 = vadd.f32 %v2601_v3, %v4341_v34 }
 0x675   : > { %2607 = vst [vmem:[%s314_s23] sm:$0xff] %v2605_v38 }
 0x676 PF: > { %s17_s28 = sadd.s32 1, %s3622_s28   ;;  %s4449_s24 = smov %s3614_s26 }
 0x677   : > { %p14_p8 = scmp.ge.s32.totalorder %s17_s28, 6   ;;  %s4450_s25 = smov %s3618_s27 }
 0x678   : > { %s4451_s26 = smov %s4454_s29  ;;  %s4452_s27 = smov %s4458_s30 }
 0x679   :  { %16 = sbr.rel (!%p14_p8) target bundleno = 3 (0x3), region = 86 }

// kernel: wave_block_pallas.1
= control target key start
LH: loop header
LB: loop body
LE: loop exit
PB: predicated region body
PF: predicated region fallthrough
CT: control target
= control target key end

     0   :  { %s3665_s24 = smov 0   ;;  %s3667_s25 = smov 0   ;;  %s4423_s0 = inlined_call_operand.vmem [shape: bf16[2,2,32,4], index: 0, kind: input, shape index: {}]   ;;  %s4424_s1 = inlined_call_operand.vmem [shape: bf16[4,128], index: 1, kind: input, shape index: {}]   ;;  %s4425_s2 = inlined_call_operand.vmem [shape: f32[1,128], index: 2, kind: input, shape index: {}]   ;;  %s4426_s3 = inlined_call_operand.vmem [shape: bf16[3,384,256], index: 3, kind: input, shape index: {}]   ;;  %s4427_s4 = inlined_call_operand.vmem [shape: f32[3,1,256], index: 4, kind: input, shape index: {}]   ;;  %s4428_s5 = inlined_call_operand.vmem [shape: bf16[3,128,128], index: 5, kind: input, shape index: {}]   ;;  %s4429_s6 = inlined_call_operand.vmem [shape: f32[3,1,128], index: 6, kind: input, shape index: {}]   ;;  %s4430_s7 = inlined_call_operand.vmem [shape: f32[2,32,128], index: 7, kind: output, shape index: {}]  }
   0x1   :  { %s3669_s26 = smov 0   ;;  %s3671_s27 = smov 0  }
   0x2   :  { %s3673_s28 = smov 0  }
   0x3 LB: > { %s26_s29 = sadd.s32 1, %s3614_s26  ;;  %s29_s30 = sadd.s32 1, %s3618_s27  ;;  %s3622_s28 = sphi %s3673_s28, %s17_s28   ;;  %s3618_s27 = sphi %s3671_s27, %s4452_s27   ;;  %s3614_s26 = sphi %s3669_s26, %s4451_s26   ;;  %s3610_s25 = sphi %s3667_s25, %s4450_s25   ;;  %s3606_s24 = sphi %s3665_s24, %s4449_s24  }
   0x4   : > { %p27_p0 = scmp.ge.s32.totalorder %s26_s29, 2  ;;  %p2706_p1 = scmp.ge.s32.totalorder %s3622_s28, 1 }
   0x5   : > { %p257_p2 = scmp.lt.s32.totalorder %s3622_s28, 5 }
   0x6   : > { %s4454_s29 = smov (%p27_p0, %s26_s29), 0  ;;  %s4456_s30 = smov (!%p27_p0, %s29_s30), %s3618_s27 }
   0x7   : > { %p258_p3 = pnand %p2706_p1, %p257_p2  ;;  %p31_p4 = scmp.ge.s32.totalorder %s4456_s30, 2 }
   0x8   : > { %p297_p5 = scmp.lt.s32.totalorder (!%p258_p3), %s3610_s25, 1  ;;  %p299_p6 = scmp.lt.s32.totalorder (!%p258_p3), %s3606_s24, 1 }
   0x9   : > { %s4458_s30 = smov (%p31_p4, %s4456_s30), 0  ;;  %261 = sbr.rel (%p258_p3) target bundleno = 1654 (0x676), region = 48 }
   0xa   : > { %s2710_s15 = sshll.u32 (!%p258_p3), %s3606_s24, 1 }
   0xb   : > { %p309_p7 = scmp.lt.s32.totalorder (!%p258_p3), %s2710_s15, 3 }
   0xe   : > { %v348_v0 = vld [vmem:[%s4424_s1] sm:$0x3]  ;;  %vm373_vm0 = vcmask 1041408   ;;  %s4460_s25 = smov (!%p297_p5, %s3610_s25), 1  ;;  %v3248_v2 = vld [vmem:[%s4426_s3 + $0x74] ss:$8 sps:$4 sm:$0xff]   ;;  %v317_v53 = vlaneseq }
   0xf   : > { %3204 = vmatprep.subr.msk.bf16.mxu0 %vm373_vm0, %v348_v0  ;;  %v375_v1 = vsel %vm373_vm0, %v348_v0, 0  ;;  %v3250_v3 = vld [vmem:[%s4426_s3 + $0x70] ss:$8 sps:$4 sm:$0xff]   ;;  %s300_s14 = scalar_select %p299_p6, %s3606_s24, 1  ;;  %v3251_v4 = vld [vmem:[%s4426_s3 + $0x64] ss:$8 sps:$4 sm:$0xff]   ;;  %926 = vmatprep.subr.bf16.mxu1 %v3248_v2 }
  0x10   : > { %3139 = vmatpush3.bf16.msra.mxu0 %v375_v1  ;;  %s2708_s17 = sshll.u32 %s4460_s25, 3  ;;  %927 = vmatpush1.bf16.msra.mxu1 %v3250_v3  ;;  %v3253_v5 = vld [vmem:[%s4426_s3 + $0x60] ss:$8 sps:$4 sm:$0xff]   ;;  %v3254_v6 = vld [vmem:[%s4426_s3 + $0x54] ss:$8 sps:$4 sm:$0xff]   ;;  %vm366_vm1 = vcmask 31744  }
  0x11   : > { %s2707_s18 = sshll.u32 %s300_s14, 2  ;;  %928 = vmatprep.subr.bf16.mxu1 %v3251_v4  ;;  %v3256_v7 = vld [vmem:[%s4426_s3 + $0x50] ss:$8 sps:$4 sm:$0xff]   ;;  %v3257_v8 = vld [vmem:[%s4426_s3 + $0x44] ss:$8 sps:$4 sm:$0xff]   ;;  %v3624_v28 = vmov 0  }
  0x12   : > { %s303_s21 = sadd.s32 %s2708_s17, %s2707_s18  ;;  %v3259_v11 = vld [vmem:[%s4426_s3 + $0x40] ss:$8 sps:$4 sm:$0xff]   ;;  %v3260_v12 = vld [vmem:[%s4426_s3 + $0x34] ss:$8 sps:$4 sm:$0xff]   ;;  %v3262_v13 = vld [vmem:[%s4426_s3 + $0x30] ss:$8 sps:$4 sm:$0xff]  }
  0x13   : > { %s2709_s8 = sshll.u32 %s303_s21, 2  ;;  %v3263_v14 = vld [vmem:[%s4426_s3 + $0x24] ss:$8 sps:$4 sm:$0xff]   ;;  %v3265_v15 = vld [vmem:[%s4426_s3 + $0x20] ss:$8 sps:$4 sm:$0xff]   ;;  %v3857_v54 = vshrl.u32 %v317_v53, 7 }
  0x14   : > { %s305_s13 = scalar_lea.vmem %s4423_s0, %s2709_s8  ;;  %929 = vmatpush1.bf16.msra.mxu1 %v3253_v5  ;;  %v3266_v16 = vld [vmem:[%s4426_s3 + $0x14] ss:$8 sps:$4 sm:$0xff]   ;;  %v3268_v17 = vld [vmem:[%s4426_s3 + $0x10] ss:$8 sps:$4 sm:$0xff]   ;;  %v3269_v18 = vld [vmem:[%s4426_s3 + $0x4] ss:$8 sps:$4 sm:$0xff]  }
  0x15   : > { %v3246_v9 = vld [vmem:[%s305_s13] sm:$0xff]   ;;  %v3247_v10 = vld [vmem:[%s305_s13 + $0x8] sm:$0xff]   ;;  %930 = vmatprep.subr.bf16.mxu1 %v3254_v6  ;;  %v3272_v20 = vld [vmem:[%s4426_s3 + $0xf4] ss:$8 sps:$4 sm:$0xff]   ;;  %440 = vst [vmem:[#allocation2] sm:$0xf] %v3624_v28 }
  0x16   : > { %3140 = vmatprep.mubr.msk.bf16.mxu0 %vm366_vm1, %v3246_v9  ;;  %v3271_v19 = vld [vmem:[%s4426_s3] ss:$8 sps:$4 sm:$0xff]   ;;  %v3274_v21 = vld [vmem:[%s4426_s3 + $0xf0] ss:$8 sps:$4 sm:$0xff]   ;;  %v3277_v22 = vld [vmem:[%s4426_s3 + $0x174] ss:$8 sps:$4 sm:$0xff]  }
  0x17   : > { %3141 = vmatmul.mubr.msk.bf16.vlgmr.msra.gmra.mxu0 %vm366_vm1, %v3247_v10  ;;  %v3275_v23 = vld [vmem:[%s4426_s3 + $0x170] ss:$8 sps:$4 sm:$0xff]   ;;  %979 = vmatprep.subr.bf16.mxu0 %v3277_v22  ;;  %v3278_v24 = vld [vmem:[%s4426_s3 + $0xe4] ss:$8 sps:$4 sm:$0xff]   ;;  %v3280_v25 = vld [vmem:[%s4426_s3 + $0xe0] ss:$8 sps:$4 sm:$0xff]  }
  0x18   : > { %931 = vmatpush1.bf16.msra.mxu1 %v3256_v7  ;;  %980 = vmatpush1.bf16.msra.mxu0 %v3275_v23  ;;  %v3283_v26 = vld [vmem:[%s4426_s3 + $0x164] ss:$8 sps:$4 sm:$0xff]   ;;  %v3281_v27 = vld [vmem:[%s4426_s3 + $0x160] ss:$8 sps:$4 sm:$0xff]   ;;  %441 = vst [vmem:[#allocation2 + $0x14] sm:$0xf] %v3624_v28 }
  0x19   : > { %932 = vmatprep.subr.bf16.mxu1 %v3257_v8  ;;  %981 = vmatprep.subr.bf16.mxu0 %v3283_v26  ;;  %v3284_v29 = vld [vmem:[%s4426_s3 + $0xd4] ss:$8 sps:$4 sm:$0xff]   ;;  %v3286_v30 = vld [vmem:[%s4426_s3 + $0xd0] ss:$8 sps:$4 sm:$0xff]   ;;  %v3290_v33 = vld [vmem:[%s4426_s3 + $0xc4] ss:$8 sps:$4 sm:$0xff]  }
  0x1a   : > { %1011 = vmatprep.mubr.bf16.mxu0 %v3624_v28  ;;  %v3289_v31 = vld [vmem:[%s4426_s3 + $0x154] ss:$8 sps:$4 sm:$0xff]   ;;  %v3287_v32 = vld [vmem:[%s4426_s3 + $0x150] ss:$8 sps:$4 sm:$0xff]   ;;  %v3292_v34 = vld [vmem:[%s4426_s3 + $0xc0] ss:$8 sps:$4 sm:$0xff]  }
  0x1b   : > { %v3295_v35 = vld [vmem:[%s4426_s3 + $0x144] ss:$8 sps:$4 sm:$0xff]   ;;  %v3293_v36 = vld [vmem:[%s4426_s3 + $0x140] ss:$8 sps:$4 sm:$0xff]   ;;  %v3296_v37 = vld [vmem:[%s4426_s3 + $0xb4] ss:$8 sps:$4 sm:$0xff]  }
  0x1c   : > { %933 = vmatpush1.bf16.msra.mxu1 %v3259_v11  ;;  %982 = vmatpush1.bf16.msra.mxu0 %v3281_v27  ;;  %v3298_v38 = vld [vmem:[%s4426_s3 + $0xb0] ss:$8 sps:$4 sm:$0xff]   ;;  %v3301_v39 = vld [vmem:[%s4426_s3 + $0x134] ss:$8 sps:$4 sm:$0xff]   ;;  %v3302_v41 = vld [vmem:[%s4426_s3 + $0xa4] ss:$8 sps:$4 sm:$0xff]  }
  0x1d   : > { %934 = vmatprep.subr.bf16.mxu1 %v3260_v12  ;;  %983 = vmatprep.subr.bf16.mxu0 %v3289_v31  ;;  %v3299_v40 = vld [vmem:[%s4426_s3 + $0x130] ss:$8 sps:$4 sm:$0xff]   ;;  %v3304_v42 = vld [vmem:[%s4426_s3 + $0xa0] ss:$8 sps:$4 sm:$0xff]   ;;  %v3307_v43 = vld [vmem:[%s4426_s3 + $0x124] ss:$8 sps:$4 sm:$0xff]  }
  0x1e   : > { %v3305_v44 = vld [vmem:[%s4426_s3 + $0x120] ss:$8 sps:$4 sm:$0xff]   ;;  %v3308_v45 = vld [vmem:[%s4426_s3 + $0x94] ss:$8 sps:$4 sm:$0xff]   ;;  %v3310_v46 = vld [vmem:[%s4426_s3 + $0x90] ss:$8 sps:$4 sm:$0xff]  }
  0x1f   : > { %v3313_v47 = vld [vmem:[%s4426_s3 + $0x114] ss:$8 sps:$4 sm:$0xff]   ;;  %v3311_v48 = vld [vmem:[%s4426_s3 + $0x110] ss:$8 sps:$4 sm:$0xff]   ;;  %v3314_v49 = vld [vmem:[%s4426_s3 + $0x84] ss:$8 sps:$4 sm:$0xff]  }
  0x20   : > { %935 = vmatpush1.bf16.msra.mxu1 %v3262_v13  ;;  %984 = vmatpush1.bf16.msra.mxu0 %v3287_v32  ;;  %v3319_v50 = vld [vmem:[%s4426_s3 + $0x104] ss:$8 sps:$4 sm:$0xff]   ;;  %v3316_v51 = vld [vmem:[%s4426_s3 + $0x80] ss:$8 sps:$4 sm:$0xff]   ;;  %s2713_s18 = sshll.u32 %s3606_s24, 4  ;;  %v321_v55 = vadd.s32 24, %v3857_v54 }
  0x21   : > { %936 = vmatprep.subr.bf16.mxu1 %v3263_v14  ;;  %985 = vmatprep.subr.bf16.mxu0 %v3295_v35  ;;  %v3317_v52 = vld [vmem:[%s4426_s3 + $0x100] ss:$8 sps:$4 sm:$0xff]   ;;  %v320_v56 = vadd.s32 16, %v3857_v54  ;;  %v323_v57 = vstv %s2713_s18  ;;  %v319_v59 = vadd.s32 8, %v3857_v54  ;;  %vm467_vm14 = vsmask.f32 256 }
  0x22   : > { %v324_v58 = vadd.s32 %v323_v57, %v3857_v54  ;;  %v327_v60 = vadd.s32 %v323_v57, %v321_v55  ;;  %v2718_v4 = vld [vmem:[%s4425_s2] ss:$0 sm:$0xff]  ;;  %vm468_vm15 = vsmask.f32 4368  ;;  %vm531_vm1 = vsmask.f32 3328 }
  0x23   : > { %v326_v61 = vadd.s32 %v323_v57, %v320_v56  ;;  %v325_v63 = vadd.s32 %v323_v57, %v319_v59  ;;  %s4462_s15 = smov (!%p309_p7, %s2710_s15), 3  ;;  %s2711_s16 = sshll.u32 %s4460_s25, 2 }
  0x24   : > { %937 = vmatpush1.bf16.msra.mxu1 %v3265_v15  ;;  %986 = vmatpush1.bf16.msra.mxu0 %v3293_v36  ;;  %v2714_v62 = vadd.s32 4294967288, %v324_v58  ;;  %v2717_v0 = vadd.s32 4294967288, %v327_v60  ;;  %v3347_v60 = vld [vmem:[%s4426_s3 + $0x1c4] ss:$8 sps:$4 sm:$0xff]   ;;  %s312_s17 = sadd.s32 %s2711_s16, %s4462_s15 }
  0x25   : > { %938 = vmatprep.subr.bf16.mxu1 %v3266_v16  ;;  %987 = vmatprep.subr.bf16.mxu0 %v3301_v39  ;;  %v2716_v1 = vadd.s32 4294967288, %v326_v61  ;;  %v2715_v2 = vadd.s32 4294967288, %v325_v63  ;;  %s2712_s20 = sshll.u32 %s312_s17, 3 }
  0x26   : > { %vm332_vm2 = vcmp.ge.s32.totalorder %v2714_v62, 0  ;;  %vm336_vm3 = vcmp.lt.s32.totalorder %v2714_v62, 32  ;;  %vm335_vm4 = vcmp.ge.s32.totalorder %v2717_v0, 0  ;;  %vm339_vm5 = vcmp.lt.s32.totalorder %v2717_v0, 32  ;;  %s314_s23 = scalar_lea.vmem %s4430_s7, %s2712_s20 }
  0x27   : > { %vm334_vm6 = vcmp.ge.s32.totalorder %v2716_v1, 0  ;;  %vm338_vm7 = vcmp.lt.s32.totalorder %v2716_v1, 32  ;;  %vm3867_vm8 = vmand %vm332_vm2, %vm336_vm3  ;;  %vm333_vm9 = vcmp.ge.s32.totalorder %v2715_v2, 0  ;;  %vm337_vm10 = vcmp.lt.s32.totalorder %v2715_v2, 32 }
  0x28   : > { %939 = vmatpush1.bf16.msra.mxu1 %v3268_v17  ;;  %988 = vmatpush1.bf16.msra.mxu0 %v3299_v40  ;;  %vm3871_vm11 = vmand %vm335_vm4, %vm339_vm5  ;;  %vm532_vm2 = vsmask.f32 7440  ;;  %vm1226_vm5 = vcmask 1040384  }
  0x29   : > { %940 = vmatprep.subr.bf16.mxu1 %v3269_v18  ;;  %989 = vmatprep.subr.bf16.mxu0 %v3307_v43  ;;  %vm3875_vm12 = vmand %vm334_vm6, %vm338_vm7  ;;  %vm1227_vm6 = vcmask 1044484  }
  0x2a   : > { %vm3881_vm13 = vmand %vm333_vm9, %vm337_vm10  ;;  %vm1268_vm9 = vcmask 1042432   ;;  %vm1269_vm10 = vcmask 1046532  }
  0x2b   : > { %vm3899_vm3 = vmor %vm467_vm14, %vm468_vm15 }
  0x2c   : > { %941 = vmatpush1.bf16.msra.mxu1 %v3271_v19  ;;  %990 = vmatpush1.bf16.msra.mxu0 %v3305_v44  ;;  %v462_v19 = vld [vmem:[#allocation2] sm:$0x8]  ;;  %vm3907_vm4 = vmor %vm531_vm1, %vm532_vm2 }
  0x2d   : > { %942 = vmatprep.subr.bf16.mxu1 %v3272_v20  ;;  %991 = vmatprep.subr.bf16.mxu0 %v3313_v47  ;;  %vm4123_vm7 = vmor %vm1226_vm5, %vm1227_vm6 }
  0x2e   : > { %vm4131_vm14 = vmor %vm1268_vm9, %vm1269_vm10 }
  0x30   : > { %943 = vmatpush2.bf16.msra.mxu1 %v3274_v21  ;;  %992 = vmatpush1.bf16.msra.mxu0 %v3311_v48 }
  0x31   : > { %944 = vmatprep.subr.bf16.mxu1 %v3278_v24  ;;  %993 = vmatprep.subr.bf16.mxu0 %v3319_v50  ;;  %v471_v24 = vshrl.u32 %v462_v19, 16 }
  0x33   : > { %v2727_v26 = vrot.slane %v471_v24, 11 }
  0x34   : > { %945 = vmatpush2.bf16.msra.mxu1 %v3280_v25  ;;  %994 = vmatpush1.bf16.msra.mxu0 %v3317_v52  ;;  %v530_v25 = vld [vmem:[#allocation2 + $0x14] sm:$0x1] }
  0x35   : > { %946 = vmatprep.subr.bf16.mxu1 %v3284_v29  ;;  %v574_v27 = vshll.u32 %v530_v25, 16 }
  0x37   : > { %v576_v47 = vrot.slane %v574_v27, 5 }
  0x38   : > { %947 = vmatpush2.bf16.msra.mxu1 %v3286_v30 }
  0x39   : > { %948 = vmatprep.subr.bf16.mxu1 %v3290_v33 }
  0x3c   : > { %949 = vmatpush2.bf16.msra.mxu1 %v3292_v34 }
  0x3d   : > { %950 = vmatprep.subr.bf16.mxu1 %v3296_v37 }
  0x40   : > { %951 = vmatpush2.bf16.msra.mxu1 %v3298_v38 }
  0x41   : > { %952 = vmatprep.subr.bf16.mxu1 %v3302_v41 }
  0x44   : > { %953 = vmatpush2.bf16.msra.mxu1 %v3304_v42 }
  0x45   : > { %954 = vmatprep.subr.bf16.mxu1 %v3308_v45 }
  0x48   : > { %955 = vmatpush2.bf16.msra.mxu1 %v3310_v46 }
  0x49   : > { %956 = vmatprep.subr.bf16.mxu1 %v3314_v49 }
  0x4c   : > { %957 = vmatpush2.bf16.msra.mxu1 %v3316_v51 }
  0xd7   : > { %v3142_v3 = vpop.f32.mrf.mxu0 }
  0xd8   : > { %v420_v11 = vadd.f32 %v3142_v3, %v2718_v4 }
  0xd9   : > { %v411_v6 = vpop.f32.mrf.mxu0 }
  0xda   : > { %v412_v7 = vadd.f32 %v2718_v4, %v411_v6  ;;  %v3889_v21 = vsel %vm3875_vm12, %v420_v11, 0.0 }
  0xdb   : > { %v3143_v9 = vpop.f32.mrf.mxu0 }
  0xdc   : > { %v434_v12 = vsel %vm3867_vm8, %v412_v7, 0.0  ;;  %v423_v13 = vadd.f32 %v3143_v9, %v2718_v4 }
  0xdd   : > { %v3075_v14 = vpack.c.bf16 %v434_v12, %v434_v12  ;;  %v414_v16 = vpop.f32.mrf.mxu0 }
  0xde   : > { %v437_v17 = vsel %vm3871_vm11, %v423_v13, 0.0  ;;  %v415_v18 = vadd.f32 %v2718_v4, %v414_v16 }
  0xdf   : > { %458 = vst [vmem:[#allocation2 + $0x4] sm:$0xf] %v3075_v14  ;;  %v3078_v20 = vpack.c.bf16 %v437_v17, %v437_v17 }
  0xe0   : > { %v3893_v22 = vsel %vm3881_vm13, %v415_v18, 0.0 }
  0xe1   : > { %461 = vst [vmem:[#allocation2 + $0x10] sm:$0xf] %v3078_v20  ;;  %v3090_v23 = vpack.c.bf16 %v3889_v21, %v3893_v22 }
  0xe3   : > { %3102 = vst [vmem:[#allocation2 + $0x8] sm:$0xff] %v3090_v23  }
  0xe6   : > { %v463_v29 = vld [vmem:[#allocation2 + $0x4] sm:$0xf] }
  0xe7   : > { %v518_v30 = vld [vmem:[#allocation2 + $0x4] sm:$0xf]  ;;  %v476_v32 = vshrl.u32 %v463_v29, 16  ;;  %v479_v33 = vshll.u32 %v463_v29, 16 }
  0xe8   : > { %v526_v31 = vld [vmem:[#allocation2 + $0x4] sm:$0xf]  ;;  %522 = vst [vmem:[#allocation3 + $0x4] sm:$0xf] %v518_v30  ;;  %v466_v36 = vld [vmem:[#allocation2 + $0x10] sm:$0xf] }
  0xe9   : > { %v535_v34 = vshrl.u32 %v526_v31, 16  ;;  %v538_v35 = vshll.u32 %v526_v31, 16  ;;  %v521_v37 = vld [vmem:[#allocation2 + $0x10] sm:$0xf]  ;;  %v478_v39 = vrot.slane %v476_v32, 7  ;;  %v503_v42 = vshrl.u32 %v466_v36, 16 }
  0xea   : > { %v529_v38 = vld [vmem:[#allocation2 + $0x10] sm:$0xf]  ;;  %525 = vst [vmem:[#allocation3 + $0x28] sm:$0xf] %v521_v37  ;;  %v506_v43 = vshll.u32 %v466_v36, 16 }
  0xeb   : > { %v537_v40 = vrot.slane %v535_v34, 4  ;;  %v540_v41 = vrot.slane %v538_v35, 5  ;;  %v564_v44 = vshll.u32 %v529_v38, 16  ;;  %v568_v45 = vshrl.u32 %v529_v38, 16  ;;  %v464_v46 = vld [vmem:[#allocation2 + $0x8] sm:$0xf] }
  0xec   : > { %v481_v48 = vor.u32 %v479_v33, %v478_v39  ;;  %v483_v49 = vrot.slane %v478_v39, 4  ;;  %v505_v51 = vrot.slane %v503_v42, 7  ;;  %v465_v52 = vld [vmem:[#allocation2 + $0xc] sm:$0xf]  ;;  %v519_v53 = vld [vmem:[#allocation2 + $0x8] sm:$0xf] }
  0xed   : > { %v541_v50 = vor.u32 %v540_v41, %v537_v40  ;;  %v566_v55 = vrot.slane %v564_v44, 5  ;;  %v570_v56 = vrot.slane %v568_v45, 4  ;;  %v485_v57 = vshrl.u32 %v464_v46, 16  ;;  %v520_v59 = vld [vmem:[#allocation2 + $0xc] sm:$0xf]  ;;  %v3328_v45 = vld [vmem:[%s4428_s5 + $0x38] sm:$0xff]  }
  0xee   : > { %v488_v58 = vshll.u32 %v464_v46, 16  ;;  %523 = vst [vmem:[#allocation3 + $0x10] sm:$0xf] %v519_v53  ;;  %v508_v62 = vor.u32 %v506_v43, %v505_v51  ;;  %v494_v63 = vshrl.u32 %v465_v52, 16  ;;  %v497_v0 = vshll.u32 %v465_v52, 16  ;;  %3144 = vmatprep.subr.bf16.mxu0 %v3328_v45  ;;  %v3329_v46 = vld [vmem:[%s4428_s5 + $0x30] sm:$0xff]  }
  0xef   : > { %v542_v61 = vrot.slane %v541_v50, 4  ;;  %524 = vst [vmem:[#allocation3 + $0x1c] sm:$0xf] %v520_v59  ;;  %v527_v1 = vld [vmem:[#allocation2 + $0x8] sm:$0xf]  ;;  %v571_v2 = vor.u32 %v570_v56, %v566_v55  ;;  %v487_v3 = vrot.slane %v485_v57, 7  ;;  %v482_v13 = vsel %vm3899_vm3, %v2727_v26, %v481_v48 }
  0xf0   : > { %v528_v4 = vld [vmem:[#allocation2 + $0xc] sm:$0xf]  ;;  %v544_v6 = vshll.u32 %v527_v1, 16  ;;  %v548_v7 = vshrl.u32 %v527_v1, 16  ;;  %v496_v9 = vrot.slane %v494_v63, 7  ;;  %v3331_v48 = vld [vmem:[%s4428_s5 + $0x20] sm:$0xff]  }
  0xf1   : > { %v554_v11 = vshll.u32 %v528_v4, 16  ;;  %v558_v12 = vshrl.u32 %v528_v4, 16  ;;  %v572_v16 = vrot.slane %v571_v2, 4  ;;  %v490_v17 = vor.u32 %v488_v58, %v487_v3  ;;  %514 = vst [vmem:[#allocation3] sm:$0xf] %v482_v13  ;;  %v3333_v50 = vld [vmem:[%s4428_s5 + $0x10] sm:$0xff]  }
  0xf2   : > { %v492_v18 = vrot.slane %v487_v3, 4  ;;  %v546_v19 = vrot.slane %v544_v6, 5  ;;  %v499_v20 = vor.u32 %v497_v0, %v496_v9  ;;  %v501_v23 = vrot.slane %v496_v9, 4  ;;  %v3334_v51 = vld [vmem:[%s4428_s5 + $0x8] sm:$0xff]   ;;  %v3335_v52 = vld [vmem:[%s4428_s5] sm:$0xff]  }
  0xf3   : > { %v550_v24 = vrot.slane %v548_v7, 4  ;;  %v556_v25 = vrot.slane %v554_v11, 5  ;;  %v560_v27 = vrot.slane %v558_v12, 4  ;;  %v491_v29 = vsel %vm3899_vm3, %v483_v49, %v490_v17  ;;  %v3332_v49 = vld [vmem:[%s4428_s5 + $0x18] sm:$0xff]   ;;  %v3341_v56 = vld [vmem:[%s4426_s3 + $0x1e4] ss:$8 sps:$4 sm:$0xff]  }
  0xf4   : > { %v547_v26 = vsel %vm3907_vm4, %v542_v61, %v546_v19  ;;  %v577_v30 = vsel %vm3907_vm4, %v572_v16, %v576_v47  ;;  %515 = vst [vmem:[#allocation3 + $0xc] sm:$0xf] %v491_v29  ;;  %v500_v32 = vsel %vm3899_vm3, %v492_v18, %v499_v20  ;;  %v509_v33 = vsel %vm3899_vm3, %v501_v23, %v508_v62  ;;  %v3330_v47 = vld [vmem:[%s4428_s5 + $0x28] sm:$0xff]   ;;  %v3336_v53 = vld [vmem:[%s4426_s3 + $0x1f0] ss:$8 sps:$4 sm:$0xff]  }
  0xf5   : > { %v551_v31 = vor.u32 %v550_v24, %v546_v19  ;;  %582 = vst [vmem:[#allocation3 + $0x8] sm:$0xf] %v547_v26  ;;  %585 = vst [vmem:[#allocation3 + $0x2c] sm:$0xf] %v577_v30  ;;  %v561_v34 = vor.u32 %v560_v27, %v556_v25  ;;  %v3320_v39 = vld [vmem:[#allocation3 + $0x4] ss:$12 sps:$4 sm:$0xff]  }
  0xf6   : > { %516 = vst [vmem:[#allocation3 + $0x18] sm:$0xf] %v500_v32  ;;  %517 = vst [vmem:[#allocation3 + $0x24] sm:$0xf] %v509_v33  ;;  %958 = vmatprep.mubr.bf16.mxu1 %v3320_v39  ;;  %v3323_v41 = vld [vmem:[#allocation3 + $0x1c] ss:$12 sps:$4 sm:$0xff]  }
  0xf7   : > { %v552_v35 = vrot.slane %v551_v31, 4  ;;  %v562_v36 = vrot.slane %v561_v34, 4  ;;  %v3339_v57 = vld [vmem:[%s4426_s3 + $0x1e0] ss:$8 sps:$4 sm:$0xff]   ;;  %v3344_v58 = vld [vmem:[%s4426_s3 + $0x1d4] ss:$8 sps:$4 sm:$0xff]  }
  0xf8   : > { %v3342_v59 = vld [vmem:[%s4426_s3 + $0x1d0] ss:$8 sps:$4 sm:$0xff]   ;;  %v3345_v61 = vld [vmem:[%s4426_s3 + $0x1c0] ss:$8 sps:$4 sm:$0xff]   ;;  %v3350_v62 = vld [vmem:[%s4426_s3 + $0x1b4] ss:$8 sps:$4 sm:$0xff]  }
  0xf9   : > { %v557_v37 = vsel %vm3907_vm4, %v552_v35, %v556_v25  ;;  %v567_v38 = vsel %vm3907_vm4, %v562_v36, %v566_v55  ;;  %v3338_v55 = vld [vmem:[%s4426_s3 + $0x1f4] ss:$8 sps:$4 sm:$0xff]   ;;  %v3348_v63 = vld [vmem:[%s4426_s3 + $0x1b0] ss:$8 sps:$4 sm:$0xff]   ;;  %v3353_v0 = vld [vmem:[%s4426_s3 + $0x1a4] ss:$8 sps:$4 sm:$0xff]  }
  0xfa   : > { %583 = vst [vmem:[#allocation3 + $0x14] sm:$0xf] %v557_v37  ;;  %584 = vst [vmem:[#allocation3 + $0x20] sm:$0xf] %v567_v38  ;;  %1634 = vmatprep.subr.bf16.mxu1 %v3338_v55  ;;  %v3351_v1 = vld [vmem:[%s4426_s3 + $0x1a0] ss:$8 sps:$4 sm:$0xff]  }
  0xfb   : > { %v3322_v40 = vld [vmem:[#allocation3] ss:$12 sps:$4 sm:$0xff]   ;;  %v3356_v2 = vld [vmem:[%s4426_s3 + $0x194] ss:$8 sps:$4 sm:$0xff]   ;;  %v3357_v6 = vld [vmem:[%s4426_s3 + $0x180] ss:$8 sps:$4 sm:$0xff]  }
  0xfc   : > { %959 = vmatmul.mubr.bf16.vlgmr.msra.gmra.mxu1 %v3322_v40  ;;  %v3354_v3 = vld [vmem:[%s4426_s3 + $0x190] ss:$8 sps:$4 sm:$0xff]   ;;  %v3359_v4 = vld [vmem:[%s4426_s3 + $0x184] ss:$8 sps:$4 sm:$0xff]   ;;  %v3999_v7 = vsub.s32 1, %v3857_v54  ;;  %v4006_v32 = vsub.s32 0, %v3857_v54 }
  0xfd   : > { %968 = vmatprep.mubr.bf16.mxu1 %v3323_v41  ;;  %v3326_v43 = vld [vmem:[#allocation3 + $0x18] ss:$12 sps:$4 sm:$0xff]   ;;  %1635 = vmatpush1.bf16.msra.mxu1 %v3336_v53  ;;  %v642_v9 = vld [vmem:[%s4427_s4] sm:$0x3] }
  0xfe   : > { %1636 = vmatprep.subr.bf16.mxu1 %v3341_v56  ;;  %v651_v11 = vrot.slane %v642_v9, %v3999_v7  ;;  %v647_v40 = vrot.slane %v642_v9, %v4006_v32 }
 0x101   : > { %v3325_v42 = vld [vmem:[#allocation3 + $0x8] ss:$12 sps:$4 sm:$0xff]   ;;  %v3327_v44 = vld [vmem:[#allocation3 + $0x20] ss:$12 sps:$4 sm:$0xff]   ;;  %1637 = vmatpush1.bf16.msra.mxu1 %v3339_v57 }
 0x102   : > { %1012 = vmatmul.mubr.bf16.vlgmr.msra.gmra.mxu0 %v3325_v42  ;;  %1638 = vmatprep.subr.bf16.mxu1 %v3344_v58 }
 0x103   : > { %1021 = vmatprep.mubr.bf16.mxu0 %v3624_v28  ;;  %3145 = vmatpush3.bf16.msra.mxu0 %v3328_v45 }
 0x104   : > { %969 = vmatmul.mubr.bf16.gmra.mxu1 %v3326_v43  ;;  %3146 = vmatprep.subr.bf16.mxu0 %v3329_v46 }
 0x105   : > { %1639 = vmatpush1.bf16.msra.mxu1 %v3342_v59 }
 0x106   : > { %1640 = vmatprep.subr.bf16.mxu1 %v3347_v60 }
 0x107   : > { %3147 = vmatpush3.bf16.msra.mxu0 %v3329_v46 }
 0x108   : > { %3148 = vmatprep.subr.bf16.mxu0 %v3330_v47 }
 0x109   : > { %1641 = vmatpush1.bf16.msra.mxu1 %v3345_v61 }
 0x10a   : > { %1022 = vmatmul.mubr.bf16.gmra.mxu0 %v3327_v44  ;;  %1642 = vmatprep.subr.bf16.mxu1 %v3350_v62 }
 0x10b   : > { %3149 = vmatpush3.bf16.msra.mxu0 %v3330_v47 }
 0x10c   : > { %3150 = vmatprep.subr.bf16.mxu0 %v3331_v48 }
 0x10d   : > { %1643 = vmatpush1.bf16.msra.mxu1 %v3348_v63 }
 0x10e   : > { %1644 = vmatprep.subr.bf16.mxu1 %v3353_v0 }
 0x10f   : > { %3151 = vmatpush3.bf16.msra.mxu0 %v3331_v48 }
 0x110   : > { %3152 = vmatprep.subr.bf16.mxu0 %v3332_v49 }
 0x111   : > { %1645 = vmatpush1.bf16.msra.mxu1 %v3351_v1 }
 0x112   : > { %1646 = vmatprep.subr.bf16.mxu1 %v3356_v2 }
 0x113   : > { %3153 = vmatpush3.bf16.msra.mxu0 %v3332_v49 }
 0x114   : > { %3154 = vmatprep.subr.bf16.mxu0 %v3333_v50 }
 0x115   : > { %1647 = vmatpush1.bf16.msra.mxu1 %v3354_v3 }
 0x116   : > { %1648 = vmatprep.subr.bf16.mxu1 %v3359_v4 }
 0x117   : > { %3155 = vmatpush3.bf16.msra.mxu0 %v3333_v50 }
 0x118   : > { %3156 = vmatprep.subr.bf16.mxu0 %v3334_v51 }
 0x119   : > { %1649 = vmatpush1.bf16.msra.mxu1 %v3357_v6 }
 0x11b   : > { %3157 = vmatpush3.bf16.msra.mxu0 %v3334_v51 }
 0x11c   : > { %3158 = vmatprep.subr.bf16.mxu0 %v3335_v52 }
 0x11f   : > { %3159 = vmatpush3.bf16.msra.mxu0 %v3335_v52 }
 0x1bc   : > { %v960_v12 = vpop.f32.mrf.mxu1 }
 0x1bd   : > { %v961_v45 = vadd.f32 %v960_v12, %v647_v40 }
 0x1be   : > { %v962_v13 = vpop.f32.mrf.mxu1 }
 0x1bf   : > { %v963_v14 = vadd.f32 %v962_v13, %v651_v11 }
 0x1c0   : > { %v964_v17 = vpop.f32.mrf.mxu1 }
 0x1c1   : > { %v965_v47 = vadd.f32 %v964_v17, %v647_v40  ;;  %v3362_v17 = vld [vmem:[%s4426_s3 + $0x274] ss:$8 sps:$4 sm:$0xff]  }
 0x1c2   : > { %v1013_v16 = vpop.f32.mrf.mxu0  ;;  %v966_v19 = vpop.f32.mrf.mxu1  ;;  %1650 = vmatprep.subr.bf16.mxu1 %v3362_v17 }
 0x1c3   : > { %v967_v23 = vadd.f32 %v966_v19, %v651_v11  ;;  %v1014_v48 = vadd.f32 %v1013_v16, %v961_v45  ;;  %v3365_v19 = vld [vmem:[%s4426_s3 + $0x2f4] ss:$8 sps:$4 sm:$0xff]  }
 0x1c4   : > { %v1015_v18 = vpop.f32.mrf.mxu0  ;;  %v970_v25 = vpop.f32.mrf.mxu1  ;;  %1687 = vmatprep.subr.bf16.mxu0 %v3365_v19  ;;  %v3398_v45 = vld [vmem:[%s4426_s3 + $0x214] ss:$8 sps:$4 sm:$0xff]  }
 0x1c5   : > { %v1016_v20 = vadd.f32 %v1015_v18, %v963_v14  ;;  %v971_v52 = vadd.f32 %v970_v25, %v647_v40  ;;  %v3360_v18 = vld [vmem:[%s4426_s3 + $0x270] ss:$8 sps:$4 sm:$0xff]   ;;  %v3371_v25 = vld [vmem:[%s4426_s3 + $0x2e4] ss:$8 sps:$4 sm:$0xff]  }
 0x1c6   : > { %v1017_v24 = vpop.f32.mrf.mxu0  ;;  %v972_v26 = vpop.f32.mrf.mxu1  ;;  %1651 = vmatpush2.bf16.msra.mxu1 %v3360_v18 }
 0x1c7   : > { %v2782_v27 = vmul.f32 -1.442695, %v1016_v20  ;;  %v973_v31 = vadd.f32 %v972_v26, %v651_v11  ;;  %v1018_v50 = vadd.f32 %v1017_v24, %v965_v47  ;;  %v3363_v20 = vld [vmem:[%s4426_s3 + $0x2f0] ss:$8 sps:$4 sm:$0xff]   ;;  %v3366_v24 = vld [vmem:[%s4426_s3 + $0x260] ss:$8 sps:$4 sm:$0xff]  }
 0x1c8   : > { %v1019_v29 = vpop.f32.mrf.mxu0  ;;  %v974_v34 = vpop.f32.mrf.mxu1  ;;  %v3372_v26 = vld [vmem:[%s4426_s3 + $0x250] ss:$8 sps:$4 sm:$0xff]  }
 0x1c9   : > { %3512 = vpow2.f32 %v2782_v27  ;;  %v1020_v30 = vadd.f32 %v1019_v29, %v967_v23  ;;  %v975_v55 = vadd.f32 %v974_v34, %v647_v40  ;;  %v3368_v23 = vld [vmem:[%s4426_s3 + $0x264] ss:$8 sps:$4 sm:$0xff]   ;;  %v3369_v27 = vld [vmem:[%s4426_s3 + $0x2e0] ss:$8 sps:$4 sm:$0xff]   ;;  %v3374_v29 = vld [vmem:[%s4426_s3 + $0x254] ss:$8 sps:$4 sm:$0xff]  }
 0x1ca   : > { %v1023_v33 = vpop.f32.mrf.mxu0  ;;  %v976_v37 = vpop.f32.mrf.mxu1  ;;  %1652 = vmatprep.subr.bf16.mxu1 %v3368_v23  ;;  %v3378_v34 = vld [vmem:[%s4426_s3 + $0x240] ss:$8 sps:$4 sm:$0xff]   ;;  %v3389_v40 = vld [vmem:[%s4426_s3 + $0x2b4] ss:$8 sps:$4 sm:$0xff]   ;;  %v3396_v47 = vld [vmem:[%s4426_s3 + $0x210] ss:$8 sps:$4 sm:$0xff]  }
 0x1cb   : > { %v2783_v35 = vmul.f32 -1.442695, %v1020_v30  ;;  %v977_v39 = vadd.f32 %v976_v37, %v651_v11  ;;  %v1024_v57 = vadd.f32 %v1023_v33, %v971_v52  ;;  %1653 = vmatpush2.bf16.msra.mxu1 %v3366_v24  ;;  %v3377_v30 = vld [vmem:[%s4426_s3 + $0x2d4] ss:$8 sps:$4 sm:$0xff]   ;;  %v3380_v33 = vld [vmem:[%s4426_s3 + $0x244] ss:$8 sps:$4 sm:$0xff]  }
 0x1cc   : > { %v1025_v36 = vpop.f32.mrf.mxu0  ;;  %1654 = vmatprep.subr.bf16.mxu1 %v3374_v29  ;;  %v3384_v37 = vld [vmem:[%s4426_s3 + $0x230] ss:$8 sps:$4 sm:$0xff]  }
 0x1cd   : > { %3514 = vpow2.f32 %v2783_v35  ;;  %v1026_v38 = vadd.f32 %v1025_v36, %v973_v31  ;;  %v3375_v31 = vld [vmem:[%s4426_s3 + $0x2d0] ss:$8 sps:$4 sm:$0xff]   ;;  %v3383_v35 = vld [vmem:[%s4426_s3 + $0x2c4] ss:$8 sps:$4 sm:$0xff]   ;;  %v3381_v36 = vld [vmem:[%s4426_s3 + $0x2c0] ss:$8 sps:$4 sm:$0xff]  }
 0x1ce   : > { %v1027_v41 = vpop.f32.mrf.mxu0 }
 0x1cf   : > { %v2784_v42 = vmul.f32 -1.442695, %v1026_v38  ;;  %v1028_v59 = vadd.f32 %v1027_v41, %v975_v55  ;;  %1655 = vmatpush2.bf16.msra.mxu1 %v3372_v26  ;;  %v3386_v38 = vld [vmem:[%s4426_s3 + $0x234] ss:$8 sps:$4 sm:$0xff]   ;;  %v3392_v41 = vld [vmem:[%s4426_s3 + $0x224] ss:$8 sps:$4 sm:$0xff]  }
 0x1d0   : > { %v1029_v43 = vpop.f32.mrf.mxu0  ;;  %1656 = vmatprep.subr.bf16.mxu1 %v3380_v33 }
 0x1d1   : > { %3516 = vpow2.f32 %v2784_v42  ;;  %v1030_v44 = vadd.f32 %v1029_v43, %v977_v39  ;;  %v3387_v39 = vld [vmem:[%s4426_s3 + $0x2b0] ss:$8 sps:$4 sm:$0xff]   ;;  %v3395_v42 = vld [vmem:[%s4426_s3 + $0x2a4] ss:$8 sps:$4 sm:$0xff]   ;;  %v3390_v43 = vld [vmem:[%s4426_s3 + $0x220] ss:$8 sps:$4 sm:$0xff]  }
 0x1d3   : > { %v2785_v46 = vmul.f32 -1.442695, %v1030_v44  ;;  %1657 = vmatpush2.bf16.msra.mxu1 %v3378_v34  ;;  %v3393_v44 = vld [vmem:[%s4426_s3 + $0x2a0] ss:$8 sps:$4 sm:$0xff]  }
 0x1d4   : > { %1658 = vmatprep.subr.bf16.mxu1 %v3386_v38 }
 0x1d5   : > { %3518 = vpow2.f32 %v2785_v46  ;;  %v3401_v46 = vld [vmem:[%s4426_s3 + $0x294] ss:$8 sps:$4 sm:$0xff]  }
 0x1d6   : > { %v3513_v54 = vpop.eup %3512  ;;  %3520 = vtanh.f32 %v1014_v48  ;;  %v3404_v48 = vld [vmem:[%s4426_s3 + $0x204] ss:$8 sps:$4 sm:$0xff]  }
 0x1d7   : > { %v1048_v49 = vadd.f32 1.0, %v3513_v54  ;;  %1659 = vmatpush2.bf16.msra.mxu1 %v3384_v37  ;;  %v3399_v54 = vld [vmem:[%s4426_s3 + $0x290] ss:$8 sps:$4 sm:$0xff]  }
 0x1d8   : > { %1660 = vmatprep.subr.bf16.mxu1 %v3392_v41 }
 0x1d9   : > { %3522 = vrcp.f32 %v1048_v49  ;;  %v3407_v49 = vld [vmem:[%s4426_s3 + $0x284] ss:$8 sps:$4 sm:$0xff]  }
 0x1da   : > { %v3515_v51 = vpop.eup %3514  ;;  %3524 = vtanh.f32 %v1018_v50  ;;  %v3402_v50 = vld [vmem:[%s4426_s3 + $0x200] ss:$8 sps:$4 sm:$0xff]  }
 0x1db   : > { %v1049_v53 = vadd.f32 1.0, %v3515_v51  ;;  %1661 = vmatpush2.bf16.msra.mxu1 %v3390_v43  ;;  %v3405_v51 = vld [vmem:[%s4426_s3 + $0x280] ss:$8 sps:$4 sm:$0xff]  }
 0x1dc   : > { %1662 = vmatprep.subr.bf16.mxu1 %v3398_v45 }
 0x1dd   : > { %3526 = vrcp.f32 %v1049_v53  ;;  %v2786_v53 = vld [vmem:[%s4429_s6] ss:$0 sm:$0xff] }
 0x1de   : > { %v3517_v56 = vpop.eup %3516  ;;  %3528 = vtanh.f32 %v1024_v57 }
 0x1df   : > { %v1050_v58 = vadd.f32 1.0, %v3517_v56  ;;  %1663 = vmatpush2.bf16.msra.mxu1 %v3396_v47 }
 0x1e0   : > { %1664 = vmatprep.subr.bf16.mxu1 %v3404_v48 }
 0x1e1   : > { %3530 = vrcp.f32 %v1050_v58 }
 0x1e2   : > { %v3519_v60 = vpop.eup %3518  ;;  %3532 = vtanh.f32 %v1028_v59 }
 0x1e3   : > { %v1051_v61 = vadd.f32 1.0, %v3519_v60  ;;  %v3521_v62 = vpop.eup %3520  ;;  %1665 = vmatpush2.bf16.msra.mxu1 %v3402_v50 }
 0x1e5   : > { %3534 = vrcp.f32 %v1051_v61 }
 0x1e6   : > { %v3523_v63 = vpop.eup %3522 }
 0x1e7   : > { %v3525_v0 = vpop.eup %3524  ;;  %v1060_v2 = vmul.f32 %v3523_v63, %v3521_v62 }
 0x1ea   : > { %v3527_v1 = vpop.eup %3526 }
 0x1eb   : > { %v1061_v3 = vmul.f32 %v3527_v1, %v3525_v0  ;;  %v3529_v6 = vpop.eup %3528 }
 0x1ed   : > { %v1064_v4 = vpack.c.bf16 %v1061_v3, %v1060_v2 }
 0x1ee   : > { %v3531_v9 = vpop.eup %3530 }
 0x1ef   : > { %3160 = vmatprep.mubr.bf16.mxu0 %v1064_v4  ;;  %v3533_v11 = vpop.eup %3532  ;;  %v1062_v13 = vmul.f32 %v3531_v9, %v3529_v6  ;;  %v1216_v6 = vld [vmem:[#allocation2] sm:$0x8] }
 0x1f0   : > { %v2799_v9 = vrot.slane %v1216_v6, 11  ;;  %v3423_v6 = vld [vmem:[%s4428_s5 + $0x40] sm:$0xff]  }
 0x1f2   : > { %v3535_v12 = vpop.eup %3534 }
 0x1f3   : > { %v1063_v14 = vmul.f32 %v3535_v12, %v3533_v11  ;;  %v1262_v11 = vld [vmem:[#allocation2 + $0x14] sm:$0x1] }
 0x1f4   : > { %v1282_v19 = vrot.slane %v1262_v11, 5  ;;  %v3426_v11 = vld [vmem:[%s4426_s3 + $0x374] ss:$8 sps:$4 sm:$0xff]  }
 0x1f5   : > { %v1065_v16 = vpack.c.bf16 %v1063_v14, %v1062_v13  ;;  %2341 = vmatprep.subr.bf16.mxu1 %v3426_v11  ;;  %v3427_v13 = vld [vmem:[%s4426_s3 + $0x360] ss:$8 sps:$4 sm:$0xff]  }
 0x1f7   : > { %3161 = vmatmul.mubr.bf16.vlgmr.msra.gmra.mxu0 %v1065_v16 }
 0x1f8   : > { %1719 = vmatprep.mubr.bf16.mxu0 %v3624_v28  ;;  %1688 = vmatpush1.bf16.msra.mxu0 %v3363_v20 }
 0x1f9   : > { %1689 = vmatprep.subr.bf16.mxu0 %v3371_v25 }
 0x1fc   : > { %1690 = vmatpush1.bf16.msra.mxu0 %v3369_v27 }
 0x1fd   : > { %1691 = vmatprep.subr.bf16.mxu0 %v3377_v30 }
 0x200   : > { %1692 = vmatpush1.bf16.msra.mxu0 %v3375_v31 }
 0x201   : > { %1693 = vmatprep.subr.bf16.mxu0 %v3383_v35 }
 0x204   : > { %1694 = vmatpush1.bf16.msra.mxu0 %v3381_v36 }
 0x205   : > { %1695 = vmatprep.subr.bf16.mxu0 %v3389_v40 }
 0x208   : > { %1696 = vmatpush1.bf16.msra.mxu0 %v3387_v39 }
 0x209   : > { %1697 = vmatprep.subr.bf16.mxu0 %v3395_v42 }
 0x20c   : > { %1698 = vmatpush1.bf16.msra.mxu0 %v3393_v44 }
 0x20d   : > { %1699 = vmatprep.subr.bf16.mxu0 %v3401_v46 }
 0x210   : > { %1700 = vmatpush1.bf16.msra.mxu0 %v3399_v54 }
 0x211   : > { %1701 = vmatprep.subr.bf16.mxu0 %v3407_v49 }
 0x214   : > { %1702 = vmatpush1.bf16.msra.mxu0 %v3405_v51 }
 0x2b7   : > { %v3162_v52 = vpop.f32.mrf.mxu0 }
 0x2b8   : > { %v1180_v58 = vadd.f32 %v3162_v52, %v2786_v53 }
 0x2b9   : > { %v1171_v55 = vpop.f32.mrf.mxu0 }
 0x2ba   : > { %v1172_v56 = vadd.f32 %v2786_v53, %v1171_v55  ;;  %v4115_v2 = vsel %vm3875_vm12, %v1180_v58, 0.0 }
 0x2bb   : > { %v3163_v57 = vpop.f32.mrf.mxu0 }
 0x2bc   : > { %v1186_v59 = vsel %vm3867_vm8, %v1172_v56, 0.0  ;;  %v1183_v60 = vadd.f32 %v3163_v57, %v2786_v53 }
 0x2bd   : > { %v3079_v61 = vpack.c.bf16 %v1186_v59, %v1186_v59  ;;  %v1174_v62 = vpop.f32.mrf.mxu0 }
 0x2be   : > { %v1189_v63 = vsel %vm3871_vm11, %v1183_v60, 0.0  ;;  %v1175_v0 = vadd.f32 %v2786_v53, %v1174_v62  ;;  %v3416_v60 = vld [vmem:[%s4428_s5 + $0x78] sm:$0xff]   ;;  %v3418_v62 = vld [vmem:[%s4428_s5 + $0x68] sm:$0xff]  }
 0x2bf   : > { %1212 = vst [vmem:[#allocation2 + $0x4] sm:$0xf] %v3079_v61  ;;  %v3082_v1 = vpack.c.bf16 %v1189_v63, %v1189_v63  ;;  %3164 = vmatprep.subr.bf16.mxu0 %v3416_v60  ;;  %v3417_v61 = vld [vmem:[%s4428_s5 + $0x70] sm:$0xff]   ;;  %v3419_v63 = vld [vmem:[%s4428_s5 + $0x60] sm:$0xff]  }
 0x2c0   : > { %v4119_v3 = vsel %vm3881_vm13, %v1175_v0, 0.0  ;;  %v3420_v0 = vld [vmem:[%s4428_s5 + $0x58] sm:$0xff]  }
 0x2c1   : > { %1215 = vst [vmem:[#allocation2 + $0x10] sm:$0xf] %v3082_v1  ;;  %v3095_v4 = vpack.c.bf16 %v4115_v2, %v4119_v3  ;;  %v3421_v1 = vld [vmem:[%s4428_s5 + $0x50] sm:$0xff]  }
 0x2c3   : > { %3103 = vst [vmem:[#allocation2 + $0x8] sm:$0xff] %v3095_v4   ;;  %v3422_v4 = vld [vmem:[%s4428_s5 + $0x48] sm:$0xff]  }
 0x2c6   : > { %v1217_v12 = vld [vmem:[#allocation2 + $0x4] sm:$0xf] }
 0x2c7   : > { %v1250_v14 = vld [vmem:[#allocation2 + $0x4] sm:$0xf]  ;;  %v1231_v16 = vrot.slane %v1217_v12, 7 }
 0x2c8   : > { %1254 = vst [vmem:[#allocation3 + $0x4] sm:$0xf] %v1250_v14  ;;  %v1253_v17 = vld [vmem:[#allocation2 + $0x10] sm:$0xf]  ;;  %v1258_v20 = vld [vmem:[#allocation2 + $0x4] sm:$0xe] }
 0x2c9   : > { %v1261_v18 = vld [vmem:[#allocation2 + $0x10] sm:$0xf]  ;;  %v1232_v24 = vsel %vm4123_vm7, %v2799_v9, %v1231_v16  ;;  %v1233_v25 = vrot.slane %v1231_v16, 4  ;;  %1257 = vst [vmem:[#allocation3 + $0x28] sm:$0xf] %v1253_v17  ;;  %v2800_v39 = vrot.slane %v1258_v20, 9 }
 0x2ca   : > { %v1220_v23 = vld [vmem:[#allocation2 + $0x10] sm:$0x7]  ;;  %v1279_v27 = vrot.slane %v1261_v18, 5  ;;  %v1218_v29 = vld [vmem:[#allocation2 + $0x8] sm:$0xf] }
 0x2cb   : > { %1246 = vst [vmem:[#allocation3] sm:$0xf] %v1232_v24  ;;  %v1251_v26 = vld [vmem:[#allocation2 + $0x8] sm:$0xf]  ;;  %v1219_v30 = vld [vmem:[#allocation2 + $0xc] sm:$0xf] }
 0x2cc   : > { %v1234_v31 = vrot.slane %v1218_v29, 7  ;;  %1255 = vst [vmem:[#allocation3 + $0x10] sm:$0xf] %v1251_v26  ;;  %v1237_v33 = vrot.slane %v1219_v30, 7  ;;  %v1252_v34 = vld [vmem:[#allocation2 + $0xc] sm:$0xf] }
 0x2cd   : > { %v1259_v35 = vld [vmem:[#allocation2 + $0x8] sm:$0xf]  ;;  %v1240_v37 = vrot.slane %v1220_v23, 7  ;;  %1256 = vst [vmem:[#allocation3 + $0x1c] sm:$0xf] %v1252_v34  ;;  %v1281_v41 = vrot.slane %v1279_v27, 4 }
 0x2ce   : > { %v1260_v38 = vld [vmem:[#allocation2 + $0xc] sm:$0xf]  ;;  %v1273_v40 = vrot.slane %v1259_v35, 5  ;;  %v1235_v42 = vsel %vm4123_vm7, %v1233_v25, %v1234_v31  ;;  %v1236_v43 = vrot.slane %v1234_v31, 4  ;;  %v1239_v44 = vrot.slane %v1237_v33, 4 }
 0x2cf   : > { %v1276_v45 = vrot.slane %v1260_v38, 5  ;;  %1247 = vst [vmem:[#allocation3 + $0xc] sm:$0xf] %v1235_v42  ;;  %v1283_v54 = vsel %vm4131_vm14, %v1281_v41, %v1282_v19  ;;  %v3424_v9 = vld [vmem:[%s4426_s3 + $0x370] ss:$8 sps:$4 sm:$0xff]  }
 0x2d0   : > { %v1274_v46 = vsel %vm4131_vm14, %v2800_v39, %v1273_v40  ;;  %v1275_v47 = vrot.slane %v1273_v40, 4  ;;  %v1238_v48 = vsel %vm4123_vm7, %v1236_v43, %v1237_v33  ;;  %v1241_v49 = vsel %vm4123_vm7, %v1239_v44, %v1240_v37  ;;  %1291 = vst [vmem:[#allocation3 + $0x2c] sm:$0xf] %v1283_v54  ;;  %v3429_v12 = vld [vmem:[%s4426_s3 + $0x364] ss:$8 sps:$4 sm:$0xff]  }
 0x2d1   : > { %1288 = vst [vmem:[#allocation3 + $0x8] sm:$0xf] %v1274_v46  ;;  %v1278_v50 = vrot.slane %v1276_v45, 4  ;;  %1248 = vst [vmem:[#allocation3 + $0x18] sm:$0xf] %v1238_v48 }
 0x2d2   : > { %1249 = vst [vmem:[#allocation3 + $0x24] sm:$0xf] %v1241_v49  ;;  %v1277_v51 = vsel %vm4131_vm14, %v1275_v47, %v1276_v45  ;;  %v3432_v14 = vld [vmem:[%s4426_s3 + $0x354] ss:$8 sps:$4 sm:$0xff]   ;;  %v3430_v16 = vld [vmem:[%s4426_s3 + $0x350] ss:$8 sps:$4 sm:$0xff]  }
 0x2d3   : > { %1289 = vst [vmem:[#allocation3 + $0x14] sm:$0xf] %v1277_v51  ;;  %v1280_v52 = vsel %vm4131_vm14, %v1278_v50, %v1279_v27  ;;  %v3408_v53 = vld [vmem:[#allocation3 + $0x4] ss:$12 sps:$4 sm:$0xff]   ;;  %v3435_v17 = vld [vmem:[%s4426_s3 + $0x344] ss:$8 sps:$4 sm:$0xff]  }
 0x2d4   : > { %1290 = vst [vmem:[#allocation3 + $0x20] sm:$0xf] %v1280_v52  ;;  %1666 = vmatprep.mubr.bf16.mxu1 %v3408_v53  ;;  %v3411_v56 = vld [vmem:[#allocation3 + $0x1c] ss:$12 sps:$4 sm:$0xff]   ;;  %v3436_v20 = vld [vmem:[%s4426_s3 + $0x330] ss:$8 sps:$4 sm:$0xff]  }
 0x2d5   : > { %v3433_v18 = vld [vmem:[%s4426_s3 + $0x340] ss:$8 sps:$4 sm:$0xff]   ;;  %v3438_v19 = vld [vmem:[%s4426_s3 + $0x334] ss:$8 sps:$4 sm:$0xff]   ;;  %v3441_v23 = vld [vmem:[%s4426_s3 + $0x324] ss:$8 sps:$4 sm:$0xff]  }
 0x2d6   : > { %v3410_v55 = vld [vmem:[#allocation3] ss:$12 sps:$4 sm:$0xff]   ;;  %v3439_v24 = vld [vmem:[%s4426_s3 + $0x320] ss:$8 sps:$4 sm:$0xff]   ;;  %v3444_v25 = vld [vmem:[%s4426_s3 + $0x314] ss:$8 sps:$4 sm:$0xff]  }
 0x2d7   : > { %1667 = vmatmul.mubr.bf16.vlgmr.msra.gmra.mxu1 %v3410_v55  ;;  %v3442_v27 = vld [vmem:[%s4426_s3 + $0x310] ss:$8 sps:$4 sm:$0xff]   ;;  %v3447_v29 = vld [vmem:[%s4426_s3 + $0x304] ss:$8 sps:$4 sm:$0xff]   ;;  %v3445_v26 = vld [vmem:[%s4426_s3 + $0x300] ss:$8 sps:$4 sm:$0xff]  }
 0x2d8   : > { %1676 = vmatprep.mubr.bf16.mxu1 %v3411_v56  ;;  %2342 = vmatpush1.bf16.msra.mxu1 %v3424_v9  ;;  %v2849_v30 = vld [vmem:[%s4427_s4 + $0x2] sm:$0x3] }
 0x2d9   : > { %v3414_v58 = vld [vmem:[#allocation3 + $0x18] ss:$12 sps:$4 sm:$0xff]   ;;  %2343 = vmatprep.subr.bf16.mxu1 %v3429_v12  ;;  %v1359_v31 = vrot.slane %v2849_v30, %v3999_v7  ;;  %v1355_v53 = vrot.slane %v2849_v30, %v4006_v32 }
 0x2da   : > { %v3413_v57 = vld [vmem:[#allocation3 + $0x8] ss:$12 sps:$4 sm:$0xff]  }
 0x2db   : > { %1720 = vmatmul.mubr.bf16.vlgmr.msra.gmra.mxu0 %v3413_v57  ;;  %v3415_v59 = vld [vmem:[#allocation3 + $0x20] ss:$12 sps:$4 sm:$0xff]  }
 0x2dc   : > { %1729 = vmatprep.mubr.bf16.mxu0 %v3624_v28  ;;  %3165 = vmatpush3.bf16.msra.mxu0 %v3416_v60 }
 0x2dd   : > { %3166 = vmatprep.subr.bf16.mxu0 %v3417_v61  ;;  %2344 = vmatpush1.bf16.msra.mxu1 %v3427_v13 }
 0x2de   : > { %2345 = vmatprep.subr.bf16.mxu1 %v3432_v14 }
 0x2df   : > { %1677 = vmatmul.mubr.bf16.gmra.mxu1 %v3414_v58 }
 0x2e0   : > { %3167 = vmatpush3.bf16.msra.mxu0 %v3417_v61 }
 0x2e1   : > { %3168 = vmatprep.subr.bf16.mxu0 %v3418_v62  ;;  %2346 = vmatpush1.bf16.msra.mxu1 %v3430_v16 }
 0x2e2   : > { %2347 = vmatprep.subr.bf16.mxu1 %v3435_v17 }
 0x2e3   : > { %1730 = vmatmul.mubr.bf16.gmra.mxu0 %v3415_v59 }
 0x2e4   : > { %3169 = vmatpush3.bf16.msra.mxu0 %v3418_v62 }
 0x2e5   : > { %3170 = vmatprep.subr.bf16.mxu0 %v3419_v63  ;;  %2348 = vmatpush1.bf16.msra.mxu1 %v3433_v18 }
 0x2e6   : > { %2349 = vmatprep.subr.bf16.mxu1 %v3438_v19 }
 0x2e8   : > { %3171 = vmatpush3.bf16.msra.mxu0 %v3419_v63 }
 0x2e9   : > { %3172 = vmatprep.subr.bf16.mxu0 %v3420_v0  ;;  %2350 = vmatpush1.bf16.msra.mxu1 %v3436_v20 }
 0x2ea   : > { %2351 = vmatprep.subr.bf16.mxu1 %v3441_v23 }
 0x2ec   : > { %3173 = vmatpush3.bf16.msra.mxu0 %v3420_v0 }
 0x2ed   : > { %3174 = vmatprep.subr.bf16.mxu0 %v3421_v1  ;;  %2352 = vmatpush1.bf16.msra.mxu1 %v3439_v24 }
 0x2ee   : > { %2353 = vmatprep.subr.bf16.mxu1 %v3444_v25 }
 0x2f0   : > { %3175 = vmatpush3.bf16.msra.mxu0 %v3421_v1 }
 0x2f1   : > { %3176 = vmatprep.subr.bf16.mxu0 %v3422_v4  ;;  %2354 = vmatpush1.bf16.msra.mxu1 %v3442_v27 }
 0x2f2   : > { %2355 = vmatprep.subr.bf16.mxu1 %v3447_v29 }
 0x2f4   : > { %3177 = vmatpush3.bf16.msra.mxu0 %v3422_v4 }
 0x2f5   : > { %3178 = vmatprep.subr.bf16.mxu0 %v3423_v6  ;;  %2356 = vmatpush1.bf16.msra.mxu1 %v3445_v26 }
 0x2f8   : > { %3179 = vmatpush3.bf16.msra.mxu0 %v3423_v6 }
 0x397   : > { %v1668_v33 = vpop.f32.mrf.mxu1 }
 0x398   : > { %v1669_v61 = vadd.f32 %v1668_v33, %v1355_v53 }
 0x399   : > { %v1670_v35 = vpop.f32.mrf.mxu1 }
 0x39a   : > { %v1671_v36 = vadd.f32 %v1670_v35, %v1359_v31 }
 0x39b   : > { %v1721_v34 = vpop.f32.mrf.mxu0  ;;  %v1672_v38 = vpop.f32.mrf.mxu1 }
 0x39c   : > { %v1673_v63 = vadd.f32 %v1672_v38, %v1355_v53  ;;  %v1722_v1 = vadd.f32 %v1721_v34, %v1669_v61  ;;  %v3478_v61 = vld [vmem:[%s4426_s3 + $0x3a0] ss:$8 sps:$4 sm:$0xff]  }
 0x39d   : > { %v1723_v37 = vpop.f32.mrf.mxu0  ;;  %v1674_v41 = vpop.f32.mrf.mxu1 }
 0x39e   : > { %v1724_v39 = vadd.f32 %v1723_v37, %v1671_v36  ;;  %v1675_v43 = vadd.f32 %v1674_v41, %v1359_v31  ;;  %v3453_v41 = vld [vmem:[%s4426_s3 + $0x474] ss:$8 sps:$4 sm:$0xff]  }
 0x39f   : > { %v1725_v40 = vpop.f32.mrf.mxu0  ;;  %v1678_v45 = vpop.f32.mrf.mxu1  ;;  %2394 = vmatprep.subr.bf16.mxu0 %v3453_v41 }
 0x3a0   : > { %v2904_v42 = vmul.f32 -1.442695, %v1724_v39  ;;  %v1726_v6 = vadd.f32 %v1725_v40, %v1673_v63  ;;  %v1679_v11 = vadd.f32 %v1678_v45, %v1355_v53  ;;  %v3450_v39 = vld [vmem:[%s4426_s3 + $0x3f4] ss:$8 sps:$4 sm:$0xff]   ;;  %v3448_v40 = vld [vmem:[%s4426_s3 + $0x3f0] ss:$8 sps:$4 sm:$0xff]  }
 0x3a1   : > { %v1727_v44 = vpop.f32.mrf.mxu0  ;;  %v1680_v54 = vpop.f32.mrf.mxu1  ;;  %2357 = vmatprep.subr.bf16.mxu1 %v3450_v39  ;;  %v3459_v45 = vld [vmem:[%s4426_s3 + $0x464] ss:$8 sps:$4 sm:$0xff]   ;;  %v3486_v63 = vld [vmem:[%s4426_s3 + $0x394] ss:$8 sps:$4 sm:$0xff]  }
 0x3a2   : > { %3536 = vpow2.f32 %v2904_v42  ;;  %v1728_v46 = vadd.f32 %v1727_v44, %v1675_v43  ;;  %v1681_v49 = vadd.f32 %v1680_v54, %v1359_v31  ;;  %v3451_v42 = vld [vmem:[%s4426_s3 + $0x470] ss:$8 sps:$4 sm:$0xff]   ;;  %2358 = vmatpush2.bf16.msra.mxu1 %v3448_v40  ;;  %v3456_v43 = vld [vmem:[%s4426_s3 + $0x3e4] ss:$8 sps:$4 sm:$0xff]   ;;  %v3454_v44 = vld [vmem:[%s4426_s3 + $0x3e0] ss:$8 sps:$4 sm:$0xff]  }
 0x3a3   : > { %v1731_v47 = vpop.f32.mrf.mxu0  ;;  %v1682_v51 = vpop.f32.mrf.mxu1  ;;  %2359 = vmatprep.subr.bf16.mxu1 %v3456_v43  ;;  %v3460_v54 = vld [vmem:[%s4426_s3 + $0x3d0] ss:$8 sps:$4 sm:$0xff]  }
 0x3a4   : > { %v2905_v48 = vmul.f32 -1.442695, %v1728_v46  ;;  %v1683_v13 = vadd.f32 %v1682_v51, %v1355_v53  ;;  %v1732_v16 = vadd.f32 %v1731_v47, %v1679_v11  ;;  %v3457_v46 = vld [vmem:[%s4426_s3 + $0x460] ss:$8 sps:$4 sm:$0xff]   ;;  %v3462_v47 = vld [vmem:[%s4426_s3 + $0x3d4] ss:$8 sps:$4 sm:$0xff]  }
 0x3a5   : > { %v1733_v50 = vpop.f32.mrf.mxu0  ;;  %v1684_v56 = vpop.f32.mrf.mxu1  ;;  %v3468_v51 = vld [vmem:[%s4426_s3 + $0x3c4] ss:$8 sps:$4 sm:$0xff]   ;;  %v3490_v11 = vld [vmem:[%s4426_s3 + $0x380] ss:$8 sps:$4 sm:$0xff]  }
 0x3a6   : > { %3538 = vpow2.f32 %v2905_v48  ;;  %v1734_v52 = vadd.f32 %v1733_v50, %v1681_v49  ;;  %v1685_v58 = vadd.f32 %v1684_v56, %v1359_v31  ;;  %2360 = vmatpush2.bf16.msra.mxu1 %v3454_v44  ;;  %v3465_v48 = vld [vmem:[%s4426_s3 + $0x454] ss:$8 sps:$4 sm:$0xff]   ;;  %v3463_v49 = vld [vmem:[%s4426_s3 + $0x450] ss:$8 sps:$4 sm:$0xff]   ;;  %v3466_v50 = vld [vmem:[%s4426_s3 + $0x3c0] ss:$8 sps:$4 sm:$0xff]  }
 0x3a7   : > { %v1735_v55 = vpop.f32.mrf.mxu0  ;;  %2361 = vmatprep.subr.bf16.mxu1 %v3462_v47  ;;  %v3471_v53 = vld [vmem:[%s4426_s3 + $0x444] ss:$8 sps:$4 sm:$0xff]   ;;  %v3477_v56 = vld [vmem:[%s4426_s3 + $0x434] ss:$8 sps:$4 sm:$0xff]  }
 0x3a8   : > { %v2906_v57 = vmul.f32 -1.442695, %v1734_v52  ;;  %v1736_v18 = vadd.f32 %v1735_v55, %v1683_v13  ;;  %v3469_v52 = vld [vmem:[%s4426_s3 + $0x440] ss:$8 sps:$4 sm:$0xff]   ;;  %v3474_v55 = vld [vmem:[%s4426_s3 + $0x3b4] ss:$8 sps:$4 sm:$0xff]  }
 0x3a9   : > { %v1737_v59 = vpop.f32.mrf.mxu0  ;;  %v2925_v13 = vld [vmem:[%s4429_s6 + $0x1] ss:$0 sm:$0xff] }
 0x3aa   : > { %3540 = vpow2.f32 %v2906_v57  ;;  %v1738_v60 = vadd.f32 %v1737_v59, %v1685_v58  ;;  %2362 = vmatpush2.bf16.msra.mxu1 %v3460_v54  ;;  %v3472_v57 = vld [vmem:[%s4426_s3 + $0x3b0] ss:$8 sps:$4 sm:$0xff]   ;;  %v3480_v59 = vld [vmem:[%s4426_s3 + $0x3a4] ss:$8 sps:$4 sm:$0xff]  }
 0x3ab   : > { %2363 = vmatprep.subr.bf16.mxu1 %v3468_v51  ;;  %v3475_v58 = vld [vmem:[%s4426_s3 + $0x430] ss:$8 sps:$4 sm:$0xff]  }
 0x3ac   : > { %v2907_v62 = vmul.f32 -1.442695, %v1738_v60  ;;  %v3483_v60 = vld [vmem:[%s4426_s3 + $0x424] ss:$8 sps:$4 sm:$0xff]  }
 0x3ae   : > { %3542 = vpow2.f32 %v2907_v62  ;;  %2364 = vmatpush2.bf16.msra.mxu1 %v3466_v50  ;;  %v3481_v62 = vld [vmem:[%s4426_s3 + $0x420] ss:$8 sps:$4 sm:$0xff]  }
 0x3af   : > { %v3537_v0 = vpop.eup %3536  ;;  %3544 = vtanh.f32 %v1722_v1  ;;  %2365 = vmatprep.subr.bf16.mxu1 %v3474_v55  ;;  %v3484_v1 = vld [vmem:[%s4426_s3 + $0x390] ss:$8 sps:$4 sm:$0xff]  }
 0x3b0   : > { %v1756_v4 = vadd.f32 1.0, %v3537_v0  ;;  %v3489_v0 = vld [vmem:[%s4426_s3 + $0x414] ss:$8 sps:$4 sm:$0xff]  }
 0x3b2   : > { %3546 = vrcp.f32 %v1756_v4  ;;  %2366 = vmatpush2.bf16.msra.mxu1 %v3472_v57  ;;  %v3487_v4 = vld [vmem:[%s4426_s3 + $0x410] ss:$8 sps:$4 sm:$0xff]  }
 0x3b3   : > { %v3539_v9 = vpop.eup %3538  ;;  %3548 = vtanh.f32 %v1726_v6  ;;  %2367 = vmatprep.subr.bf16.mxu1 %v3480_v59  ;;  %v3492_v6 = vld [vmem:[%s4426_s3 + $0x384] ss:$8 sps:$4 sm:$0xff]  }
 0x3b4   : > { %v1757_v12 = vadd.f32 1.0, %v3539_v9  ;;  %v3495_v9 = vld [vmem:[%s4426_s3 + $0x404] ss:$8 sps:$4 sm:$0xff]  }
 0x3b6   : > { %3550 = vrcp.f32 %v1757_v12  ;;  %2368 = vmatpush2.bf16.msra.mxu1 %v3478_v61  ;;  %v3493_v12 = vld [vmem:[%s4426_s3 + $0x400] ss:$8 sps:$4 sm:$0xff]  }
 0x3b7   : > { %v3541_v14 = vpop.eup %3540  ;;  %3552 = vtanh.f32 %v1732_v16  ;;  %2369 = vmatprep.subr.bf16.mxu1 %v3486_v63 }
 0x3b8   : > { %v1758_v17 = vadd.f32 1.0, %v3541_v14 }
 0x3ba   : > { %3554 = vrcp.f32 %v1758_v17  ;;  %2370 = vmatpush2.bf16.msra.mxu1 %v3484_v1  ;;  %v1193_v17 = vadd.f32 %v4115_v2, %v3889_v21  ;;  %v1192_v21 = vadd.f32 %v4119_v3, %v3893_v22 }
 0x3bb   : > { %v3543_v19 = vpop.eup %3542  ;;  %3556 = vtanh.f32 %v1736_v18  ;;  %2371 = vmatprep.subr.bf16.mxu1 %v3492_v6 }
 0x3bc   : > { %v1759_v20 = vadd.f32 1.0, %v3543_v19  ;;  %v3545_v23 = vpop.eup %3544 }
 0x3be   : > { %3558 = vrcp.f32 %v1759_v20  ;;  %2372 = vmatpush2.bf16.msra.mxu1 %v3490_v11 }
 0x3bf   : > { %v3547_v24 = vpop.eup %3546 }
 0x3c0   : > { %v3549_v25 = vpop.eup %3548  ;;  %v1768_v29 = vmul.f32 %v3547_v24, %v3545_v23 }
 0x3c3   : > { %v3551_v27 = vpop.eup %3550 }
 0x3c4   : > { %v1769_v26 = vmul.f32 %v3551_v27, %v3549_v25  ;;  %v3553_v31 = vpop.eup %3552 }
 0x3c6   : > { %v1772_v30 = vpack.c.bf16 %v1769_v26, %v1768_v29 }
 0x3c7   : > { %v3555_v33 = vpop.eup %3554 }
 0x3c8   : > { %3180 = vmatprep.mubr.bf16.mxu0 %v1772_v30  ;;  %v3557_v34 = vpop.eup %3556  ;;  %v1770_v36 = vmul.f32 %v3555_v33, %v3553_v31 }
 0x3cb   : > { %v3559_v35 = vpop.eup %3558 }
 0x3cc   : > { %v1771_v37 = vmul.f32 %v3559_v35, %v3557_v34  ;;  %v1926_v35 = vld [vmem:[#allocation2] sm:$0xc] }
 0x3ce   : > { %v1773_v38 = vpack.c.bf16 %v1771_v37, %v1770_v36  ;;  %v2938_v36 = vrot.slane %v1926_v35, 10  ;;  %v1972_v37 = vld [vmem:[#allocation2 + $0x14] sm:$0x3] }
 0x3cf   : > { %v1989_v41 = vrot.slane %v1972_v37, 6 }
 0x3d0   : > { %3181 = vmatmul.mubr.bf16.vlgmr.msra.gmra.mxu0 %v1773_v38 }
 0x3d1   : > { %2426 = vmatprep.mubr.bf16.mxu0 %v3624_v28  ;;  %2395 = vmatpush1.bf16.msra.mxu0 %v3451_v42 }
 0x3d2   : > { %2396 = vmatprep.subr.bf16.mxu0 %v3459_v45 }
 0x3d5   : > { %2397 = vmatpush1.bf16.msra.mxu0 %v3457_v46 }
 0x3d6   : > { %2398 = vmatprep.subr.bf16.mxu0 %v3465_v48 }
 0x3d9   : > { %2399 = vmatpush1.bf16.msra.mxu0 %v3463_v49 }
 0x3da   : > { %2400 = vmatprep.subr.bf16.mxu0 %v3471_v53 }
 0x3dd   : > { %2401 = vmatpush1.bf16.msra.mxu0 %v3469_v52 }
 0x3de   : > { %2402 = vmatprep.subr.bf16.mxu0 %v3477_v56 }
 0x3e1   : > { %2403 = vmatpush1.bf16.msra.mxu0 %v3475_v58 }
 0x3e2   : > { %2404 = vmatprep.subr.bf16.mxu0 %v3483_v60 }
 0x3e5   : > { %2405 = vmatpush1.bf16.msra.mxu0 %v3481_v62 }
 0x3e6   : > { %2406 = vmatprep.subr.bf16.mxu0 %v3489_v0 }
 0x3e9   : > { %2407 = vmatpush1.bf16.msra.mxu0 %v3487_v4 }
 0x3ea   : > { %2408 = vmatprep.subr.bf16.mxu0 %v3495_v9 }
 0x3ed   : > { %2409 = vmatpush1.bf16.msra.mxu0 %v3493_v12 }
 0x490   : > { %v3182_v14 = vpop.f32.mrf.mxu0 }
 0x491   : > { %v1890_v16 = vadd.f32 %v3182_v14, %v2925_v13 }
 0x492   : > { %v1881_v18 = vpop.f32.mrf.mxu0 }
 0x493   : > { %v1898_v19 = vsel %vm3875_vm12, %v1890_v16, 0.0  ;;  %v1882_v20 = vadd.f32 %v2925_v13, %v1881_v18 }
 0x494   : > { %v4331_v23 = vadd.f32 %v1898_v19, %v1193_v17  ;;  %v3183_v24 = vpop.f32.mrf.mxu0 }
 0x495   : > { %v1896_v25 = vsel %vm3867_vm8, %v1882_v20, 0.0  ;;  %v1893_v27 = vadd.f32 %v3183_v24, %v2925_v13  ;;  %vm1937_vm8 = vcmask 1045508   ;;  %v3504_v20 = vld [vmem:[%s4428_s5 + $0xb8] sm:$0xff]   ;;  %v3505_v24 = vld [vmem:[%s4428_s5 + $0xb0] sm:$0xff]  }
 0x496   : > { %v3083_v29 = vpack.c.bf16 %v1896_v25, %v1896_v25  ;;  %v1884_v26 = vpop.f32.mrf.mxu0  ;;  %3184 = vmatprep.subr.bf16.mxu0 %v3504_v20  ;;  %v3507_v25 = vld [vmem:[%s4428_s5 + $0xa0] sm:$0xff]  }
 0x497   : > { %v1899_v30 = vsel %vm3871_vm11, %v1893_v27, 0.0  ;;  %v1885_v31 = vadd.f32 %v2925_v13, %v1884_v26  ;;  %vm4344_vm11 = vmor %vm373_vm0, %vm1937_vm8  ;;  %v3508_v27 = vld [vmem:[%s4428_s5 + $0x98] sm:$0xff]   ;;  %v3510_v26 = vld [vmem:[%s4428_s5 + $0x88] sm:$0xff]  }
 0x498   : > { %1922 = vst [vmem:[#allocation2 + $0x4] sm:$0xf] %v3083_v29  ;;  %v3086_v2 = vpack.c.bf16 %v1899_v30, %v1899_v30  ;;  %v3509_v29 = vld [vmem:[%s4428_s5 + $0x90] sm:$0xff]   ;;  %v3511_v30 = vld [vmem:[%s4428_s5 + $0x80] sm:$0xff]  }
 0x499   : > { %v1897_v33 = vsel %vm3881_vm13, %v1885_v31, 0.0  ;;  %v2988_v31 = vld [vmem:[%s4427_s4 + $0x4] sm:$0x3] }
 0x49a   : > { %1925 = vst [vmem:[#allocation2 + $0x10] sm:$0xf] %v3086_v2  ;;  %v4341_v34 = vadd.f32 %v1897_v33, %v1192_v21  ;;  %v3100_v5 = vpack.c.bf16 %v1898_v19, %v1897_v33  ;;  %v2066_v21 = vrot.slane %v2988_v31, %v3999_v7 }
 0x49c   : > { %3104 = vst [vmem:[#allocation2 + $0x8] sm:$0xff] %v3100_v5  }
 0x49f   : > { %v1927_v22 = vld [vmem:[#allocation2 + $0x4] sm:$0xf] }
 0x4a0   : > { %v1960_v3 = vld [vmem:[#allocation2 + $0x4] sm:$0xf]  ;;  %v1941_v38 = vrot.slane %v1927_v22, 6 }
 0x4a1   : > { %1964 = vst [vmem:[#allocation3 + $0x4] sm:$0xf] %v1960_v3  ;;  %v1963_v39 = vld [vmem:[#allocation2 + $0x10] sm:$0xf]  ;;  %v1968_v45 = vld [vmem:[#allocation2 + $0x4] sm:$0xc] }
 0x4a2   : > { %v1971_v40 = vld [vmem:[#allocation2 + $0x10] sm:$0xf]  ;;  %v1942_v42 = vsel %vm4344_vm11, %v2938_v36, %v1941_v38  ;;  %v1943_v43 = vrot.slane %v1941_v38, 4  ;;  %1967 = vst [vmem:[#allocation3 + $0x28] sm:$0xf] %v1963_v39  ;;  %v2939_v56 = vrot.slane %v1968_v45, 10 }
 0x4a3   : > { %v1930_v44 = vld [vmem:[#allocation2 + $0x10] sm:$0x3]  ;;  %v1986_v46 = vrot.slane %v1971_v40, 6  ;;  %v1928_v47 = vld [vmem:[#allocation2 + $0x8] sm:$0xf] }
 0x4a4   : > { %1956 = vst [vmem:[#allocation3] sm:$0xf] %v1942_v42  ;;  %v1961_v54 = vld [vmem:[#allocation2 + $0x8] sm:$0xf]  ;;  %v1929_v48 = vld [vmem:[#allocation2 + $0xc] sm:$0xf] }
 0x4a5   : > { %v1944_v49 = vrot.slane %v1928_v47, 6  ;;  %1965 = vst [vmem:[#allocation3 + $0x10] sm:$0xf] %v1961_v54  ;;  %v1947_v50 = vrot.slane %v1929_v48, 6  ;;  %v1962_v51 = vld [vmem:[#allocation2 + $0xc] sm:$0xf]  ;;  %v2062_v48 = vrot.slane %v2988_v31, %v4006_v32 }
 0x4a6   : > { %v1969_v52 = vld [vmem:[#allocation2 + $0x8] sm:$0xf]  ;;  %v1950_v53 = vrot.slane %v1930_v44, 6  ;;  %1966 = vst [vmem:[#allocation3 + $0x1c] sm:$0xf] %v1962_v51  ;;  %v1988_v58 = vrot.slane %v1986_v46, 4 }
 0x4a7   : > { %v1970_v55 = vld [vmem:[#allocation2 + $0xc] sm:$0xf]  ;;  %v1980_v57 = vrot.slane %v1969_v52, 6  ;;  %v1945_v59 = vsel %vm4344_vm11, %v1943_v43, %v1944_v49  ;;  %v1946_v60 = vrot.slane %v1944_v49, 4  ;;  %v1949_v61 = vrot.slane %v1947_v50, 4 }
 0x4a8   : > { %v1983_v62 = vrot.slane %v1970_v55, 6  ;;  %1957 = vst [vmem:[#allocation3 + $0xc] sm:$0xf] %v1945_v59  ;;  %v1990_v1 = vsel %vm4344_vm11, %v1988_v58, %v1989_v41 }
 0x4a9   : > { %v1981_v63 = vsel %vm4344_vm11, %v2939_v56, %v1980_v57  ;;  %v1982_v0 = vrot.slane %v1980_v57, 4  ;;  %v1948_v4 = vsel %vm4344_vm11, %v1946_v60, %v1947_v50  ;;  %v1951_v6 = vsel %vm4344_vm11, %v1949_v61, %v1950_v53  ;;  %1998 = vst [vmem:[#allocation3 + $0x2c] sm:$0xf] %v1990_v1 }
 0x4aa   : > { %1995 = vst [vmem:[#allocation3 + $0x8] sm:$0xf] %v1981_v63  ;;  %v1985_v9 = vrot.slane %v1983_v62, 4  ;;  %1958 = vst [vmem:[#allocation3 + $0x18] sm:$0xf] %v1948_v4 }
 0x4ab   : > { %1959 = vst [vmem:[#allocation3 + $0x24] sm:$0xf] %v1951_v6  ;;  %v1984_v11 = vsel %vm4344_vm11, %v1982_v0, %v1983_v62 }
 0x4ac   : > { %1996 = vst [vmem:[#allocation3 + $0x14] sm:$0xf] %v1984_v11  ;;  %v1987_v12 = vsel %vm4344_vm11, %v1985_v9, %v1986_v46  ;;  %v3498_v14 = vld [vmem:[#allocation3 + $0x4] ss:$12 sps:$4 sm:$0xff]  }
 0x4ad   : > { %1997 = vst [vmem:[#allocation3 + $0x20] sm:$0xf] %v1987_v12  ;;  %2373 = vmatprep.mubr.bf16.mxu1 %v3498_v14  ;;  %v3499_v16 = vld [vmem:[#allocation3 + $0x1c] ss:$12 sps:$4 sm:$0xff]  }
 0x4af   : > { %v3496_v13 = vld [vmem:[#allocation3] ss:$12 sps:$4 sm:$0xff]  }
 0x4b0   : > { %2374 = vmatmul.mubr.bf16.vlgmr.msra.gmra.mxu1 %v3496_v13 }
 0x4b1   : > { %2383 = vmatprep.mubr.bf16.mxu1 %v3499_v16 }
 0x4b2   : > { %v3502_v18 = vld [vmem:[#allocation3 + $0x18] ss:$12 sps:$4 sm:$0xff]  }
 0x4b3   : > { %v3501_v17 = vld [vmem:[#allocation3 + $0x8] ss:$12 sps:$4 sm:$0xff]  }
 0x4b4   : > { %2427 = vmatmul.mubr.bf16.vlgmr.msra.gmra.mxu0 %v3501_v17  ;;  %v3503_v19 = vld [vmem:[#allocation3 + $0x20] ss:$12 sps:$4 sm:$0xff]  }
 0x4b5   : > { %2436 = vmatprep.mubr.bf16.mxu0 %v3624_v28  ;;  %3185 = vmatpush3.bf16.msra.mxu0 %v3504_v20  ;;  %v3506_v28 = vld [vmem:[%s4428_s5 + $0xa8] sm:$0xff]  }
 0x4b6   : > { %3186 = vmatprep.subr.bf16.mxu0 %v3505_v24 }
 0x4b8   : > { %2384 = vmatmul.mubr.bf16.gmra.mxu1 %v3502_v18 }
 0x4b9   : > { %3187 = vmatpush3.bf16.msra.mxu0 %v3505_v24 }
 0x4ba   : > { %3188 = vmatprep.subr.bf16.mxu0 %v3506_v28 }
 0x4bc   : > { %2437 = vmatmul.mubr.bf16.gmra.mxu0 %v3503_v19 }
 0x4bd   : > { %3189 = vmatpush3.bf16.msra.mxu0 %v3506_v28 }
 0x4be   : > { %3190 = vmatprep.subr.bf16.mxu0 %v3507_v25 }
 0x4c1   : > { %3191 = vmatpush3.bf16.msra.mxu0 %v3507_v25 }
 0x4c2   : > { %3192 = vmatprep.subr.bf16.mxu0 %v3508_v27 }
 0x4c5   : > { %3193 = vmatpush3.bf16.msra.mxu0 %v3508_v27 }
 0x4c6   : > { %3194 = vmatprep.subr.bf16.mxu0 %v3509_v29 }
 0x4c9   : > { %3195 = vmatpush3.bf16.msra.mxu0 %v3509_v29 }
 0x4ca   : > { %3196 = vmatprep.subr.bf16.mxu0 %v3510_v26 }
 0x4cd   : > { %3197 = vmatpush3.bf16.msra.mxu0 %v3510_v26 }
 0x4ce   : > { %3198 = vmatprep.subr.bf16.mxu0 %v3511_v30 }
 0x4d1   : > { %3199 = vmatpush3.bf16.msra.mxu0 %v3511_v30 }
 0x570   : > { %v2375_v2 = vpop.f32.mrf.mxu1 }
 0x571   : > { %v2376_v56 = vadd.f32 %v2375_v2, %v2062_v48 }
 0x572   : > { %v2377_v5 = vpop.f32.mrf.mxu1 }
 0x573   : > { %v2378_v35 = vadd.f32 %v2377_v5, %v2066_v21 }
 0x574   : > { %v2428_v33 = vpop.f32.mrf.mxu0  ;;  %v2379_v37 = vpop.f32.mrf.mxu1 }
 0x575   : > { %v2380_v58 = vadd.f32 %v2379_v37, %v2062_v48  ;;  %v2429_v60 = vadd.f32 %v2428_v33, %v2376_v56 }
 0x576   : > { %v2430_v36 = vpop.f32.mrf.mxu0  ;;  %v2381_v3 = vpop.f32.mrf.mxu1 }
 0x577   : > { %v2431_v8 = vadd.f32 %v2430_v36, %v2378_v35  ;;  %v2382_v39 = vadd.f32 %v2381_v3, %v2066_v21 }
 0x578   : > { %v2432_v22 = vpop.f32.mrf.mxu0  ;;  %v2385_v41 = vpop.f32.mrf.mxu1 }
 0x579   : > { %v3043_v38 = vmul.f32 -1.442695, %v2431_v8  ;;  %v2433_v62 = vadd.f32 %v2432_v22, %v2380_v58  ;;  %v2386_v0 = vadd.f32 %v2385_v41, %v2062_v48 }
 0x57a   : > { %v2434_v40 = vpop.f32.mrf.mxu0  ;;  %v2387_v44 = vpop.f32.mrf.mxu1 }
 0x57b   : > { %3560 = vpow2.f32 %v3043_v38  ;;  %v2435_v42 = vadd.f32 %v2434_v40, %v2382_v39  ;;  %v2388_v46 = vadd.f32 %v2387_v44, %v2066_v21 }
 0x57c   : > { %v2438_v43 = vpop.f32.mrf.mxu0  ;;  %v2389_v47 = vpop.f32.mrf.mxu1 }
 0x57d   : > { %v3044_v45 = vmul.f32 -1.442695, %v2435_v42  ;;  %v2390_v1 = vadd.f32 %v2389_v47, %v2062_v48  ;;  %v2439_v6 = vadd.f32 %v2438_v43, %v2386_v0 }
 0x57e   : > { %v2440_v7 = vpop.f32.mrf.mxu0  ;;  %v2391_v50 = vpop.f32.mrf.mxu1 }
 0x57f   : > { %3562 = vpow2.f32 %v3044_v45  ;;  %v2441_v54 = vadd.f32 %v2440_v7, %v2388_v46  ;;  %v2392_v52 = vadd.f32 %v2391_v50, %v2066_v21  ;;  %v3064_v21 = vld [vmem:[%s4429_s6 + $0x2] ss:$0 sm:$0xff] }
 0x580   : > { %v2442_v49 = vpop.f32.mrf.mxu0 }
 0x581   : > { %v3045_v51 = vmul.f32 -1.442695, %v2441_v54  ;;  %v2443_v11 = vadd.f32 %v2442_v49, %v2390_v1 }
 0x582   : > { %v2444_v53 = vpop.f32.mrf.mxu0 }
 0x583   : > { %3564 = vpow2.f32 %v3045_v51  ;;  %v2445_v55 = vadd.f32 %v2444_v53, %v2392_v52 }
 0x585   : > { %v3046_v57 = vmul.f32 -1.442695, %v2445_v55 }
 0x587   : > { %3566 = vpow2.f32 %v3046_v57 }
 0x588   : > { %v3561_v59 = vpop.eup %3560  ;;  %3568 = vtanh.f32 %v2429_v60 }
 0x589   : > { %v2463_v61 = vadd.f32 1.0, %v3561_v59 }
 0x58b   : > { %3570 = vrcp.f32 %v2463_v61 }
 0x58c   : > { %v3563_v63 = vpop.eup %3562  ;;  %3572 = vtanh.f32 %v2433_v62 }
 0x58d   : > { %v2464_v32 = vadd.f32 1.0, %v3563_v63 }
 0x58f   : > { %3574 = vrcp.f32 %v2464_v32 }
 0x590   : > { %v3565_v4 = vpop.eup %3564  ;;  %3576 = vtanh.f32 %v2439_v6 }
 0x591   : > { %v2465_v9 = vadd.f32 1.0, %v3565_v4 }
 0x593   : > { %3578 = vrcp.f32 %v2465_v9 }
 0x594   : > { %v3567_v12 = vpop.eup %3566  ;;  %3580 = vtanh.f32 %v2443_v11 }
 0x595   : > { %v2466_v13 = vadd.f32 1.0, %v3567_v12  ;;  %v3569_v14 = vpop.eup %3568 }
 0x597   : > { %3582 = vrcp.f32 %v2466_v13 }
 0x598   : > { %v3571_v16 = vpop.eup %3570 }
 0x599   : > { %v3573_v17 = vpop.eup %3572  ;;  %v2475_v19 = vmul.f32 %v3571_v16, %v3569_v14 }
 0x59c   : > { %v3575_v18 = vpop.eup %3574 }
 0x59d   : > { %v2476_v20 = vmul.f32 %v3575_v18, %v3573_v17  ;;  %v3577_v28 = vpop.eup %3576 }
 0x59f   : > { %v2479_v24 = vpack.c.bf16 %v2476_v20, %v2475_v19 }
 0x5a0   : > { %v3579_v25 = vpop.eup %3578 }
 0x5a1   : > { %3200 = vmatprep.mubr.bf16.mxu0 %v2479_v24  ;;  %v3581_v27 = vpop.eup %3580  ;;  %v2477_v26 = vmul.f32 %v3579_v25, %v3577_v28 }
 0x5a4   : > { %v3583_v29 = vpop.eup %3582 }
 0x5a5   : > { %v2478_v30 = vmul.f32 %v3583_v29, %v3581_v27 }
 0x5a7   : > { %v2480_v31 = vpack.c.bf16 %v2478_v30, %v2477_v26 }
 0x5a9   : > { %3201 = vmatmul.mubr.bf16.vlgmr.msra.gmra.mxu0 %v2480_v31 }
 0x669   : > { %v3202_v2 = vpop.f32.mrf.mxu0 }
 0x66a   : > { %v2596_v33 = vadd.f32 %v3202_v2, %v3064_v21 }
 0x66b   : > { %v2588_v5 = vpop.f32.mrf.mxu0 }
 0x66c   : > { %v2602_v35 = vsel %vm3875_vm12, %v2596_v33, 0.0 }
 0x66d   : > { %v2606_v36 = vadd.f32 %v2602_v35, %v4331_v23  ;;  %v3203_v37 = vpop.f32.mrf.mxu0 }
 0x66f   : > { %2608 = vst [vmem:[%s314_s23 + $0x8] sm:$0xff] %v2606_v36  ;;  %v2590_v8 = vpop.f32.mrf.mxu0 }
 0x670   : > { %v2591_v22 = vadd.f32 %v3064_v21, %v2590_v8 }
 0x672   : > { %v2601_v3 = vsel %vm3881_vm13, %v2591_v22, 0.0 }
 0x673   : > { %v2605_v38 = vadd.f32 %v2601_v3, %v4341_v34 }
 0x675   : > { %2607 = vst [vmem:[%s314_s23] sm:$0xff] %v2605_v38 }
 0x676 PF: > { %s17_s28 = sadd.s32 1, %s3622_s28   ;;  %s4449_s24 = smov %s3614_s26 }
 0x677   : > { %p14_p8 = scmp.ge.s32.totalorder %s17_s28, 6   ;;  %s4450_s25 = smov %s3618_s27 }
 0x678   : > { %s4451_s26 = smov %s4454_s29  ;;  %s4452_s27 = smov %s4458_s30 }
 0x679   :  { %16 = sbr.rel (!%p14_p8) target bundleno = 3 (0x3), region = 86 }

</bundles_post_ra>
